<compile_context>
chip_gen: v7x
topology: tpu7x:2x2x1
jax: 0.10.0
libtpu: 0.0.40
codegen_flags: <defaults>
</compile_context>

<pallas_src>
import math

import numpy as np
import jax
import jax.numpy as jnp
from jax import lax
from jax.experimental import pallas as pl
from jax.experimental.pallas import tpu as pltpu

EPS = 1e-5
SUBLANE = 8  # f32 sublane packing


def _vmem_spec():
    # whole operand resident in VMEM (single-step kernels, no pipelining needed)
    return pl.BlockSpec(memory_space=pltpu.MemorySpace.VMEM)


def _taps(KH, KW, dil):
    # PyTorch 'same' convention: left/top pad = total_pad // 2
    pt = ((KH - 1) * dil) // 2
    pw = ((KW - 1) * dil) // 2
    return tuple((kh * dil - pt, kw * dil - pw)
                 for kh in range(KH) for kw in range(KW))


def _tap_masks(taps, H, W, N):
    """0/1 lane masks (K, 1, N*H*W) implementing 'same' zero padding per tap."""
    hh = np.arange(H)[:, None]
    ww = np.arange(W)[None, :]
    rows, needs = [], []
    for dh, dw in taps:
        m = ((hh + dh >= 0) & (hh + dh < H) &
             (ww + dw >= 0) & (ww + dw < W)).astype(np.float32).reshape(-1)
        rows.append(np.tile(m, N))              # same spatial mask every sample
        needs.append(not bool(m.all()))         # skip the multiply if all-ones
    return np.stack(rows, 0)[:, None, :], tuple(needs)


# ----------------------------------------------------------------------------
# Kernel 1: fused [producer-BN affine] -> im2col (roll + mask) -> ONE MXU
#           matmul -> bias -> ReLU -> per-channel sum / sumsq (next-BN stats).
# Layout: x (Cin, L), L = N*H*W on lanes; output (Cout, L).
# ----------------------------------------------------------------------------
def _make_conv_kernel(W_img, L, taps, needs_mask):
    def kernel(x_ref, a_ref, c_ref, m_ref, w_ref, b_ref, y_ref, s_ref, sq_ref):
        # producer BatchNorm affine fused on the VMEM tile
        x = x_ref[...] * a_ref[...] + c_ref[...]                 # (Cin, L)
        cols = []
        for k, (dh, dw) in enumerate(taps):
            d = dh * W_img + dw
            # out[l] = x[l + d]  -> np.roll by -d; XLU rotate, no VMEM copies
            sh = pltpu.roll(x, shift=(-d) % L, axis=1) if d else x
            if needs_mask[k]:
                sh = sh * m_ref[k]                               # (1, L) border mask
            cols.append(sh)
        col = jnp.concatenate(cols, axis=0)                      # (K*Cin, L) im2col
        # single fused MXU matmul per conv (K*Cin-deep contraction)
        y = jnp.dot(w_ref[...], col, preferred_element_type=jnp.float32)
        y = jnp.maximum(y + b_ref[...], 0.0)                     # bias + ReLU
        y_ref[...] = y
        # fused per-channel statistics for the following BatchNorm
        s_ref[...] = jnp.sum(y, axis=1, keepdims=True)
        sq_ref[...] = jnp.sum(y * y, axis=1, keepdims=True)

    return kernel


def conv_relu_stats(x, a, c, w, b, *, H, W, dil=1):
    """relu(conv2d(x*a + c, w, 'same', dilation=dil) + b) in (C, N*H*W) layout.

    Returns (y, sum_c, sumsq_c); sums are per output channel over the full
    batch*spatial extent (ready for folding the next BatchNorm)."""
    Cin, L = x.shape
    Cout, Cin_w, KH, KW = w.shape
    assert Cin_w == Cin and L % (H * W) == 0
    N = L // (H * W)
    taps = _taps(KH, KW, dil)
    K = len(taps)

    # pad the contraction channels to the f32 sublane multiple (8)
    Cp = -(-Cin // SUBLANE) * SUBLANE
    if Cp != Cin:
        x = jnp.pad(x, ((0, Cp - Cin), (0, 0)))
        a = jnp.pad(a, (0, Cp - Cin))
        c = jnp.pad(c, (0, Cp - Cin))
        w = jnp.pad(w, ((0, 0), (0, Cp - Cin), (0, 0), (0, 0)))

    # fused weight (Cout, K*Cp); column index = k*Cp + cin matches the im2col
    w_f = jnp.transpose(w, (0, 2, 3, 1)).reshape(Cout, K * Cp)
    masks_np, needs = _tap_masks(taps, H, W, N)

    y, s, sq = pl.pallas_call(
        _make_conv_kernel(W, L, taps, needs),
        out_shape=(jax.ShapeDtypeStruct((Cout, L), jnp.float32),
                   jax.ShapeDtypeStruct((Cout, 1), jnp.float32),
                   jax.ShapeDtypeStruct((Cout, 1), jnp.float32)),
        in_specs=[_vmem_spec() for _ in range(6)],
        out_specs=(_vmem_spec(), _vmem_spec(), _vmem_spec()),
    )(x, a.reshape(Cp, 1), c.reshape(Cp, 1),
      jnp.asarray(masks_np), w_f, b.reshape(Cout, 1))
    return y, s[:, 0], sq[:, 0]


def conv_group(x, a, c, convs, *, H, W, KH, KW, dil=1):
    """Batch several convs that share the same input, producer affine and tap
    set into ONE fused kernel along Cout.  1x1 convs are zero-embedded into the
    shared (KH, KW) tap set.  Returns a list of (y, sum, sumsq) per conv."""
    pt = ((KH - 1) * dil) // 2
    pw = ((KW - 1) * dil) // 2
    ws, bs, sizes = [], [], []
    for cp in convs:
        w = cp['w']
        if w.shape[2:] != (KH, KW):
            assert w.shape[2:] == (1, 1), 'only 1x1 convs can be embedded'
            wz = jnp.zeros(w.shape[:2] + (KH, KW), w.dtype)
            w = wz.at[:, :, pt // dil, pw // dil].set(w[:, :, 0, 0])
        ws.append(w)
        bs.append(cp['b'])
        sizes.append(cp['w'].shape[0])
    y, s, sq = conv_relu_stats(x, a, c, jnp.concatenate(ws, 0),
                               jnp.concatenate(bs, 0), H=H, W=W, dil=dil)
    outs, off = [], 0
    for f in sizes:
        outs.append((y[off:off + f], s[off:off + f], sq[off:off + f]))
        off += f
    return outs


# ----------------------------------------------------------------------------
# Kernel 2: fused affine-sum of M tensors (sum_i y_i*a_i + c_i) + statistics.
# Used for the ResNet residual add (M=2) and the final 6-branch sum (M=6).
# ----------------------------------------------------------------------------
def _make_sum_stats_kernel(M):
    def kernel(*refs):
        a_ref, c_ref = refs[M], refs[M + 1]
        o_ref, s_ref, sq_ref = refs[M + 2], refs[M + 3], refs[M + 4]
        acc = refs[0][...] * a_ref[0] + c_ref[0]
        for i in range(1, M):
            acc = acc + refs[i][...] * a_ref[i] + c_ref[i]
        o_ref[...] = acc
        s_ref[...] = jnp.sum(acc, axis=1, keepdims=True)
        sq_ref[...] = jnp.sum(acc * acc, axis=1, keepdims=True)
    return kernel


def sum_affine_stats(ys, a_list, c_list):
    M = len(ys)
    C, L = ys[0].shape
    a_all = jnp.stack([a.reshape(C, 1) for a in a_list], 0)     # (M, C, 1)
    c_all = jnp.stack([c.reshape(C, 1) for c in c_list], 0)
    out, s, sq = pl.pallas_call(
        _make_sum_stats_kernel(M),
        out_shape=(jax.ShapeDtypeStruct((C, L), jnp.float32),
                   jax.ShapeDtypeStruct((C, 1), jnp.float32),
                   jax.ShapeDtypeStruct((C, 1), jnp.float32)),
        in_specs=[_vmem_spec() for _ in range(M + 2)],
        out_specs=(_vmem_spec(), _vmem_spec(), _vmem_spec()),
    )(*ys, a_all, c_all)
    return out, s[:, 0], sq[:, 0]


# ----------------------------------------------------------------------------
# Kernel 3: per-channel statistics of the raw input (for the leading BN).
# ----------------------------------------------------------------------------
def _stats_kernel(x_ref, s_ref, sq_ref):
    x = x_ref[...]
    s_ref[...] = jnp.sum(x, axis=1, keepdims=True)
    sq_ref[...] = jnp.sum(x * x, axis=1, keepdims=True)


def channel_stats(x):
    C, _ = x.shape
    s, sq = pl.pallas_call(
        _stats_kernel,
        out_shape=(jax.ShapeDtypeStruct((C, 1), jnp.float32),
                   jax.ShapeDtypeStruct((C, 1), jnp.float32)),
        in_specs=[_vmem_spec()],
        out_specs=(_vmem_spec(), _vmem_spec()),
    )(x)
    return s[:, 0], sq[:, 0]


# ----------------------------------------------------------------------------
# Kernel 4: final per-channel affine (bn_final) -- the only standalone affine.
# ----------------------------------------------------------------------------
def _affine_kernel(x_ref, a_ref, c_ref, o_ref):
    o_ref[...] = x_ref[...] * a_ref[...] + c_ref[...]


def channel_affine(x, a, c):
    C, L = x.shape
    return pl.pallas_call(
        _affine_kernel,
        out_shape=jax.ShapeDtypeStruct((C, L), jnp.float32),
        in_specs=[_vmem_spec() for _ in range(3)],
        out_specs=_vmem_spec(),
    )(x, a.reshape(C, 1), c.reshape(C, 1))


# ----------------------------------------------------------------------------
# Full Duckv2Conv2DBlock forward (glue in plain JAX: reshapes, BN folding).
# ----------------------------------------------------------------------------
def duckv2_forward(x_nchw, params):
    N, Cin, H, W = x_nchw.shape
    L = N * H * W
    F = params['bn_final']['g'].shape[0]
    cnt = float(L)

    # (C, N*H*W) layout: batch + spatial on lanes
    x = jnp.transpose(x_nchw, (1, 0, 2, 3)).reshape(Cin, L)

    def bn_ac(s, sq, bn_p):
        mean = s / cnt
        var = sq / cnt - mean * mean                            # biased variance
        aa = bn_p['g'] * lax.rsqrt(var + EPS)
        return aa, bn_p['b'] - mean * aa

    def cbr(y, a, c, cp, bn_p, dil=1):
        yo, s, sq = conv_relu_stats(y, a, c, cp['w'], cp['b'], H=H, W=W, dil=dil)
        an, cn = bn_ac(s, sq, bn_p)
        return yo, an, cn

    # leading BN: stats here, affine deferred into every branch's first conv
    s0, sq0 = channel_stats(x)
    a0, c0 = bn_ac(s0, sq0, params['bn_in'])

    ones_f = jnp.ones((F,), jnp.float32)
    zeros_f = jnp.zeros((F,), jnp.float32)

    pws, pms, psp = params['widescope'], params['midscope'], params['separated']
    pr1, pr2, pr3 = params['resnet1'], params['resnet2'], params['resnet3']

    # ---- one fused kernel for the 8 branch-head convs reading bn_in(x) ----
    heads = conv_group(
        x, a0, c0,
        [pws['c1'], pms['c1'],
         pr1[0]['c2'], pr1[0]['c1'],
         pr2[0]['c2'], pr2[0]['c1'],
         pr3[0]['c2'], pr3[0]['c1']],
        H=H, W=W, KH=3, KW=3, dil=1)
    (y_ws, s_ws, q_ws), (y_ms, s_ms, q_ms), \
        (y_r1, s_r1, q_r1), (y_r1sc, _, _), \
        (y_r2, s_r2, q_r2), (y_r2sc, _, _), \
        (y_r3, s_r3, q_r3), (y_r3sc, _, _) = heads

    # widescope: 3x3 d1 -> 3x3 d2 -> 3x3 d3
    a, c = bn_ac(s_ws, q_ws, pws['bn1'])
    y, a, c = cbr(y_ws, a, c, pws['c2'], pws['bn2'], dil=2)
    y_x1, a_x1, c_x1 = cbr(y, a, c, pws['c3'], pws['bn3'], dil=3)

    # midscope: 3x3 d1 -> 3x3 d2
    a, c = bn_ac(s_ms, q_ms, pms['bn1'])
    y_x2, a_x2, c_x2 = cbr(y_ms, a, c, pms['c2'], pms['bn2'], dil=2)

    # resnet blocks
    def resnet_tail(y_a, s_a, q_a, y_sc, rp):
        a1, c1 = bn_ac(s_a, q_a, rp['bn1'])
        yb, a2, c2 = cbr(y_a, a1, c1, rp['c3'], rp['bn2'], dil=1)
        z, s, sq = sum_affine_stats([yb, y_sc], [a2, ones_f], [c2, zeros_f])
        a3, c3 = bn_ac(s, sq, rp['bn3'])
        return z, a3, c3

    def resnet_block(y_in, a_in, c_in, rp):
        (y_a, s_a, q_a), (y_sc, _, _) = conv_group(
            y_in, a_in, c_in, [rp['c2'], rp['c1']], H=H, W=W, KH=3, KW=3, dil=1)
        return resnet_tail(y_a, s_a, q_a, y_sc, rp)

    y_x3, a_x3, c_x3 = resnet_tail(y_r1, s_r1, q_r1, y_r1sc, pr1[0])

    z, az, cz = resnet_tail(y_r2, s_r2, q_r2, y_r2sc, pr2[0])
    y_x4, a_x4, c_x4 = resnet_block(z, az, cz, pr2[1])

    z, az, cz = resnet_tail(y_r3, s_r3, q_r3, y_r3sc, pr3[0])
    z, az, cz = resnet_block(z, az, cz, pr3[1])
    y_x5, a_x5, c_x5 = resnet_block(z, az, cz, pr3[2])

    # separated: (1,6) then (6,1), 'same' padding
    y, a, c = cbr(x, a0, c0, psp['c1'], psp['bn1'], dil=1)
    y_x6, a_x6, c_x6 = cbr(y, a, c, psp['c2'], psp['bn2'], dil=1)

    # final 6-branch sum (branch-final BNs folded in as affines) + bn_final
    tot, s, sq = sum_affine_stats(
        [y_x1, y_x2, y_x3, y_x4, y_x5, y_x6],
        [a_x1, a_x2, a_x3, a_x4, a_x5, a_x6],
        [c_x1, c_x2, c_x3, c_x4, c_x5, c_x6])
    af, cf = bn_ac(s, sq, params['bn_final'])
    out = channel_affine(tot, af, cf)
    return jnp.transpose(out.reshape(F, N, H, W), (1, 0, 2, 3))


# ----------------------------------------------------------------------------
# Deterministic parameter init (mirrors the module's __init__)
# ----------------------------------------------------------------------------
def _init_conv(key, cin, cout, kh, kw):
    kw_, kb = jax.random.split(key)
    fan_in = cin * kh * kw
    bound = math.sqrt(6.0 / fan_in)                       # kaiming_uniform, relu
    w = jax.random.uniform(kw_, (cout, cin, kh, kw), jnp.float32, -bound, bound)
    bb = 1.0 / math.sqrt(fan_in)                          # default conv bias init
    b = jax.random.uniform(kb, (cout,), jnp.float32, -bb, bb)
    return {'w': w, 'b': b}


def _init_bn(c):
    return {'g': jnp.ones((c,), jnp.float32), 'b': jnp.zeros((c,), jnp.float32)}


def _init_resnet(key, cin, f):
    k1, k2, k3 = jax.random.split(key, 3)
    return {'c1': _init_conv(k1, cin, f, 1, 1),
            'c2': _init_conv(k2, cin, f, 3, 3),
            'c3': _init_conv(k3, f, f, 3, 3),
            'bn1': _init_bn(f), 'bn2': _init_bn(f), 'bn3': _init_bn(f)}


def init_params(key, in_channels, filters):
    ks = jax.random.split(key, 13)
    ws = {'c1': _init_conv(ks[0], in_channels, filters, 3, 3),
          'c2': _init_conv(ks[1], filters, filters, 3, 3),
          'c3': _init_conv(ks[2], filters, filters, 3, 3),
          'bn1': _init_bn(filters), 'bn2': _init_bn(filters),
          'bn3': _init_bn(filters)}
    ms = {'c1': _init_conv(ks[3], in_channels, filters, 3, 3),
          'c2': _init_conv(ks[4], filters, filters, 3, 3),
          'bn1': _init_bn(filters), 'bn2': _init_bn(filters)}
    r1 = [_init_resnet(ks[5], in_channels, filters)]
    r2 = [_init_resnet(ks[6], in_channels, filters),
          _init_resnet(ks[7], filters, filters)]
    r3 = [_init_resnet(ks[8], in_channels, filters),
          _init_resnet(ks[9], filters, filters),
          _init_resnet(ks[10], filters, filters)]
    sep = {'c1': _init_conv(ks[11], in_channels, filters, 1, 6),
           'c2': _init_conv(ks[12], filters, filters, 6, 1),
           'bn1': _init_bn(filters), 'bn2': _init_bn(filters)}
    return {'bn_in': _init_bn(in_channels), 'bn_final': _init_bn(filters),
            'widescope': ws, 'midscope': ms,
            'resnet1': r1, 'resnet2': r2, 'resnet3': r3,
            'separated': sep}


# ----------------------------------------------------------------------------
# Pure-JAX reference (lax.conv) to verify the Pallas path
# ----------------------------------------------------------------------------
def _conv_ref(x, w, b, dil=1):
    KH, KW = w.shape[2], w.shape[3]
    ph, pw = (KH - 1) * dil, (KW - 1) * dil
    pad = ((ph // 2, ph - ph // 2), (pw // 2, pw - pw // 2))
    y = lax.conv_general_dilated(x, w, (1, 1), pad, rhs_dilation=(dil, dil),
                                 dimension_numbers=("NCHW", "OIHW", "NCHW"))
    return y + b[None, :, None, None]


def _bn_ref(y, g, b):
    m = jnp.mean(y, axis=(0, 2, 3), keepdims=True)
    v = jnp.var(y, axis=(0, 2, 3), keepdims=True)         # biased
    return (y - m) * lax.rsqrt(v + EPS) * g[None, :, None, None] \
        + b[None, :, None, None]


def _cbr_ref(x, cp, bn_p, dil=1):
    y = jnp.maximum(_conv_ref(x, cp['w'], cp['b'], dil), 0.0)
    return _bn_ref(y, bn_p['g'], bn_p['b'])


def reference(x, params):
    p = params
    x = _bn_ref(x, p['bn_in']['g'], p['bn_in']['b'])
    w = p['widescope']
    y = _cbr_ref(x, w['c1'], w['bn1'], 1)
    y = _cbr_ref(y, w['c2'], w['bn2'], 2)
    x1 = _cbr_ref(y, w['c3'], w['bn3'], 3)
    m = p['midscope']
    y = _cbr_ref(x, m['c1'], m['bn1'], 1)
    x2 = _cbr_ref(y, m['c2'], m['bn2'], 2)

    def resnet_ref(xin, rp):
        sc = jnp.maximum(_conv_ref(xin, rp['c1']['w'], rp['c1']['b']), 0.0)
        y = _cbr_ref(xin, rp['c2'], rp['bn1'], 1)
        y = _cbr_ref(y, rp['c3'], rp['bn2'], 1)
        return _bn_ref(y + sc, rp['bn3']['g'], rp['bn3']['b'])

    def chain_ref(xin, blocks):
        y = xin
        for rp in blocks:
            y = resnet_ref(y, rp)
        return y

    x3 = chain_ref(x, p['resnet1'])
    x4 = chain_ref(x, p['resnet2'])
    x5 = chain_ref(x, p['resnet3'])
    sp = p['separated']
    y = _cbr_ref(x, sp['c1'], sp['bn1'], 1)
    x6 = _cbr_ref(y, sp['c2'], sp['bn2'], 1)
    tot = x1 + x2 + x3 + x4 + x5 + x6
    return _bn_ref(tot, p['bn_final']['g'], p['bn_final']['b'])


if __name__ == "__main__":
    N, Cin, H, W = 2, 4, 16, 16
    filters = 8

    key = jax.random.PRNGKey(0)
    kx, kp = jax.random.split(key)
    x = jax.random.normal(kx, (N, Cin, H, W), jnp.float32)
    params = init_params(kp, Cin, filters)

    fwd = jax.jit(duckv2_forward)
    out = jax.block_until_ready(fwd(x, params))

    ref = reference(x, params)
    assert out.shape == (N, filters, H, W), out.shape
    err = float(jnp.max(jnp.abs(out - ref)))
    assert jnp.allclose(out, ref, rtol=2e-3, atol=2e-3), err

    print("KERNEL_OK")
</pallas_src>

<mosaic_0001>
module attributes {stable_mosaic.version = 11 : i64} {
  func.func @_stats_kernel(%arg0: memref<4x512xf32, #tpu.memory_space<vmem>>, %arg1: memref<4x1xf32, #tpu.memory_space<vmem>>, %arg2: memref<4x1xf32, #tpu.memory_space<vmem>>) attributes {dimension_semantics = [], scalar_prefetch = 0 : i64, scratch_operands = 0 : i64, tpu.core_type = #tpu.core_type<tc>} {
    %c0 = arith.constant 0 : index
    %c0_0 = arith.constant 0 : index
    %0 = vector.load %arg0[%c0, %c0_0] : memref<4x512xf32, #tpu.memory_space<vmem>>, vector<4x512xf32>
    %cst = arith.constant dense<0.000000e+00> : vector<4xf32>
    %1 = vector.multi_reduction <add>, %0, %cst [1] : vector<4x512xf32> to vector<4xf32>
    %2 = vector.shape_cast %1 : vector<4xf32> to vector<4x1xf32>
    %c0_1 = arith.constant 0 : index
    %c0_2 = arith.constant 0 : index
    %3 = vector.load %arg1[%c0_1, %c0_2] : memref<4x1xf32, #tpu.memory_space<vmem>>, vector<4x1xf32>
    tpu.vector_store %arg1[%c0_1, %c0_2], %2 {strides = array<i32>} : memref<4x1xf32, #tpu.memory_space<vmem>>, vector<4x1xf32>,
    %4 = arith.mulf %0, %0 : vector<4x512xf32>
    %cst_3 = arith.constant dense<0.000000e+00> : vector<4xf32>
    %5 = vector.multi_reduction <add>, %4, %cst_3 [1] : vector<4x512xf32> to vector<4xf32>
    %6 = vector.shape_cast %5 : vector<4xf32> to vector<4x1xf32>
    %c0_4 = arith.constant 0 : index
    %c0_5 = arith.constant 0 : index
    %7 = vector.load %arg2[%c0_4, %c0_5] : memref<4x1xf32, #tpu.memory_space<vmem>>, vector<4x1xf32>
    tpu.vector_store %arg2[%c0_4, %c0_5], %6 {strides = array<i32>} : memref<4x1xf32, #tpu.memory_space<vmem>>, vector<4x1xf32>,
    return
  }
}

module attributes {stable_mosaic.version = 11 : i64} {
  func.func @kernel(%arg0: memref<8x512xf32, #tpu.memory_space<vmem>>, %arg1: memref<8x1xf32, #tpu.memory_space<vmem>>, %arg2: memref<8x1xf32, #tpu.memory_space<vmem>>, %arg3: memref<9x1x512xf32, #tpu.memory_space<vmem>>, %arg4: memref<8x72xf32, #tpu.memory_space<vmem>>, %arg5: memref<8x1xf32, #tpu.memory_space<vmem>>, %arg6: memref<8x512xf32, #tpu.memory_space<vmem>>, %arg7: memref<8x1xf32, #tpu.memory_space<vmem>>, %arg8: memref<8x1xf32, #tpu.memory_space<vmem>>) attributes {dimension_semantics = [], scalar_prefetch = 0 : i64, scratch_operands = 0 : i64, tpu.core_type = #tpu.core_type<tc>} {
    %c0 = arith.constant 0 : index
    %c0_0 = arith.constant 0 : index
    %0 = vector.load %arg0[%c0, %c0_0] : memref<8x512xf32, #tpu.memory_space<vmem>>, vector<8x512xf32>
    %c0_1 = arith.constant 0 : index
    %c0_2 = arith.constant 0 : index
    %1 = vector.load %arg1[%c0_1, %c0_2] : memref<8x1xf32, #tpu.memory_space<vmem>>, vector<8x1xf32>
    %2 = vector.broadcast %1 : vector<8x1xf32> to vector<8x512xf32>
    %3 = arith.mulf %0, %2 : vector<8x512xf32>
    %c0_3 = arith.constant 0 : index
    %c0_4 = arith.constant 0 : index
    %4 = vector.load %arg2[%c0_3, %c0_4] : memref<8x1xf32, #tpu.memory_space<vmem>>, vector<8x1xf32>
    %5 = vector.broadcast %4 : vector<8x1xf32> to vector<8x512xf32>
    %6 = arith.addf %3, %5 : vector<8x512xf32>
    %c34_i32 = arith.constant 34 : i32
    %7 = tpu.dynamic_rotate %6 by %c34_i32 dim 1 : vector<8x512xf32>, i32 -> vector<8x512xf32>
    %c0_5 = arith.constant 0 : index
    %c0_6 = arith.constant 0 : index
    %c0_7 = arith.constant 0 : index
    %8 = vector.load %arg3[%c0_5, %c0_6, %c0_7] : memref<9x1x512xf32, #tpu.memory_space<vmem>>, vector<1x1x512xf32>
    %9 = vector.shape_cast %8 : vector<1x1x512xf32> to vector<1x512xf32>
    %10 = vector.broadcast %9 : vector<1x512xf32> to vector<8x512xf32>
    %11 = arith.mulf %7, %10 : vector<8x512xf32>
    %c32_i32 = arith.constant 32 : i32
    %12 = tpu.dynamic_rotate %6 by %c32_i32 dim 1 : vector<8x512xf32>, i32 -> vector<8x512xf32>
    %c1 = arith.constant 1 : index
    %c0_8 = arith.constant 0 : index
    %c0_9 = arith.constant 0 : index
    %13 = vector.load %arg3[%c1, %c0_8, %c0_9] : memref<9x1x512xf32, #tpu.memory_space<vmem>>, vector<1x1x512xf32>
    %14 = vector.shape_cast %13 : vector<1x1x512xf32> to vector<1x512xf32>
    %15 = vector.broadcast %14 : vector<1x512xf32> to vector<8x512xf32>
    %16 = arith.mulf %12, %15 : vector<8x512xf32>
    %c30_i32 = arith.constant 30 : i32
    %17 = tpu.dynamic_rotate %6 by %c30_i32 dim 1 : vector<8x512xf32>, i32 -> vector<8x512xf32>
    %c2 = arith.constant 2 : index
    %c0_10 = arith.constant 0 : index
    %c0_11 = arith.constant 0 : index
    %18 = vector.load %arg3[%c2, %c0_10, %c0_11] : memref<9x1x512xf32, #tpu.memory_space<vmem>>, vector<1x1x512xf32>
    %19 = vector.shape_cast %18 : vector<1x1x512xf32> to vector<1x512xf32>
    %20 = vector.broadcast %19 : vector<1x512xf32> to vector<8x512xf32>
    %21 = arith.mulf %17, %20 : vector<8x512xf32>
    %c2_i32 = arith.constant 2 : i32
    %22 = tpu.dynamic_rotate %6 by %c2_i32 dim 1 : vector<8x512xf32>, i32 -> vector<8x512xf32>
    %c3 = arith.constant 3 : index
    %c0_12 = arith.constant 0 : index
    %c0_13 = arith.constant 0 : index
    %23 = vector.load %arg3[%c3, %c0_12, %c0_13] : memref<9x1x512xf32, #tpu.memory_space<vmem>>, vector<1x1x512xf32>
    %24 = vector.shape_cast %23 : vector<1x1x512xf32> to vector<1x512xf32>
    %25 = vector.broadcast %24 : vector<1x512xf32> to vector<8x512xf32>
    %26 = arith.mulf %22, %25 : vector<8x512xf32>
    %c510_i32 = arith.constant 510 : i32
    %27 = tpu.dynamic_rotate %6 by %c510_i32 dim 1 : vector<8x512xf32>, i32 -> vector<8x512xf32>
    %c5 = arith.constant 5 : index
    %c0_14 = arith.constant 0 : index
    %c0_15 = arith.constant 0 : index
    %28 = vector.load %arg3[%c5, %c0_14, %c0_15] : memref<9x1x512xf32, #tpu.memory_space<vmem>>, vector<1x1x512xf32>
    %29 = vector.shape_cast %28 : vector<1x1x512xf32> to vector<1x512xf32>
    %30 = vector.broadcast %29 : vector<1x512xf32> to vector<8x512xf32>
    %31 = arith.mulf %27, %30 : vector<8x512xf32>
    %c482_i32 = arith.constant 482 : i32
    %32 = tpu.dynamic_rotate %6 by %c482_i32 dim 1 : vector<8x512xf32>, i32 -> vector<8x512xf32>
    %c6 = arith.constant 6 : index
    %c0_16 = arith.constant 0 : index
    %c0_17 = arith.constant 0 : index
    %33 = vector.load %arg3[%c6, %c0_16, %c0_17] : memref<9x1x512xf32, #tpu.memory_space<vmem>>, vector<1x1x512xf32>
    %34 = vector.shape_cast %33 : vector<1x1x512xf32> to vector<1x512xf32>
    %35 = vector.broadcast %34 : vector<1x512xf32> to vector<8x512xf32>
    %36 = arith.mulf %32, %35 : vector<8x512xf32>
    %c480_i32 = arith.constant 480 : i32
    %37 = tpu.dynamic_rotate %6 by %c480_i32 dim 1 : vector<8x512xf32>, i32 -> vector<8x512xf32>
    %c7 = arith.constant 7 : index
    %c0_18 = arith.constant 0 : index
    %c0_19 = arith.constant 0 : index
    %38 = vector.load %arg3[%c7, %c0_18, %c0_19] : memref<9x1x512xf32, #tpu.memory_space<vmem>>, vector<1x1x512xf32>
    %39 = vector.shape_cast %38 : vector<1x1x512xf32> to vector<1x512xf32>
    %40 = vector.broadcast %39 : vector<1x512xf32> to vector<8x512xf32>
    %41 = arith.mulf %37, %40 : vector<8x512xf32>
    %c478_i32 = arith.constant 478 : i32
    %42 = tpu.dynamic_rotate %6 by %c478_i32 dim 1 : vector<8x512xf32>, i32 -> vector<8x512xf32>
    %c8 = arith.constant 8 : index
    %c0_20 = arith.constant 0 : index
    %c0_21 = arith.constant 0 : index
    %43 = vector.load %arg3[%c8, %c0_20, %c0_21] : memref<9x1x512xf32, #tpu.memory_space<vmem>>, vector<1x1x512xf32>
    %44 = vector.shape_cast %43 : vector<1x1x512xf32> to vector<1x512xf32>
    %45 = vector.broadcast %44 : vector<1x512xf32> to vector<8x512xf32>
    %46 = arith.mulf %42, %45 : vector<8x512xf32>
    %47 = tpu.concatenate %11, %16, %21, %26, %6, %31, %36, %41, %46 in 0 : vector<8x512xf32>, vector<8x512xf32>, vector<8x512xf32>, vector<8x512xf32>, vector<8x512xf32>, vector<8x512xf32>, vector<8x512xf32>, vector<8x512xf32>, vector<8x512xf32> -> vector<72x512xf32>
    %c0_22 = arith.constant 0 : index
    %c0_23 = arith.constant 0 : index
    %48 = vector.load %arg4[%c0_22, %c0_23] : memref<8x72xf32, #tpu.memory_space<vmem>>, vector<8x72xf32>
    %cst = arith.constant dense<0.000000e+00> : vector<8x512xf32>
    %49 = tpu.matmul %48, %47, %cst {dimension_numbers = #tpu.dot_dimension_numbers<[1], [0], [0], [1], [0, 0, 1, 1], [], []>} : vector<8x72xf32>, vector<72x512xf32>, vector<8x512xf32> -> vector<8x512xf32>
    %c0_24 = arith.constant 0 : index
    %c0_25 = arith.constant 0 : index
    %50 = vector.load %arg5[%c0_24, %c0_25] : memref<8x1xf32, #tpu.memory_space<vmem>>, vector<8x1xf32>
    %51 = vector.broadcast %50 : vector<8x1xf32> to vector<8x512xf32>
    %52 = arith.addf %49, %51 : vector<8x512xf32>
    %cst_26 = arith.constant 0.000000e+00 : f32
    %53 = vector.broadcast %cst_26 : f32 to vector<8x512xf32>
    %54 = arith.maximumf %52, %53 : vector<8x512xf32>
    %c0_27 = arith.constant 0 : index
    %c0_28 = arith.constant 0 : index
    %55 = vector.load %arg6[%c0_27, %c0_28] : memref<8x512xf32, #tpu.memory_space<vmem>>, vector<8x512xf32>
    tpu.vector_store %arg6[%c0_27, %c0_28], %54 {strides = array<i32>} : memref<8x512xf32, #tpu.memory_space<vmem>>, vector<8x512xf32>,
    %cst_29 = arith.constant dense<0.000000e+00> : vector<8xf32>
    %56 = vector.multi_reduction <add>, %54, %cst_29 [1] : vector<8x512xf32> to vector<8xf32>
    %57 = vector.shape_cast %56 : vector<8xf32> to vector<8x1xf32>
    %c0_30 = arith.constant 0 : index
    %c0_31 = arith.constant 0 : index
    %58 = vector.load %arg7[%c0_30, %c0_31] : memref<8x1xf32, #tpu.memory_space<vmem>>, vector<8x1xf32>
    tpu.vector_store %arg7[%c0_30, %c0_31], %57 {strides = array<i32>} : memref<8x1xf32, #tpu.memory_space<vmem>>, vector<8x1xf32>,
    %59 = arith.mulf %54, %54 : vector<8x512xf32>
    %cst_32 = arith.constant dense<0.000000e+00> : vector<8xf32>
    %60 = vector.multi_reduction <add>, %59, %cst_32 [1] : vector<8x512xf32> to vector<8xf32>
    %61 = vector.shape_cast %60 : vector<8xf32> to vector<8x1xf32>
    %c0_33 = arith.constant 0 : index
    %c0_34 = arith.constant 0 : index
    %62 = vector.load %arg8[%c0_33, %c0_34] : memref<8x1xf32, #tpu.memory_space<vmem>>, vector<8x1xf32>
    tpu.vector_store %arg8[%c0_33, %c0_34], %61 {strides = array<i32>} : memref<8x1xf32, #tpu.memory_space<vmem>>, vector<8x1xf32>,
    return
  }
}

module attributes {stable_mosaic.version = 11 : i64} {
  func.func @kernel(%arg0: memref<8x512xf32, #tpu.memory_space<vmem>>, %arg1: memref<8x1xf32, #tpu.memory_space<vmem>>, %arg2: memref<8x1xf32, #tpu.memory_space<vmem>>, %arg3: memref<9x1x512xf32, #tpu.memory_space<vmem>>, %arg4: memref<64x72xf32, #tpu.memory_space<vmem>>, %arg5: memref<64x1xf32, #tpu.memory_space<vmem>>, %arg6: memref<64x512xf32, #tpu.memory_space<vmem>>, %arg7: memref<64x1xf32, #tpu.memory_space<vmem>>, %arg8: memref<64x1xf32, #tpu.memory_space<vmem>>) attributes {dimension_semantics = [], scalar_prefetch = 0 : i64, scratch_operands = 0 : i64, tpu.core_type = #tpu.core_type<tc>} {
    %c0 = arith.constant 0 : index
    %c0_0 = arith.constant 0 : index
    %0 = vector.load %arg0[%c0, %c0_0] : memref<8x512xf32, #tpu.memory_space<vmem>>, vector<8x512xf32>
    %c0_1 = arith.constant 0 : index
    %c0_2 = arith.constant 0 : index
    %1 = vector.load %arg1[%c0_1, %c0_2] : memref<8x1xf32, #tpu.memory_space<vmem>>, vector<8x1xf32>
    %2 = vector.broadcast %1 : vector<8x1xf32> to vector<8x512xf32>
    %3 = arith.mulf %0, %2 : vector<8x512xf32>
    %c0_3 = arith.constant 0 : index
    %c0_4 = arith.constant 0 : index
    %4 = vector.load %arg2[%c0_3, %c0_4] : memref<8x1xf32, #tpu.memory_space<vmem>>, vector<8x1xf32>
    %5 = vector.broadcast %4 : vector<8x1xf32> to vector<8x512xf32>
    %6 = arith.addf %3, %5 : vector<8x512xf32>
    %c17_i32 = arith.constant 17 : i32
    %7 = tpu.dynamic_rotate %6 by %c17_i32 dim 1 : vector<8x512xf32>, i32 -> vector<8x512xf32>
    %c0_5 = arith.constant 0 : index
    %c0_6 = arith.constant 0 : index
    %c0_7 = arith.constant 0 : index
    %8 = vector.load %arg3[%c0_5, %c0_6, %c0_7] : memref<9x1x512xf32, #tpu.memory_space<vmem>>, vector<1x1x512xf32>
    %9 = vector.shape_cast %8 : vector<1x1x512xf32> to vector<1x512xf32>
    %10 = vector.broadcast %9 : vector<1x512xf32> to vector<8x512xf32>
    %11 = arith.mulf %7, %10 : vector<8x512xf32>
    %c16_i32 = arith.constant 16 : i32
    %12 = tpu.dynamic_rotate %6 by %c16_i32 dim 1 : vector<8x512xf32>, i32 -> vector<8x512xf32>
    %c1 = arith.constant 1 : index
    %c0_8 = arith.constant 0 : index
    %c0_9 = arith.constant 0 : index
    %13 = vector.load %arg3[%c1, %c0_8, %c0_9] : memref<9x1x512xf32, #tpu.memory_space<vmem>>, vector<1x1x512xf32>
    %14 = vector.shape_cast %13 : vector<1x1x512xf32> to vector<1x512xf32>
    %15 = vector.broadcast %14 : vector<1x512xf32> to vector<8x512xf32>
    %16 = arith.mulf %12, %15 : vector<8x512xf32>
    %c15_i32 = arith.constant 15 : i32
    %17 = tpu.dynamic_rotate %6 by %c15_i32 dim 1 : vector<8x512xf32>, i32 -> vector<8x512xf32>
    %c2 = arith.constant 2 : index
    %c0_10 = arith.constant 0 : index
    %c0_11 = arith.constant 0 : index
    %18 = vector.load %arg3[%c2, %c0_10, %c0_11] : memref<9x1x512xf32, #tpu.memory_space<vmem>>, vector<1x1x512xf32>
    %19 = vector.shape_cast %18 : vector<1x1x512xf32> to vector<1x512xf32>
    %20 = vector.broadcast %19 : vector<1x512xf32> to vector<8x512xf32>
    %21 = arith.mulf %17, %20 : vector<8x512xf32>
    %c1_i32 = arith.constant 1 : i32
    %22 = tpu.dynamic_rotate %6 by %c1_i32 dim 1 : vector<8x512xf32>, i32 -> vector<8x512xf32>
    %c3 = arith.constant 3 : index
    %c0_12 = arith.constant 0 : index
    %c0_13 = arith.constant 0 : index
    %23 = vector.load %arg3[%c3, %c0_12, %c0_13] : memref<9x1x512xf32, #tpu.memory_space<vmem>>, vector<1x1x512xf32>
    %24 = vector.shape_cast %23 : vector<1x1x512xf32> to vector<1x512xf32>
    %25 = vector.broadcast %24 : vector<1x512xf32> to vector<8x512xf32>
    %26 = arith.mulf %22, %25 : vector<8x512xf32>
    %c511_i32 = arith.constant 511 : i32
    %27 = tpu.dynamic_rotate %6 by %c511_i32 dim 1 : vector<8x512xf32>, i32 -> vector<8x512xf32>
    %c5 = arith.constant 5 : index
    %c0_14 = arith.constant 0 : index
    %c0_15 = arith.constant 0 : index
    %28 = vector.load %arg3[%c5, %c0_14, %c0_15] : memref<9x1x512xf32, #tpu.memory_space<vmem>>, vector<1x1x512xf32>
    %29 = vector.shape_cast %28 : vector<1x1x512xf32> to vector<1x512xf32>
    %30 = vector.broadcast %29 : vector<1x512xf32> to vector<8x512xf32>
    %31 = arith.mulf %27, %30 : vector<8x512xf32>
    %c497_i32 = arith.constant 497 : i32
    %32 = tpu.dynamic_rotate %6 by %c497_i32 dim 1 : vector<8x512xf32>, i32 -> vector<8x512xf32>
    %c6 = arith.constant 6 : index
    %c0_16 = arith.constant 0 : index
    %c0_17 = arith.constant 0 : index
    %33 = vector.load %arg3[%c6, %c0_16, %c0_17] : memref<9x1x512xf32, #tpu.memory_space<vmem>>, vector<1x1x512xf32>
    %34 = vector.shape_cast %33 : vector<1x1x512xf32> to vector<1x512xf32>
    %35 = vector.broadcast %34 : vector<1x512xf32> to vector<8x512xf32>
    %36 = arith.mulf %32, %35 : vector<8x512xf32>
    %c496_i32 = arith.constant 496 : i32
    %37 = tpu.dynamic_rotate %6 by %c496_i32 dim 1 : vector<8x512xf32>, i32 -> vector<8x512xf32>
    %c7 = arith.constant 7 : index
    %c0_18 = arith.constant 0 : index
    %c0_19 = arith.constant 0 : index
    %38 = vector.load %arg3[%c7, %c0_18, %c0_19] : memref<9x1x512xf32, #tpu.memory_space<vmem>>, vector<1x1x512xf32>
    %39 = vector.shape_cast %38 : vector<1x1x512xf32> to vector<1x512xf32>
    %40 = vector.broadcast %39 : vector<1x512xf32> to vector<8x512xf32>
    %41 = arith.mulf %37, %40 : vector<8x512xf32>
    %c495_i32 = arith.constant 495 : i32
    %42 = tpu.dynamic_rotate %6 by %c495_i32 dim 1 : vector<8x512xf32>, i32 -> vector<8x512xf32>
    %c8 = arith.constant 8 : index
    %c0_20 = arith.constant 0 : index
    %c0_21 = arith.constant 0 : index
    %43 = vector.load %arg3[%c8, %c0_20, %c0_21] : memref<9x1x512xf32, #tpu.memory_space<vmem>>, vector<1x1x512xf32>
    %44 = vector.shape_cast %43 : vector<1x1x512xf32> to vector<1x512xf32>
    %45 = vector.broadcast %44 : vector<1x512xf32> to vector<8x512xf32>
    %46 = arith.mulf %42, %45 : vector<8x512xf32>
    %47 = tpu.concatenate %11, %16, %21, %26, %6, %31, %36, %41, %46 in 0 : vector<8x512xf32>, vector<8x512xf32>, vector<8x512xf32>, vector<8x512xf32>, vector<8x512xf32>, vector<8x512xf32>, vector<8x512xf32>, vector<8x512xf32>, vector<8x512xf32> -> vector<72x512xf32>
    %c0_22 = arith.constant 0 : index
    %c0_23 = arith.constant 0 : index
    %48 = vector.load %arg4[%c0_22, %c0_23] : memref<64x72xf32, #tpu.memory_space<vmem>>, vector<64x72xf32>
    %cst = arith.constant dense<0.000000e+00> : vector<64x512xf32>
    %49 = tpu.matmul %48, %47, %cst {dimension_numbers = #tpu.dot_dimension_numbers<[1], [0], [0], [1], [0, 0, 1, 1], [], []>} : vector<64x72xf32>, vector<72x512xf32>, vector<64x512xf32> -> vector<64x512xf32>
    %c0_24 = arith.constant 0 : index
    %c0_25 = arith.constant 0 : index
    %50 = vector.load %arg5[%c0_24, %c0_25] : memref<64x1xf32, #tpu.memory_space<vmem>>, vector<64x1xf32>
    %51 = vector.broadcast %50 : vector<64x1xf32> to vector<64x512xf32>
    %52 = arith.addf %49, %51 : vector<64x512xf32>
    %cst_26 = arith.constant 0.000000e+00 : f32
    %53 = vector.broadcast %cst_26 : f32 to vector<64x512xf32>
    %54 = arith.maximumf %52, %53 : vector<64x512xf32>
    %c0_27 = arith.constant 0 : index
    %c0_28 = arith.constant 0 : index
    %55 = vector.load %arg6[%c0_27, %c0_28] : memref<64x512xf32, #tpu.memory_space<vmem>>, vector<64x512xf32>
    tpu.vector_store %arg6[%c0_27, %c0_28], %54 {strides = array<i32>} : memref<64x512xf32, #tpu.memory_space<vmem>>, vector<64x512xf32>,
    %cst_29 = arith.constant dense<0.000000e+00> : vector<64xf32>
    %56 = vector.multi_reduction <add>, %54, %cst_29 [1] : vector<64x512xf32> to vector<64xf32>
    %57 = vector.shape_cast %56 : vector<64xf32> to vector<64x1xf32>
    %c0_30 = arith.constant 0 : index
    %c0_31 = arith.constant 0 : index
    %58 = vector.load %arg7[%c0_30, %c0_31] : memref<64x1xf32, #tpu.memory_space<vmem>>, vector<64x1xf32>
    tpu.vector_store %arg7[%c0_30, %c0_31], %57 {strides = array<i32>} : memref<64x1xf32, #tpu.memory_space<vmem>>, vector<64x1xf32>,
    %59 = arith.mulf %54, %54 : vector<64x512xf32>
    %cst_32 = arith.constant dense<0.000000e+00> : vector<64xf32>
    %60 = vector.multi_reduction <add>, %59, %cst_32 [1] : vector<64x512xf32> to vector<64xf32>
    %61 = vector.shape_cast %60 : vector<64xf32> to vector<64x1xf32>
    %c0_33 = arith.constant 0 : index
    %c0_34 = arith.constant 0 : index
    %62 = vector.load %arg8[%c0_33, %c0_34] : memref<64x1xf32, #tpu.memory_space<vmem>>, vector<64x1xf32>
    tpu.vector_store %arg8[%c0_33, %c0_34], %61 {strides = array<i32>} : memref<64x1xf32, #tpu.memory_space<vmem>>, vector<64x1xf32>,
    return
  }
}

module attributes {stable_mosaic.version = 11 : i64} {
  func.func @kernel(%arg0: memref<8x512xf32, #tpu.memory_space<vmem>>, %arg1: memref<8x512xf32, #tpu.memory_space<vmem>>, %arg2: memref<2x8x1xf32, #tpu.memory_space<vmem>>, %arg3: memref<2x8x1xf32, #tpu.memory_space<vmem>>, %arg4: memref<8x512xf32, #tpu.memory_space<vmem>>, %arg5: memref<8x1xf32, #tpu.memory_space<vmem>>, %arg6: memref<8x1xf32, #tpu.memory_space<vmem>>) attributes {dimension_semantics = [], scalar_prefetch = 0 : i64, scratch_operands = 0 : i64, tpu.core_type = #tpu.core_type<tc>} {
    %c0 = arith.constant 0 : index
    %c0_0 = arith.constant 0 : index
    %0 = vector.load %arg0[%c0, %c0_0] : memref<8x512xf32, #tpu.memory_space<vmem>>, vector<8x512xf32>
    %c0_1 = arith.constant 0 : index
    %c0_2 = arith.constant 0 : index
    %c0_3 = arith.constant 0 : index
    %1 = vector.load %arg2[%c0_1, %c0_2, %c0_3] : memref<2x8x1xf32, #tpu.memory_space<vmem>>, vector<1x8x1xf32>
    %2 = vector.shape_cast %1 : vector<1x8x1xf32> to vector<8x1xf32>
    %3 = vector.broadcast %2 : vector<8x1xf32> to vector<8x512xf32>
    %4 = arith.mulf %0, %3 : vector<8x512xf32>
    %c0_4 = arith.constant 0 : index
    %c0_5 = arith.constant 0 : index
    %c0_6 = arith.constant 0 : index
    %5 = vector.load %arg3[%c0_4, %c0_5, %c0_6] : memref<2x8x1xf32, #tpu.memory_space<vmem>>, vector<1x8x1xf32>
    %6 = vector.shape_cast %5 : vector<1x8x1xf32> to vector<8x1xf32>
    %7 = vector.broadcast %6 : vector<8x1xf32> to vector<8x512xf32>
    %8 = arith.addf %4, %7 : vector<8x512xf32>
    %c0_7 = arith.constant 0 : index
    %c0_8 = arith.constant 0 : index
    %9 = vector.load %arg1[%c0_7, %c0_8] : memref<8x512xf32, #tpu.memory_space<vmem>>, vector<8x512xf32>
    %c1 = arith.constant 1 : index
    %c0_9 = arith.constant 0 : index
    %c0_10 = arith.constant 0 : index
    %10 = vector.load %arg2[%c1, %c0_9, %c0_10] : memref<2x8x1xf32, #tpu.memory_space<vmem>>, vector<1x8x1xf32>
    %11 = vector.shape_cast %10 : vector<1x8x1xf32> to vector<8x1xf32>
    %12 = vector.broadcast %11 : vector<8x1xf32> to vector<8x512xf32>
    %13 = arith.mulf %9, %12 : vector<8x512xf32>
    %14 = arith.addf %8, %13 : vector<8x512xf32>
    %c1_11 = arith.constant 1 : index
    %c0_12 = arith.constant 0 : index
    %c0_13 = arith.constant 0 : index
    %15 = vector.load %arg3[%c1_11, %c0_12, %c0_13] : memref<2x8x1xf32, #tpu.memory_space<vmem>>, vector<1x8x1xf32>
    %16 = vector.shape_cast %15 : vector<1x8x1xf32> to vector<8x1xf32>
    %17 = vector.broadcast %16 : vector<8x1xf32> to vector<8x512xf32>
    %18 = arith.addf %14, %17 : vector<8x512xf32>
    %c0_14 = arith.constant 0 : index
    %c0_15 = arith.constant 0 : index
    %19 = vector.load %arg4[%c0_14, %c0_15] : memref<8x512xf32, #tpu.memory_space<vmem>>, vector<8x512xf32>
    tpu.vector_store %arg4[%c0_14, %c0_15], %18 {strides = array<i32>} : memref<8x512xf32, #tpu.memory_space<vmem>>, vector<8x512xf32>,
    %cst = arith.constant dense<0.000000e+00> : vector<8xf32>
    %20 = vector.multi_reduction <add>, %18, %cst [1] : vector<8x512xf32> to vector<8xf32>
    %21 = vector.shape_cast %20 : vector<8xf32> to vector<8x1xf32>
    %c0_16 = arith.constant 0 : index
    %c0_17 = arith.constant 0 : index
    %22 = vector.load %arg5[%c0_16, %c0_17] : memref<8x1xf32, #tpu.memory_space<vmem>>, vector<8x1xf32>
    tpu.vector_store %arg5[%c0_16, %c0_17], %21 {strides = array<i32>} : memref<8x1xf32, #tpu.memory_space<vmem>>, vector<8x1xf32>,
    %23 = arith.mulf %18, %18 : vector<8x512xf32>
    %cst_18 = arith.constant dense<0.000000e+00> : vector<8xf32>
    %24 = vector.multi_reduction <add>, %23, %cst_18 [1] : vector<8x512xf32> to vector<8xf32>
    %25 = vector.shape_cast %24 : vector<8xf32> to vector<8x1xf32>
    %c0_19 = arith.constant 0 : index
    %c0_20 = arith.constant 0 : index
    %26 = vector.load %arg6[%c0_19, %c0_20] : memref<8x1xf32, #tpu.memory_space<vmem>>, vector<8x1xf32>
    tpu.vector_store %arg6[%c0_19, %c0_20], %25 {strides = array<i32>} : memref<8x1xf32, #tpu.memory_space<vmem>>, vector<8x1xf32>,
    return
  }
}

module attributes {stable_mosaic.version = 11 : i64} {
  func.func @kernel(%arg0: memref<8x512xf32, #tpu.memory_space<vmem>>, %arg1: memref<8x1xf32, #tpu.memory_space<vmem>>, %arg2: memref<8x1xf32, #tpu.memory_space<vmem>>, %arg3: memref<9x1x512xf32, #tpu.memory_space<vmem>>, %arg4: memref<8x72xf32, #tpu.memory_space<vmem>>, %arg5: memref<8x1xf32, #tpu.memory_space<vmem>>, %arg6: memref<8x512xf32, #tpu.memory_space<vmem>>, %arg7: memref<8x1xf32, #tpu.memory_space<vmem>>, %arg8: memref<8x1xf32, #tpu.memory_space<vmem>>) attributes {dimension_semantics = [], scalar_prefetch = 0 : i64, scratch_operands = 0 : i64, tpu.core_type = #tpu.core_type<tc>} {
    %c0 = arith.constant 0 : index
    %c0_0 = arith.constant 0 : index
    %0 = vector.load %arg0[%c0, %c0_0] : memref<8x512xf32, #tpu.memory_space<vmem>>, vector<8x512xf32>
    %c0_1 = arith.constant 0 : index
    %c0_2 = arith.constant 0 : index
    %1 = vector.load %arg1[%c0_1, %c0_2] : memref<8x1xf32, #tpu.memory_space<vmem>>, vector<8x1xf32>
    %2 = vector.broadcast %1 : vector<8x1xf32> to vector<8x512xf32>
    %3 = arith.mulf %0, %2 : vector<8x512xf32>
    %c0_3 = arith.constant 0 : index
    %c0_4 = arith.constant 0 : index
    %4 = vector.load %arg2[%c0_3, %c0_4] : memref<8x1xf32, #tpu.memory_space<vmem>>, vector<8x1xf32>
    %5 = vector.broadcast %4 : vector<8x1xf32> to vector<8x512xf32>
    %6 = arith.addf %3, %5 : vector<8x512xf32>
    %c51_i32 = arith.constant 51 : i32
    %7 = tpu.dynamic_rotate %6 by %c51_i32 dim 1 : vector<8x512xf32>, i32 -> vector<8x512xf32>
    %c0_5 = arith.constant 0 : index
    %c0_6 = arith.constant 0 : index
    %c0_7 = arith.constant 0 : index
    %8 = vector.load %arg3[%c0_5, %c0_6, %c0_7] : memref<9x1x512xf32, #tpu.memory_space<vmem>>, vector<1x1x512xf32>
    %9 = vector.shape_cast %8 : vector<1x1x512xf32> to vector<1x512xf32>
    %10 = vector.broadcast %9 : vector<1x512xf32> to vector<8x512xf32>
    %11 = arith.mulf %7, %10 : vector<8x512xf32>
    %c48_i32 = arith.constant 48 : i32
    %12 = tpu.dynamic_rotate %6 by %c48_i32 dim 1 : vector<8x512xf32>, i32 -> vector<8x512xf32>
    %c1 = arith.constant 1 : index
    %c0_8 = arith.constant 0 : index
    %c0_9 = arith.constant 0 : index
    %13 = vector.load %arg3[%c1, %c0_8, %c0_9] : memref<9x1x512xf32, #tpu.memory_space<vmem>>, vector<1x1x512xf32>
    %14 = vector.shape_cast %13 : vector<1x1x512xf32> to vector<1x512xf32>
    %15 = vector.broadcast %14 : vector<1x512xf32> to vector<8x512xf32>
    %16 = arith.mulf %12, %15 : vector<8x512xf32>
    %c45_i32 = arith.constant 45 : i32
    %17 = tpu.dynamic_rotate %6 by %c45_i32 dim 1 : vector<8x512xf32>, i32 -> vector<8x512xf32>
    %c2 = arith.constant 2 : index
    %c0_10 = arith.constant 0 : index
    %c0_11 = arith.constant 0 : index
    %18 = vector.load %arg3[%c2, %c0_10, %c0_11] : memref<9x1x512xf32, #tpu.memory_space<vmem>>, vector<1x1x512xf32>
    %19 = vector.shape_cast %18 : vector<1x1x512xf32> to vector<1x512xf32>
    %20 = vector.broadcast %19 : vector<1x512xf32> to vector<8x512xf32>
    %21 = arith.mulf %17, %20 : vector<8x512xf32>
    %c3_i32 = arith.constant 3 : i32
    %22 = tpu.dynamic_rotate %6 by %c3_i32 dim 1 : vector<8x512xf32>, i32 -> vector<8x512xf32>
    %c3 = arith.constant 3 : index
    %c0_12 = arith.constant 0 : index
    %c0_13 = arith.constant 0 : index
    %23 = vector.load %arg3[%c3, %c0_12, %c0_13] : memref<9x1x512xf32, #tpu.memory_space<vmem>>, vector<1x1x512xf32>
    %24 = vector.shape_cast %23 : vector<1x1x512xf32> to vector<1x512xf32>
    %25 = vector.broadcast %24 : vector<1x512xf32> to vector<8x512xf32>
    %26 = arith.mulf %22, %25 : vector<8x512xf32>
    %c509_i32 = arith.constant 509 : i32
    %27 = tpu.dynamic_rotate %6 by %c509_i32 dim 1 : vector<8x512xf32>, i32 -> vector<8x512xf32>
    %c5 = arith.constant 5 : index
    %c0_14 = arith.constant 0 : index
    %c0_15 = arith.constant 0 : index
    %28 = vector.load %arg3[%c5, %c0_14, %c0_15] : memref<9x1x512xf32, #tpu.memory_space<vmem>>, vector<1x1x512xf32>
    %29 = vector.shape_cast %28 : vector<1x1x512xf32> to vector<1x512xf32>
    %30 = vector.broadcast %29 : vector<1x512xf32> to vector<8x512xf32>
    %31 = arith.mulf %27, %30 : vector<8x512xf32>
    %c467_i32 = arith.constant 467 : i32
    %32 = tpu.dynamic_rotate %6 by %c467_i32 dim 1 : vector<8x512xf32>, i32 -> vector<8x512xf32>
    %c6 = arith.constant 6 : index
    %c0_16 = arith.constant 0 : index
    %c0_17 = arith.constant 0 : index
    %33 = vector.load %arg3[%c6, %c0_16, %c0_17] : memref<9x1x512xf32, #tpu.memory_space<vmem>>, vector<1x1x512xf32>
    %34 = vector.shape_cast %33 : vector<1x1x512xf32> to vector<1x512xf32>
    %35 = vector.broadcast %34 : vector<1x512xf32> to vector<8x512xf32>
    %36 = arith.mulf %32, %35 : vector<8x512xf32>
    %c464_i32 = arith.constant 464 : i32
    %37 = tpu.dynamic_rotate %6 by %c464_i32 dim 1 : vector<8x512xf32>, i32 -> vector<8x512xf32>
    %c7 = arith.constant 7 : index
    %c0_18 = arith.constant 0 : index
    %c0_19 = arith.constant 0 : index
    %38 = vector.load %arg3[%c7, %c0_18, %c0_19] : memref<9x1x512xf32, #tpu.memory_space<vmem>>, vector<1x1x512xf32>
    %39 = vector.shape_cast %38 : vector<1x1x512xf32> to vector<1x512xf32>
    %40 = vector.broadcast %39 : vector<1x512xf32> to vector<8x512xf32>
    %41 = arith.mulf %37, %40 : vector<8x512xf32>
    %c461_i32 = arith.constant 461 : i32
    %42 = tpu.dynamic_rotate %6 by %c461_i32 dim 1 : vector<8x512xf32>, i32 -> vector<8x512xf32>
    %c8 = arith.constant 8 : index
    %c0_20 = arith.constant 0 : index
    %c0_21 = arith.constant 0 : index
    %43 = vector.load %arg3[%c8, %c0_20, %c0_21] : memref<9x1x512xf32, #tpu.memory_space<vmem>>, vector<1x1x512xf32>
    %44 = vector.shape_cast %43 : vector<1x1x512xf32> to vector<1x512xf32>
    %45 = vector.broadcast %44 : vector<1x512xf32> to vector<8x512xf32>
    %46 = arith.mulf %42, %45 : vector<8x512xf32>
    %47 = tpu.concatenate %11, %16, %21, %26, %6, %31, %36, %41, %46 in 0 : vector<8x512xf32>, vector<8x512xf32>, vector<8x512xf32>, vector<8x512xf32>, vector<8x512xf32>, vector<8x512xf32>, vector<8x512xf32>, vector<8x512xf32>, vector<8x512xf32> -> vector<72x512xf32>
    %c0_22 = arith.constant 0 : index
    %c0_23 = arith.constant 0 : index
    %48 = vector.load %arg4[%c0_22, %c0_23] : memref<8x72xf32, #tpu.memory_space<vmem>>, vector<8x72xf32>
    %cst = arith.constant dense<0.000000e+00> : vector<8x512xf32>
    %49 = tpu.matmul %48, %47, %cst {dimension_numbers = #tpu.dot_dimension_numbers<[1], [0], [0], [1], [0, 0, 1, 1], [], []>} : vector<8x72xf32>, vector<72x512xf32>, vector<8x512xf32> -> vector<8x512xf32>
    %c0_24 = arith.constant 0 : index
    %c0_25 = arith.constant 0 : index
    %50 = vector.load %arg5[%c0_24, %c0_25] : memref<8x1xf32, #tpu.memory_space<vmem>>, vector<8x1xf32>
    %51 = vector.broadcast %50 : vector<8x1xf32> to vector<8x512xf32>
    %52 = arith.addf %49, %51 : vector<8x512xf32>
    %cst_26 = arith.constant 0.000000e+00 : f32
    %53 = vector.broadcast %cst_26 : f32 to vector<8x512xf32>
    %54 = arith.maximumf %52, %53 : vector<8x512xf32>
    %c0_27 = arith.constant 0 : index
    %c0_28 = arith.constant 0 : index
    %55 = vector.load %arg6[%c0_27, %c0_28] : memref<8x512xf32, #tpu.memory_space<vmem>>, vector<8x512xf32>
    tpu.vector_store %arg6[%c0_27, %c0_28], %54 {strides = array<i32>} : memref<8x512xf32, #tpu.memory_space<vmem>>, vector<8x512xf32>,
    %cst_29 = arith.constant dense<0.000000e+00> : vector<8xf32>
    %56 = vector.multi_reduction <add>, %54, %cst_29 [1] : vector<8x512xf32> to vector<8xf32>
    %57 = vector.shape_cast %56 : vector<8xf32> to vector<8x1xf32>
    %c0_30 = arith.constant 0 : index
    %c0_31 = arith.constant 0 : index
    %58 = vector.load %arg7[%c0_30, %c0_31] : memref<8x1xf32, #tpu.memory_space<vmem>>, vector<8x1xf32>
    tpu.vector_store %arg7[%c0_30, %c0_31], %57 {strides = array<i32>} : memref<8x1xf32, #tpu.memory_space<vmem>>, vector<8x1xf32>,
    %59 = arith.mulf %54, %54 : vector<8x512xf32>
    %cst_32 = arith.constant dense<0.000000e+00> : vector<8xf32>
    %60 = vector.multi_reduction <add>, %59, %cst_32 [1] : vector<8x512xf32> to vector<8xf32>
    %61 = vector.shape_cast %60 : vector<8xf32> to vector<8x1xf32>
    %c0_33 = arith.constant 0 : index
    %c0_34 = arith.constant 0 : index
    %62 = vector.load %arg8[%c0_33, %c0_34] : memref<8x1xf32, #tpu.memory_space<vmem>>, vector<8x1xf32>
    tpu.vector_store %arg8[%c0_33, %c0_34], %61 {strides = array<i32>} : memref<8x1xf32, #tpu.memory_space<vmem>>, vector<8x1xf32>,
    return
  }
}

module attributes {stable_mosaic.version = 11 : i64} {
  func.func @kernel(%arg0: memref<8x512xf32, #tpu.memory_space<vmem>>, %arg1: memref<8x1xf32, #tpu.memory_space<vmem>>, %arg2: memref<8x1xf32, #tpu.memory_space<vmem>>, %arg3: memref<9x1x512xf32, #tpu.memory_space<vmem>>, %arg4: memref<8x72xf32, #tpu.memory_space<vmem>>, %arg5: memref<8x1xf32, #tpu.memory_space<vmem>>, %arg6: memref<8x512xf32, #tpu.memory_space<vmem>>, %arg7: memref<8x1xf32, #tpu.memory_space<vmem>>, %arg8: memref<8x1xf32, #tpu.memory_space<vmem>>) attributes {dimension_semantics = [], scalar_prefetch = 0 : i64, scratch_operands = 0 : i64, tpu.core_type = #tpu.core_type<tc>} {
    %c0 = arith.constant 0 : index
    %c0_0 = arith.constant 0 : index
    %0 = vector.load %arg0[%c0, %c0_0] : memref<8x512xf32, #tpu.memory_space<vmem>>, vector<8x512xf32>
    %c0_1 = arith.constant 0 : index
    %c0_2 = arith.constant 0 : index
    %1 = vector.load %arg1[%c0_1, %c0_2] : memref<8x1xf32, #tpu.memory_space<vmem>>, vector<8x1xf32>
    %2 = vector.broadcast %1 : vector<8x1xf32> to vector<8x512xf32>
    %3 = arith.mulf %0, %2 : vector<8x512xf32>
    %c0_3 = arith.constant 0 : index
    %c0_4 = arith.constant 0 : index
    %4 = vector.load %arg2[%c0_3, %c0_4] : memref<8x1xf32, #tpu.memory_space<vmem>>, vector<8x1xf32>
    %5 = vector.broadcast %4 : vector<8x1xf32> to vector<8x512xf32>
    %6 = arith.addf %3, %5 : vector<8x512xf32>
    %c17_i32 = arith.constant 17 : i32
    %7 = tpu.dynamic_rotate %6 by %c17_i32 dim 1 : vector<8x512xf32>, i32 -> vector<8x512xf32>
    %c0_5 = arith.constant 0 : index
    %c0_6 = arith.constant 0 : index
    %c0_7 = arith.constant 0 : index
    %8 = vector.load %arg3[%c0_5, %c0_6, %c0_7] : memref<9x1x512xf32, #tpu.memory_space<vmem>>, vector<1x1x512xf32>
    %9 = vector.shape_cast %8 : vector<1x1x512xf32> to vector<1x512xf32>
    %10 = vector.broadcast %9 : vector<1x512xf32> to vector<8x512xf32>
    %11 = arith.mulf %7, %10 : vector<8x512xf32>
    %c16_i32 = arith.constant 16 : i32
    %12 = tpu.dynamic_rotate %6 by %c16_i32 dim 1 : vector<8x512xf32>, i32 -> vector<8x512xf32>
    %c1 = arith.constant 1 : index
    %c0_8 = arith.constant 0 : index
    %c0_9 = arith.constant 0 : index
    %13 = vector.load %arg3[%c1, %c0_8, %c0_9] : memref<9x1x512xf32, #tpu.memory_space<vmem>>, vector<1x1x512xf32>
    %14 = vector.shape_cast %13 : vector<1x1x512xf32> to vector<1x512xf32>
    %15 = vector.broadcast %14 : vector<1x512xf32> to vector<8x512xf32>
    %16 = arith.mulf %12, %15 : vector<8x512xf32>
    %c15_i32 = arith.constant 15 : i32
    %17 = tpu.dynamic_rotate %6 by %c15_i32 dim 1 : vector<8x512xf32>, i32 -> vector<8x512xf32>
    %c2 = arith.constant 2 : index
    %c0_10 = arith.constant 0 : index
    %c0_11 = arith.constant 0 : index
    %18 = vector.load %arg3[%c2, %c0_10, %c0_11] : memref<9x1x512xf32, #tpu.memory_space<vmem>>, vector<1x1x512xf32>
    %19 = vector.shape_cast %18 : vector<1x1x512xf32> to vector<1x512xf32>
    %20 = vector.broadcast %19 : vector<1x512xf32> to vector<8x512xf32>
    %21 = arith.mulf %17, %20 : vector<8x512xf32>
    %c1_i32 = arith.constant 1 : i32
    %22 = tpu.dynamic_rotate %6 by %c1_i32 dim 1 : vector<8x512xf32>, i32 -> vector<8x512xf32>
    %c3 = arith.constant 3 : index
    %c0_12 = arith.constant 0 : index
    %c0_13 = arith.constant 0 : index
    %23 = vector.load %arg3[%c3, %c0_12, %c0_13] : memref<9x1x512xf32, #tpu.memory_space<vmem>>, vector<1x1x512xf32>
    %24 = vector.shape_cast %23 : vector<1x1x512xf32> to vector<1x512xf32>
    %25 = vector.broadcast %24 : vector<1x512xf32> to vector<8x512xf32>
    %26 = arith.mulf %22, %25 : vector<8x512xf32>
    %c511_i32 = arith.constant 511 : i32
    %27 = tpu.dynamic_rotate %6 by %c511_i32 dim 1 : vector<8x512xf32>, i32 -> vector<8x512xf32>
    %c5 = arith.constant 5 : index
    %c0_14 = arith.constant 0 : index
    %c0_15 = arith.constant 0 : index
    %28 = vector.load %arg3[%c5, %c0_14, %c0_15] : memref<9x1x512xf32, #tpu.memory_space<vmem>>, vector<1x1x512xf32>
    %29 = vector.shape_cast %28 : vector<1x1x512xf32> to vector<1x512xf32>
    %30 = vector.broadcast %29 : vector<1x512xf32> to vector<8x512xf32>
    %31 = arith.mulf %27, %30 : vector<8x512xf32>
    %c497_i32 = arith.constant 497 : i32
    %32 = tpu.dynamic_rotate %6 by %c497_i32 dim 1 : vector<8x512xf32>, i32 -> vector<8x512xf32>
    %c6 = arith.constant 6 : index
    %c0_16 = arith.constant 0 : index
    %c0_17 = arith.constant 0 : index
    %33 = vector.load %arg3[%c6, %c0_16, %c0_17] : memref<9x1x512xf32, #tpu.memory_space<vmem>>, vector<1x1x512xf32>
    %34 = vector.shape_cast %33 : vector<1x1x512xf32> to vector<1x512xf32>
    %35 = vector.broadcast %34 : vector<1x512xf32> to vector<8x512xf32>
    %36 = arith.mulf %32, %35 : vector<8x512xf32>
    %c496_i32 = arith.constant 496 : i32
    %37 = tpu.dynamic_rotate %6 by %c496_i32 dim 1 : vector<8x512xf32>, i32 -> vector<8x512xf32>
    %c7 = arith.constant 7 : index
    %c0_18 = arith.constant 0 : index
    %c0_19 = arith.constant 0 : index
    %38 = vector.load %arg3[%c7, %c0_18, %c0_19] : memref<9x1x512xf32, #tpu.memory_space<vmem>>, vector<1x1x512xf32>
    %39 = vector.shape_cast %38 : vector<1x1x512xf32> to vector<1x512xf32>
    %40 = vector.broadcast %39 : vector<1x512xf32> to vector<8x512xf32>
    %41 = arith.mulf %37, %40 : vector<8x512xf32>
    %c495_i32 = arith.constant 495 : i32
    %42 = tpu.dynamic_rotate %6 by %c495_i32 dim 1 : vector<8x512xf32>, i32 -> vector<8x512xf32>
    %c8 = arith.constant 8 : index
    %c0_20 = arith.constant 0 : index
    %c0_21 = arith.constant 0 : index
    %43 = vector.load %arg3[%c8, %c0_20, %c0_21] : memref<9x1x512xf32, #tpu.memory_space<vmem>>, vector<1x1x512xf32>
    %44 = vector.shape_cast %43 : vector<1x1x512xf32> to vector<1x512xf32>
    %45 = vector.broadcast %44 : vector<1x512xf32> to vector<8x512xf32>
    %46 = arith.mulf %42, %45 : vector<8x512xf32>
    %47 = tpu.concatenate %11, %16, %21, %26, %6, %31, %36, %41, %46 in 0 : vector<8x512xf32>, vector<8x512xf32>, vector<8x512xf32>, vector<8x512xf32>, vector<8x512xf32>, vector<8x512xf32>, vector<8x512xf32>, vector<8x512xf32>, vector<8x512xf32> -> vector<72x512xf32>
    %c0_22 = arith.constant 0 : index
    %c0_23 = arith.constant 0 : index
    %48 = vector.load %arg4[%c0_22, %c0_23] : memref<8x72xf32, #tpu.memory_space<vmem>>, vector<8x72xf32>
    %cst = arith.constant dense<0.000000e+00> : vector<8x512xf32>
    %49 = tpu.matmul %48, %47, %cst {dimension_numbers = #tpu.dot_dimension_numbers<[1], [0], [0], [1], [0, 0, 1, 1], [], []>} : vector<8x72xf32>, vector<72x512xf32>, vector<8x512xf32> -> vector<8x512xf32>
    %c0_24 = arith.constant 0 : index
    %c0_25 = arith.constant 0 : index
    %50 = vector.load %arg5[%c0_24, %c0_25] : memref<8x1xf32, #tpu.memory_space<vmem>>, vector<8x1xf32>
    %51 = vector.broadcast %50 : vector<8x1xf32> to vector<8x512xf32>
    %52 = arith.addf %49, %51 : vector<8x512xf32>
    %cst_26 = arith.constant 0.000000e+00 : f32
    %53 = vector.broadcast %cst_26 : f32 to vector<8x512xf32>
    %54 = arith.maximumf %52, %53 : vector<8x512xf32>
    %c0_27 = arith.constant 0 : index
    %c0_28 = arith.constant 0 : index
    %55 = vector.load %arg6[%c0_27, %c0_28] : memref<8x512xf32, #tpu.memory_space<vmem>>, vector<8x512xf32>
    tpu.vector_store %arg6[%c0_27, %c0_28], %54 {strides = array<i32>} : memref<8x512xf32, #tpu.memory_space<vmem>>, vector<8x512xf32>,
    %cst_29 = arith.constant dense<0.000000e+00> : vector<8xf32>
    %56 = vector.multi_reduction <add>, %54, %cst_29 [1] : vector<8x512xf32> to vector<8xf32>
    %57 = vector.shape_cast %56 : vector<8xf32> to vector<8x1xf32>
    %c0_30 = arith.constant 0 : index
    %c0_31 = arith.constant 0 : index
    %58 = vector.load %arg7[%c0_30, %c0_31] : memref<8x1xf32, #tpu.memory_space<vmem>>, vector<8x1xf32>
    tpu.vector_store %arg7[%c0_30, %c0_31], %57 {strides = array<i32>} : memref<8x1xf32, #tpu.memory_space<vmem>>, vector<8x1xf32>,
    %59 = arith.mulf %54, %54 : vector<8x512xf32>
    %cst_32 = arith.constant dense<0.000000e+00> : vector<8xf32>
    %60 = vector.multi_reduction <add>, %59, %cst_32 [1] : vector<8x512xf32> to vector<8xf32>
    %61 = vector.shape_cast %60 : vector<8xf32> to vector<8x1xf32>
    %c0_33 = arith.constant 0 : index
    %c0_34 = arith.constant 0 : index
    %62 = vector.load %arg8[%c0_33, %c0_34] : memref<8x1xf32, #tpu.memory_space<vmem>>, vector<8x1xf32>
    tpu.vector_store %arg8[%c0_33, %c0_34], %61 {strides = array<i32>} : memref<8x1xf32, #tpu.memory_space<vmem>>, vector<8x1xf32>,
    return
  }
}

module attributes {stable_mosaic.version = 11 : i64} {
  func.func @kernel(%arg0: memref<8x512xf32, #tpu.memory_space<vmem>>, %arg1: memref<8x1xf32, #tpu.memory_space<vmem>>, %arg2: memref<8x1xf32, #tpu.memory_space<vmem>>, %arg3: memref<9x1x512xf32, #tpu.memory_space<vmem>>, %arg4: memref<16x72xf32, #tpu.memory_space<vmem>>, %arg5: memref<16x1xf32, #tpu.memory_space<vmem>>, %arg6: memref<16x512xf32, #tpu.memory_space<vmem>>, %arg7: memref<16x1xf32, #tpu.memory_space<vmem>>, %arg8: memref<16x1xf32, #tpu.memory_space<vmem>>) attributes {dimension_semantics = [], scalar_prefetch = 0 : i64, scratch_operands = 0 : i64, tpu.core_type = #tpu.core_type<tc>} {
    %c0 = arith.constant 0 : index
    %c0_0 = arith.constant 0 : index
    %0 = vector.load %arg0[%c0, %c0_0] : memref<8x512xf32, #tpu.memory_space<vmem>>, vector<8x512xf32>
    %c0_1 = arith.constant 0 : index
    %c0_2 = arith.constant 0 : index
    %1 = vector.load %arg1[%c0_1, %c0_2] : memref<8x1xf32, #tpu.memory_space<vmem>>, vector<8x1xf32>
    %2 = vector.broadcast %1 : vector<8x1xf32> to vector<8x512xf32>
    %3 = arith.mulf %0, %2 : vector<8x512xf32>
    %c0_3 = arith.constant 0 : index
    %c0_4 = arith.constant 0 : index
    %4 = vector.load %arg2[%c0_3, %c0_4] : memref<8x1xf32, #tpu.memory_space<vmem>>, vector<8x1xf32>
    %5 = vector.broadcast %4 : vector<8x1xf32> to vector<8x512xf32>
    %6 = arith.addf %3, %5 : vector<8x512xf32>
    %c17_i32 = arith.constant 17 : i32
    %7 = tpu.dynamic_rotate %6 by %c17_i32 dim 1 : vector<8x512xf32>, i32 -> vector<8x512xf32>
    %c0_5 = arith.constant 0 : index
    %c0_6 = arith.constant 0 : index
    %c0_7 = arith.constant 0 : index
    %8 = vector.load %arg3[%c0_5, %c0_6, %c0_7] : memref<9x1x512xf32, #tpu.memory_space<vmem>>, vector<1x1x512xf32>
    %9 = vector.shape_cast %8 : vector<1x1x512xf32> to vector<1x512xf32>
    %10 = vector.broadcast %9 : vector<1x512xf32> to vector<8x512xf32>
    %11 = arith.mulf %7, %10 : vector<8x512xf32>
    %c16_i32 = arith.constant 16 : i32
    %12 = tpu.dynamic_rotate %6 by %c16_i32 dim 1 : vector<8x512xf32>, i32 -> vector<8x512xf32>
    %c1 = arith.constant 1 : index
    %c0_8 = arith.constant 0 : index
    %c0_9 = arith.constant 0 : index
    %13 = vector.load %arg3[%c1, %c0_8, %c0_9] : memref<9x1x512xf32, #tpu.memory_space<vmem>>, vector<1x1x512xf32>
    %14 = vector.shape_cast %13 : vector<1x1x512xf32> to vector<1x512xf32>
    %15 = vector.broadcast %14 : vector<1x512xf32> to vector<8x512xf32>
    %16 = arith.mulf %12, %15 : vector<8x512xf32>
    %c15_i32 = arith.constant 15 : i32
    %17 = tpu.dynamic_rotate %6 by %c15_i32 dim 1 : vector<8x512xf32>, i32 -> vector<8x512xf32>
    %c2 = arith.constant 2 : index
    %c0_10 = arith.constant 0 : index
    %c0_11 = arith.constant 0 : index
    %18 = vector.load %arg3[%c2, %c0_10, %c0_11] : memref<9x1x512xf32, #tpu.memory_space<vmem>>, vector<1x1x512xf32>
    %19 = vector.shape_cast %18 : vector<1x1x512xf32> to vector<1x512xf32>
    %20 = vector.broadcast %19 : vector<1x512xf32> to vector<8x512xf32>
    %21 = arith.mulf %17, %20 : vector<8x512xf32>
    %c1_i32 = arith.constant 1 : i32
    %22 = tpu.dynamic_rotate %6 by %c1_i32 dim 1 : vector<8x512xf32>, i32 -> vector<8x512xf32>
    %c3 = arith.constant 3 : index
    %c0_12 = arith.constant 0 : index
    %c0_13 = arith.constant 0 : index
    %23 = vector.load %arg3[%c3, %c0_12, %c0_13] : memref<9x1x512xf32, #tpu.memory_space<vmem>>, vector<1x1x512xf32>
    %24 = vector.shape_cast %23 : vector<1x1x512xf32> to vector<1x512xf32>
    %25 = vector.broadcast %24 : vector<1x512xf32> to vector<8x512xf32>
    %26 = arith.mulf %22, %25 : vector<8x512xf32>
    %c511_i32 = arith.constant 511 : i32
    %27 = tpu.dynamic_rotate %6 by %c511_i32 dim 1 : vector<8x512xf32>, i32 -> vector<8x512xf32>
    %c5 = arith.constant 5 : index
    %c0_14 = arith.constant 0 : index
    %c0_15 = arith.constant 0 : index
    %28 = vector.load %arg3[%c5, %c0_14, %c0_15] : memref<9x1x512xf32, #tpu.memory_space<vmem>>, vector<1x1x512xf32>
    %29 = vector.shape_cast %28 : vector<1x1x512xf32> to vector<1x512xf32>
    %30 = vector.broadcast %29 : vector<1x512xf32> to vector<8x512xf32>
    %31 = arith.mulf %27, %30 : vector<8x512xf32>
    %c497_i32 = arith.constant 497 : i32
    %32 = tpu.dynamic_rotate %6 by %c497_i32 dim 1 : vector<8x512xf32>, i32 -> vector<8x512xf32>
    %c6 = arith.constant 6 : index
    %c0_16 = arith.constant 0 : index
    %c0_17 = arith.constant 0 : index
    %33 = vector.load %arg3[%c6, %c0_16, %c0_17] : memref<9x1x512xf32, #tpu.memory_space<vmem>>, vector<1x1x512xf32>
    %34 = vector.shape_cast %33 : vector<1x1x512xf32> to vector<1x512xf32>
    %35 = vector.broadcast %34 : vector<1x512xf32> to vector<8x512xf32>
    %36 = arith.mulf %32, %35 : vector<8x512xf32>
    %c496_i32 = arith.constant 496 : i32
    %37 = tpu.dynamic_rotate %6 by %c496_i32 dim 1 : vector<8x512xf32>, i32 -> vector<8x512xf32>
    %c7 = arith.constant 7 : index
    %c0_18 = arith.constant 0 : index
    %c0_19 = arith.constant 0 : index
    %38 = vector.load %arg3[%c7, %c0_18, %c0_19] : memref<9x1x512xf32, #tpu.memory_space<vmem>>, vector<1x1x512xf32>
    %39 = vector.shape_cast %38 : vector<1x1x512xf32> to vector<1x512xf32>
    %40 = vector.broadcast %39 : vector<1x512xf32> to vector<8x512xf32>
    %41 = arith.mulf %37, %40 : vector<8x512xf32>
    %c495_i32 = arith.constant 495 : i32
    %42 = tpu.dynamic_rotate %6 by %c495_i32 dim 1 : vector<8x512xf32>, i32 -> vector<8x512xf32>
    %c8 = arith.constant 8 : index
    %c0_20 = arith.constant 0 : index
    %c0_21 = arith.constant 0 : index
    %43 = vector.load %arg3[%c8, %c0_20, %c0_21] : memref<9x1x512xf32, #tpu.memory_space<vmem>>, vector<1x1x512xf32>
    %44 = vector.shape_cast %43 : vector<1x1x512xf32> to vector<1x512xf32>
    %45 = vector.broadcast %44 : vector<1x512xf32> to vector<8x512xf32>
    %46 = arith.mulf %42, %45 : vector<8x512xf32>
    %47 = tpu.concatenate %11, %16, %21, %26, %6, %31, %36, %41, %46 in 0 : vector<8x512xf32>, vector<8x512xf32>, vector<8x512xf32>, vector<8x512xf32>, vector<8x512xf32>, vector<8x512xf32>, vector<8x512xf32>, vector<8x512xf32>, vector<8x512xf32> -> vector<72x512xf32>
    %c0_22 = arith.constant 0 : index
    %c0_23 = arith.constant 0 : index
    %48 = vector.load %arg4[%c0_22, %c0_23] : memref<16x72xf32, #tpu.memory_space<vmem>>, vector<16x72xf32>
    %cst = arith.constant dense<0.000000e+00> : vector<16x512xf32>
    %49 = tpu.matmul %48, %47, %cst {dimension_numbers = #tpu.dot_dimension_numbers<[1], [0], [0], [1], [0, 0, 1, 1], [], []>} : vector<16x72xf32>, vector<72x512xf32>, vector<16x512xf32> -> vector<16x512xf32>
    %c0_24 = arith.constant 0 : index
    %c0_25 = arith.constant 0 : index
    %50 = vector.load %arg5[%c0_24, %c0_25] : memref<16x1xf32, #tpu.memory_space<vmem>>, vector<16x1xf32>
    %51 = vector.broadcast %50 : vector<16x1xf32> to vector<16x512xf32>
    %52 = arith.addf %49, %51 : vector<16x512xf32>
    %cst_26 = arith.constant 0.000000e+00 : f32
    %53 = vector.broadcast %cst_26 : f32 to vector<16x512xf32>
    %54 = arith.maximumf %52, %53 : vector<16x512xf32>
    %c0_27 = arith.constant 0 : index
    %c0_28 = arith.constant 0 : index
    %55 = vector.load %arg6[%c0_27, %c0_28] : memref<16x512xf32, #tpu.memory_space<vmem>>, vector<16x512xf32>
    tpu.vector_store %arg6[%c0_27, %c0_28], %54 {strides = array<i32>} : memref<16x512xf32, #tpu.memory_space<vmem>>, vector<16x512xf32>,
    %cst_29 = arith.constant dense<0.000000e+00> : vector<16xf32>
    %56 = vector.multi_reduction <add>, %54, %cst_29 [1] : vector<16x512xf32> to vector<16xf32>
    %57 = vector.shape_cast %56 : vector<16xf32> to vector<16x1xf32>
    %c0_30 = arith.constant 0 : index
    %c0_31 = arith.constant 0 : index
    %58 = vector.load %arg7[%c0_30, %c0_31] : memref<16x1xf32, #tpu.memory_space<vmem>>, vector<16x1xf32>
    tpu.vector_store %arg7[%c0_30, %c0_31], %57 {strides = array<i32>} : memref<16x1xf32, #tpu.memory_space<vmem>>, vector<16x1xf32>,
    %59 = arith.mulf %54, %54 : vector<16x512xf32>
    %cst_32 = arith.constant dense<0.000000e+00> : vector<16xf32>
    %60 = vector.multi_reduction <add>, %59, %cst_32 [1] : vector<16x512xf32> to vector<16xf32>
    %61 = vector.shape_cast %60 : vector<16xf32> to vector<16x1xf32>
    %c0_33 = arith.constant 0 : index
    %c0_34 = arith.constant 0 : index
    %62 = vector.load %arg8[%c0_33, %c0_34] : memref<16x1xf32, #tpu.memory_space<vmem>>, vector<16x1xf32>
    tpu.vector_store %arg8[%c0_33, %c0_34], %61 {strides = array<i32>} : memref<16x1xf32, #tpu.memory_space<vmem>>, vector<16x1xf32>,
    return
  }
}

module attributes {stable_mosaic.version = 11 : i64} {
  func.func @kernel(%arg0: memref<8x512xf32, #tpu.memory_space<vmem>>, %arg1: memref<8x1xf32, #tpu.memory_space<vmem>>, %arg2: memref<8x1xf32, #tpu.memory_space<vmem>>, %arg3: memref<6x1x512xf32, #tpu.memory_space<vmem>>, %arg4: memref<8x48xf32, #tpu.memory_space<vmem>>, %arg5: memref<8x1xf32, #tpu.memory_space<vmem>>, %arg6: memref<8x512xf32, #tpu.memory_space<vmem>>, %arg7: memref<8x1xf32, #tpu.memory_space<vmem>>, %arg8: memref<8x1xf32, #tpu.memory_space<vmem>>) attributes {dimension_semantics = [], scalar_prefetch = 0 : i64, scratch_operands = 0 : i64, tpu.core_type = #tpu.core_type<tc>} {
    %c0 = arith.constant 0 : index
    %c0_0 = arith.constant 0 : index
    %0 = vector.load %arg0[%c0, %c0_0] : memref<8x512xf32, #tpu.memory_space<vmem>>, vector<8x512xf32>
    %c0_1 = arith.constant 0 : index
    %c0_2 = arith.constant 0 : index
    %1 = vector.load %arg1[%c0_1, %c0_2] : memref<8x1xf32, #tpu.memory_space<vmem>>, vector<8x1xf32>
    %2 = vector.broadcast %1 : vector<8x1xf32> to vector<8x512xf32>
    %3 = arith.mulf %0, %2 : vector<8x512xf32>
    %c0_3 = arith.constant 0 : index
    %c0_4 = arith.constant 0 : index
    %4 = vector.load %arg2[%c0_3, %c0_4] : memref<8x1xf32, #tpu.memory_space<vmem>>, vector<8x1xf32>
    %5 = vector.broadcast %4 : vector<8x1xf32> to vector<8x512xf32>
    %6 = arith.addf %3, %5 : vector<8x512xf32>
    %c2_i32 = arith.constant 2 : i32
    %7 = tpu.dynamic_rotate %6 by %c2_i32 dim 1 : vector<8x512xf32>, i32 -> vector<8x512xf32>
    %c0_5 = arith.constant 0 : index
    %c0_6 = arith.constant 0 : index
    %c0_7 = arith.constant 0 : index
    %8 = vector.load %arg3[%c0_5, %c0_6, %c0_7] : memref<6x1x512xf32, #tpu.memory_space<vmem>>, vector<1x1x512xf32>
    %9 = vector.shape_cast %8 : vector<1x1x512xf32> to vector<1x512xf32>
    %10 = vector.broadcast %9 : vector<1x512xf32> to vector<8x512xf32>
    %11 = arith.mulf %7, %10 : vector<8x512xf32>
    %c1_i32 = arith.constant 1 : i32
    %12 = tpu.dynamic_rotate %6 by %c1_i32 dim 1 : vector<8x512xf32>, i32 -> vector<8x512xf32>
    %c1 = arith.constant 1 : index
    %c0_8 = arith.constant 0 : index
    %c0_9 = arith.constant 0 : index
    %13 = vector.load %arg3[%c1, %c0_8, %c0_9] : memref<6x1x512xf32, #tpu.memory_space<vmem>>, vector<1x1x512xf32>
    %14 = vector.shape_cast %13 : vector<1x1x512xf32> to vector<1x512xf32>
    %15 = vector.broadcast %14 : vector<1x512xf32> to vector<8x512xf32>
    %16 = arith.mulf %12, %15 : vector<8x512xf32>
    %c511_i32 = arith.constant 511 : i32
    %17 = tpu.dynamic_rotate %6 by %c511_i32 dim 1 : vector<8x512xf32>, i32 -> vector<8x512xf32>
    %c3 = arith.constant 3 : index
    %c0_10 = arith.constant 0 : index
    %c0_11 = arith.constant 0 : index
    %18 = vector.load %arg3[%c3, %c0_10, %c0_11] : memref<6x1x512xf32, #tpu.memory_space<vmem>>, vector<1x1x512xf32>
    %19 = vector.shape_cast %18 : vector<1x1x512xf32> to vector<1x512xf32>
    %20 = vector.broadcast %19 : vector<1x512xf32> to vector<8x512xf32>
    %21 = arith.mulf %17, %20 : vector<8x512xf32>
    %c510_i32 = arith.constant 510 : i32
    %22 = tpu.dynamic_rotate %6 by %c510_i32 dim 1 : vector<8x512xf32>, i32 -> vector<8x512xf32>
    %c4 = arith.constant 4 : index
    %c0_12 = arith.constant 0 : index
    %c0_13 = arith.constant 0 : index
    %23 = vector.load %arg3[%c4, %c0_12, %c0_13] : memref<6x1x512xf32, #tpu.memory_space<vmem>>, vector<1x1x512xf32>
    %24 = vector.shape_cast %23 : vector<1x1x512xf32> to vector<1x512xf32>
    %25 = vector.broadcast %24 : vector<1x512xf32> to vector<8x512xf32>
    %26 = arith.mulf %22, %25 : vector<8x512xf32>
    %c509_i32 = arith.constant 509 : i32
    %27 = tpu.dynamic_rotate %6 by %c509_i32 dim 1 : vector<8x512xf32>, i32 -> vector<8x512xf32>
    %c5 = arith.constant 5 : index
    %c0_14 = arith.constant 0 : index
    %c0_15 = arith.constant 0 : index
    %28 = vector.load %arg3[%c5, %c0_14, %c0_15] : memref<6x1x512xf32, #tpu.memory_space<vmem>>, vector<1x1x512xf32>
    %29 = vector.shape_cast %28 : vector<1x1x512xf32> to vector<1x512xf32>
    %30 = vector.broadcast %29 : vector<1x512xf32> to vector<8x512xf32>
    %31 = arith.mulf %27, %30 : vector<8x512xf32>
    %32 = tpu.concatenate %11, %16, %6, %21, %26, %31 in 0 : vector<8x512xf32>, vector<8x512xf32>, vector<8x512xf32>, vector<8x512xf32>, vector<8x512xf32>, vector<8x512xf32> -> vector<48x512xf32>
    %c0_16 = arith.constant 0 : index
    %c0_17 = arith.constant 0 : index
    %33 = vector.load %arg4[%c0_16, %c0_17] : memref<8x48xf32, #tpu.memory_space<vmem>>, vector<8x48xf32>
    %cst = arith.constant dense<0.000000e+00> : vector<8x512xf32>
    %34 = tpu.matmul %33, %32, %cst {dimension_numbers = #tpu.dot_dimension_numbers<[1], [0], [0], [1], [0, 0, 1, 1], [], []>} : vector<8x48xf32>, vector<48x512xf32>, vector<8x512xf32> -> vector<8x512xf32>
    %c0_18 = arith.constant 0 : index
    %c0_19 = arith.constant 0 : index
    %35 = vector.load %arg5[%c0_18, %c0_19] : memref<8x1xf32, #tpu.memory_space<vmem>>, vector<8x1xf32>
    %36 = vector.broadcast %35 : vector<8x1xf32> to vector<8x512xf32>
    %37 = arith.addf %34, %36 : vector<8x512xf32>
    %cst_20 = arith.constant 0.000000e+00 : f32
    %38 = vector.broadcast %cst_20 : f32 to vector<8x512xf32>
    %39 = arith.maximumf %37, %38 : vector<8x512xf32>
    %c0_21 = arith.constant 0 : index
    %c0_22 = arith.constant 0 : index
    %40 = vector.load %arg6[%c0_21, %c0_22] : memref<8x512xf32, #tpu.memory_space<vmem>>, vector<8x512xf32>
    tpu.vector_store %arg6[%c0_21, %c0_22], %39 {strides = array<i32>} : memref<8x512xf32, #tpu.memory_space<vmem>>, vector<8x512xf32>,
    %cst_23 = arith.constant dense<0.000000e+00> : vector<8xf32>
    %41 = vector.multi_reduction <add>, %39, %cst_23 [1] : vector<8x512xf32> to vector<8xf32>
    %42 = vector.shape_cast %41 : vector<8xf32> to vector<8x1xf32>
    %c0_24 = arith.constant 0 : index
    %c0_25 = arith.constant 0 : index
    %43 = vector.load %arg7[%c0_24, %c0_25] : memref<8x1xf32, #tpu.memory_space<vmem>>, vector<8x1xf32>
    tpu.vector_store %arg7[%c0_24, %c0_25], %42 {strides = array<i32>} : memref<8x1xf32, #tpu.memory_space<vmem>>, vector<8x1xf32>,
    %44 = arith.mulf %39, %39 : vector<8x512xf32>
    %cst_26 = arith.constant dense<0.000000e+00> : vector<8xf32>
    %45 = vector.multi_reduction <add>, %44, %cst_26 [1] : vector<8x512xf32> to vector<8xf32>
    %46 = vector.shape_cast %45 : vector<8xf32> to vector<8x1xf32>
    %c0_27 = arith.constant 0 : index
    %c0_28 = arith.constant 0 : index
    %47 = vector.load %arg8[%c0_27, %c0_28] : memref<8x1xf32, #tpu.memory_space<vmem>>, vector<8x1xf32>
    tpu.vector_store %arg8[%c0_27, %c0_28], %46 {strides = array<i32>} : memref<8x1xf32, #tpu.memory_space<vmem>>, vector<8x1xf32>,
    return
  }
}

module attributes {stable_mosaic.version = 11 : i64} {
  func.func @kernel(%arg0: memref<8x512xf32, #tpu.memory_space<vmem>>, %arg1: memref<8x512xf32, #tpu.memory_space<vmem>>, %arg2: memref<8x512xf32, #tpu.memory_space<vmem>>, %arg3: memref<8x512xf32, #tpu.memory_space<vmem>>, %arg4: memref<8x512xf32, #tpu.memory_space<vmem>>, %arg5: memref<8x512xf32, #tpu.memory_space<vmem>>, %arg6: memref<6x8x1xf32, #tpu.memory_space<vmem>>, %arg7: memref<6x8x1xf32, #tpu.memory_space<vmem>>, %arg8: memref<8x512xf32, #tpu.memory_space<vmem>>, %arg9: memref<8x1xf32, #tpu.memory_space<vmem>>, %arg10: memref<8x1xf32, #tpu.memory_space<vmem>>) attributes {dimension_semantics = [], scalar_prefetch = 0 : i64, scratch_operands = 0 : i64, tpu.core_type = #tpu.core_type<tc>} {
    %c0 = arith.constant 0 : index
    %c0_0 = arith.constant 0 : index
    %0 = vector.load %arg0[%c0, %c0_0] : memref<8x512xf32, #tpu.memory_space<vmem>>, vector<8x512xf32>
    %c0_1 = arith.constant 0 : index
    %c0_2 = arith.constant 0 : index
    %c0_3 = arith.constant 0 : index
    %1 = vector.load %arg6[%c0_1, %c0_2, %c0_3] : memref<6x8x1xf32, #tpu.memory_space<vmem>>, vector<1x8x1xf32>
    %2 = vector.shape_cast %1 : vector<1x8x1xf32> to vector<8x1xf32>
    %3 = vector.broadcast %2 : vector<8x1xf32> to vector<8x512xf32>
    %4 = arith.mulf %0, %3 : vector<8x512xf32>
    %c0_4 = arith.constant 0 : index
    %c0_5 = arith.constant 0 : index
    %c0_6 = arith.constant 0 : index
    %5 = vector.load %arg7[%c0_4, %c0_5, %c0_6] : memref<6x8x1xf32, #tpu.memory_space<vmem>>, vector<1x8x1xf32>
    %6 = vector.shape_cast %5 : vector<1x8x1xf32> to vector<8x1xf32>
    %7 = vector.broadcast %6 : vector<8x1xf32> to vector<8x512xf32>
    %8 = arith.addf %4, %7 : vector<8x512xf32>
    %c0_7 = arith.constant 0 : index
    %c0_8 = arith.constant 0 : index
    %9 = vector.load %arg1[%c0_7, %c0_8] : memref<8x512xf32, #tpu.memory_space<vmem>>, vector<8x512xf32>
    %c1 = arith.constant 1 : index
    %c0_9 = arith.constant 0 : index
    %c0_10 = arith.constant 0 : index
    %10 = vector.load %arg6[%c1, %c0_9, %c0_10] : memref<6x8x1xf32, #tpu.memory_space<vmem>>, vector<1x8x1xf32>
    %11 = vector.shape_cast %10 : vector<1x8x1xf32> to vector<8x1xf32>
    %12 = vector.broadcast %11 : vector<8x1xf32> to vector<8x512xf32>
    %13 = arith.mulf %9, %12 : vector<8x512xf32>
    %14 = arith.addf %8, %13 : vector<8x512xf32>
    %c1_11 = arith.constant 1 : index
    %c0_12 = arith.constant 0 : index
    %c0_13 = arith.constant 0 : index
    %15 = vector.load %arg7[%c1_11, %c0_12, %c0_13] : memref<6x8x1xf32, #tpu.memory_space<vmem>>, vector<1x8x1xf32>
    %16 = vector.shape_cast %15 : vector<1x8x1xf32> to vector<8x1xf32>
    %17 = vector.broadcast %16 : vector<8x1xf32> to vector<8x512xf32>
    %18 = arith.addf %14, %17 : vector<8x512xf32>
    %c0_14 = arith.constant 0 : index
    %c0_15 = arith.constant 0 : index
    %19 = vector.load %arg2[%c0_14, %c0_15] : memref<8x512xf32, #tpu.memory_space<vmem>>, vector<8x512xf32>
    %c2 = arith.constant 2 : index
    %c0_16 = arith.constant 0 : index
    %c0_17 = arith.constant 0 : index
    %20 = vector.load %arg6[%c2, %c0_16, %c0_17] : memref<6x8x1xf32, #tpu.memory_space<vmem>>, vector<1x8x1xf32>
    %21 = vector.shape_cast %20 : vector<1x8x1xf32> to vector<8x1xf32>
    %22 = vector.broadcast %21 : vector<8x1xf32> to vector<8x512xf32>
    %23 = arith.mulf %19, %22 : vector<8x512xf32>
    %24 = arith.addf %18, %23 : vector<8x512xf32>
    %c2_18 = arith.constant 2 : index
    %c0_19 = arith.constant 0 : index
    %c0_20 = arith.constant 0 : index
    %25 = vector.load %arg7[%c2_18, %c0_19, %c0_20] : memref<6x8x1xf32, #tpu.memory_space<vmem>>, vector<1x8x1xf32>
    %26 = vector.shape_cast %25 : vector<1x8x1xf32> to vector<8x1xf32>
    %27 = vector.broadcast %26 : vector<8x1xf32> to vector<8x512xf32>
    %28 = arith.addf %24, %27 : vector<8x512xf32>
    %c0_21 = arith.constant 0 : index
    %c0_22 = arith.constant 0 : index
    %29 = vector.load %arg3[%c0_21, %c0_22] : memref<8x512xf32, #tpu.memory_space<vmem>>, vector<8x512xf32>
    %c3 = arith.constant 3 : index
    %c0_23 = arith.constant 0 : index
    %c0_24 = arith.constant 0 : index
    %30 = vector.load %arg6[%c3, %c0_23, %c0_24] : memref<6x8x1xf32, #tpu.memory_space<vmem>>, vector<1x8x1xf32>
    %31 = vector.shape_cast %30 : vector<1x8x1xf32> to vector<8x1xf32>
    %32 = vector.broadcast %31 : vector<8x1xf32> to vector<8x512xf32>
    %33 = arith.mulf %29, %32 : vector<8x512xf32>
    %34 = arith.addf %28, %33 : vector<8x512xf32>
    %c3_25 = arith.constant 3 : index
    %c0_26 = arith.constant 0 : index
    %c0_27 = arith.constant 0 : index
    %35 = vector.load %arg7[%c3_25, %c0_26, %c0_27] : memref<6x8x1xf32, #tpu.memory_space<vmem>>, vector<1x8x1xf32>
    %36 = vector.shape_cast %35 : vector<1x8x1xf32> to vector<8x1xf32>
    %37 = vector.broadcast %36 : vector<8x1xf32> to vector<8x512xf32>
    %38 = arith.addf %34, %37 : vector<8x512xf32>
    %c0_28 = arith.constant 0 : index
    %c0_29 = arith.constant 0 : index
    %39 = vector.load %arg4[%c0_28, %c0_29] : memref<8x512xf32, #tpu.memory_space<vmem>>, vector<8x512xf32>
    %c4 = arith.constant 4 : index
    %c0_30 = arith.constant 0 : index
    %c0_31 = arith.constant 0 : index
    %40 = vector.load %arg6[%c4, %c0_30, %c0_31] : memref<6x8x1xf32, #tpu.memory_space<vmem>>, vector<1x8x1xf32>
    %41 = vector.shape_cast %40 : vector<1x8x1xf32> to vector<8x1xf32>
    %42 = vector.broadcast %41 : vector<8x1xf32> to vector<8x512xf32>
    %43 = arith.mulf %39, %42 : vector<8x512xf32>
    %44 = arith.addf %38, %43 : vector<8x512xf32>
    %c4_32 = arith.constant 4 : index
    %c0_33 = arith.constant 0 : index
    %c0_34 = arith.constant 0 : index
    %45 = vector.load %arg7[%c4_32, %c0_33, %c0_34] : memref<6x8x1xf32, #tpu.memory_space<vmem>>, vector<1x8x1xf32>
    %46 = vector.shape_cast %45 : vector<1x8x1xf32> to vector<8x1xf32>
    %47 = vector.broadcast %46 : vector<8x1xf32> to vector<8x512xf32>
    %48 = arith.addf %44, %47 : vector<8x512xf32>
    %c0_35 = arith.constant 0 : index
    %c0_36 = arith.constant 0 : index
    %49 = vector.load %arg5[%c0_35, %c0_36] : memref<8x512xf32, #tpu.memory_space<vmem>>, vector<8x512xf32>
    %c5 = arith.constant 5 : index
    %c0_37 = arith.constant 0 : index
    %c0_38 = arith.constant 0 : index
    %50 = vector.load %arg6[%c5, %c0_37, %c0_38] : memref<6x8x1xf32, #tpu.memory_space<vmem>>, vector<1x8x1xf32>
    %51 = vector.shape_cast %50 : vector<1x8x1xf32> to vector<8x1xf32>
    %52 = vector.broadcast %51 : vector<8x1xf32> to vector<8x512xf32>
    %53 = arith.mulf %49, %52 : vector<8x512xf32>
    %54 = arith.addf %48, %53 : vector<8x512xf32>
    %c5_39 = arith.constant 5 : index
    %c0_40 = arith.constant 0 : index
    %c0_41 = arith.constant 0 : index
    %55 = vector.load %arg7[%c5_39, %c0_40, %c0_41] : memref<6x8x1xf32, #tpu.memory_space<vmem>>, vector<1x8x1xf32>
    %56 = vector.shape_cast %55 : vector<1x8x1xf32> to vector<8x1xf32>
    %57 = vector.broadcast %56 : vector<8x1xf32> to vector<8x512xf32>
    %58 = arith.addf %54, %57 : vector<8x512xf32>
    %c0_42 = arith.constant 0 : index
    %c0_43 = arith.constant 0 : index
    %59 = vector.load %arg8[%c0_42, %c0_43] : memref<8x512xf32, #tpu.memory_space<vmem>>, vector<8x512xf32>
    tpu.vector_store %arg8[%c0_42, %c0_43], %58 {strides = array<i32>} : memref<8x512xf32, #tpu.memory_space<vmem>>, vector<8x512xf32>,
    %cst = arith.constant dense<0.000000e+00> : vector<8xf32>
    %60 = vector.multi_reduction <add>, %58, %cst [1] : vector<8x512xf32> to vector<8xf32>
    %61 = vector.shape_cast %60 : vector<8xf32> to vector<8x1xf32>
    %c0_44 = arith.constant 0 : index
    %c0_45 = arith.constant 0 : index
    %62 = vector.load %arg9[%c0_44, %c0_45] : memref<8x1xf32, #tpu.memory_space<vmem>>, vector<8x1xf32>
    tpu.vector_store %arg9[%c0_44, %c0_45], %61 {strides = array<i32>} : memref<8x1xf32, #tpu.memory_space<vmem>>, vector<8x1xf32>,
    %63 = arith.mulf %58, %58 : vector<8x512xf32>
    %cst_46 = arith.constant dense<0.000000e+00> : vector<8xf32>
    %64 = vector.multi_reduction <add>, %63, %cst_46 [1] : vector<8x512xf32> to vector<8xf32>
    %65 = vector.shape_cast %64 : vector<8xf32> to vector<8x1xf32>
    %c0_47 = arith.constant 0 : index
    %c0_48 = arith.constant 0 : index
    %66 = vector.load %arg10[%c0_47, %c0_48] : memref<8x1xf32, #tpu.memory_space<vmem>>, vector<8x1xf32>
    tpu.vector_store %arg10[%c0_47, %c0_48], %65 {strides = array<i32>} : memref<8x1xf32, #tpu.memory_space<vmem>>, vector<8x1xf32>,
    return
  }
}

module attributes {stable_mosaic.version = 11 : i64} {
  func.func @kernel(%arg0: memref<8x512xf32, #tpu.memory_space<vmem>>, %arg1: memref<8x1xf32, #tpu.memory_space<vmem>>, %arg2: memref<8x1xf32, #tpu.memory_space<vmem>>, %arg3: memref<6x1x512xf32, #tpu.memory_space<vmem>>, %arg4: memref<8x48xf32, #tpu.memory_space<vmem>>, %arg5: memref<8x1xf32, #tpu.memory_space<vmem>>, %arg6: memref<8x512xf32, #tpu.memory_space<vmem>>, %arg7: memref<8x1xf32, #tpu.memory_space<vmem>>, %arg8: memref<8x1xf32, #tpu.memory_space<vmem>>) attributes {dimension_semantics = [], scalar_prefetch = 0 : i64, scratch_operands = 0 : i64, tpu.core_type = #tpu.core_type<tc>} {
    %c0 = arith.constant 0 : index
    %c0_0 = arith.constant 0 : index
    %0 = vector.load %arg0[%c0, %c0_0] : memref<8x512xf32, #tpu.memory_space<vmem>>, vector<8x512xf32>
    %c0_1 = arith.constant 0 : index
    %c0_2 = arith.constant 0 : index
    %1 = vector.load %arg1[%c0_1, %c0_2] : memref<8x1xf32, #tpu.memory_space<vmem>>, vector<8x1xf32>
    %2 = vector.broadcast %1 : vector<8x1xf32> to vector<8x512xf32>
    %3 = arith.mulf %0, %2 : vector<8x512xf32>
    %c0_3 = arith.constant 0 : index
    %c0_4 = arith.constant 0 : index
    %4 = vector.load %arg2[%c0_3, %c0_4] : memref<8x1xf32, #tpu.memory_space<vmem>>, vector<8x1xf32>
    %5 = vector.broadcast %4 : vector<8x1xf32> to vector<8x512xf32>
    %6 = arith.addf %3, %5 : vector<8x512xf32>
    %c32_i32 = arith.constant 32 : i32
    %7 = tpu.dynamic_rotate %6 by %c32_i32 dim 1 : vector<8x512xf32>, i32 -> vector<8x512xf32>
    %c0_5 = arith.constant 0 : index
    %c0_6 = arith.constant 0 : index
    %c0_7 = arith.constant 0 : index
    %8 = vector.load %arg3[%c0_5, %c0_6, %c0_7] : memref<6x1x512xf32, #tpu.memory_space<vmem>>, vector<1x1x512xf32>
    %9 = vector.shape_cast %8 : vector<1x1x512xf32> to vector<1x512xf32>
    %10 = vector.broadcast %9 : vector<1x512xf32> to vector<8x512xf32>
    %11 = arith.mulf %7, %10 : vector<8x512xf32>
    %c16_i32 = arith.constant 16 : i32
    %12 = tpu.dynamic_rotate %6 by %c16_i32 dim 1 : vector<8x512xf32>, i32 -> vector<8x512xf32>
    %c1 = arith.constant 1 : index
    %c0_8 = arith.constant 0 : index
    %c0_9 = arith.constant 0 : index
    %13 = vector.load %arg3[%c1, %c0_8, %c0_9] : memref<6x1x512xf32, #tpu.memory_space<vmem>>, vector<1x1x512xf32>
    %14 = vector.shape_cast %13 : vector<1x1x512xf32> to vector<1x512xf32>
    %15 = vector.broadcast %14 : vector<1x512xf32> to vector<8x512xf32>
    %16 = arith.mulf %12, %15 : vector<8x512xf32>
    %c496_i32 = arith.constant 496 : i32
    %17 = tpu.dynamic_rotate %6 by %c496_i32 dim 1 : vector<8x512xf32>, i32 -> vector<8x512xf32>
    %c3 = arith.constant 3 : index
    %c0_10 = arith.constant 0 : index
    %c0_11 = arith.constant 0 : index
    %18 = vector.load %arg3[%c3, %c0_10, %c0_11] : memref<6x1x512xf32, #tpu.memory_space<vmem>>, vector<1x1x512xf32>
    %19 = vector.shape_cast %18 : vector<1x1x512xf32> to vector<1x512xf32>
    %20 = vector.broadcast %19 : vector<1x512xf32> to vector<8x512xf32>
    %21 = arith.mulf %17, %20 : vector<8x512xf32>
    %c480_i32 = arith.constant 480 : i32
    %22 = tpu.dynamic_rotate %6 by %c480_i32 dim 1 : vector<8x512xf32>, i32 -> vector<8x512xf32>
    %c4 = arith.constant 4 : index
    %c0_12 = arith.constant 0 : index
    %c0_13 = arith.constant 0 : index
    %23 = vector.load %arg3[%c4, %c0_12, %c0_13] : memref<6x1x512xf32, #tpu.memory_space<vmem>>, vector<1x1x512xf32>
    %24 = vector.shape_cast %23 : vector<1x1x512xf32> to vector<1x512xf32>
    %25 = vector.broadcast %24 : vector<1x512xf32> to vector<8x512xf32>
    %26 = arith.mulf %22, %25 : vector<8x512xf32>
    %c464_i32 = arith.constant 464 : i32
    %27 = tpu.dynamic_rotate %6 by %c464_i32 dim 1 : vector<8x512xf32>, i32 -> vector<8x512xf32>
    %c5 = arith.constant 5 : index
    %c0_14 = arith.constant 0 : index
    %c0_15 = arith.constant 0 : index
    %28 = vector.load %arg3[%c5, %c0_14, %c0_15] : memref<6x1x512xf32, #tpu.memory_space<vmem>>, vector<1x1x512xf32>
    %29 = vector.shape_cast %28 : vector<1x1x512xf32> to vector<1x512xf32>
    %30 = vector.broadcast %29 : vector<1x512xf32> to vector<8x512xf32>
    %31 = arith.mulf %27, %30 : vector<8x512xf32>
    %32 = tpu.concatenate %11, %16, %6, %21, %26, %31 in 0 : vector<8x512xf32>, vector<8x512xf32>, vector<8x512xf32>, vector<8x512xf32>, vector<8x512xf32>, vector<8x512xf32> -> vector<48x512xf32>
    %c0_16 = arith.constant 0 : index
    %c0_17 = arith.constant 0 : index
    %33 = vector.load %arg4[%c0_16, %c0_17] : memref<8x48xf32, #tpu.memory_space<vmem>>, vector<8x48xf32>
    %cst = arith.constant dense<0.000000e+00> : vector<8x512xf32>
    %34 = tpu.matmul %33, %32, %cst {dimension_numbers = #tpu.dot_dimension_numbers<[1], [0], [0], [1], [0, 0, 1, 1], [], []>} : vector<8x48xf32>, vector<48x512xf32>, vector<8x512xf32> -> vector<8x512xf32>
    %c0_18 = arith.constant 0 : index
    %c0_19 = arith.constant 0 : index
    %35 = vector.load %arg5[%c0_18, %c0_19] : memref<8x1xf32, #tpu.memory_space<vmem>>, vector<8x1xf32>
    %36 = vector.broadcast %35 : vector<8x1xf32> to vector<8x512xf32>
    %37 = arith.addf %34, %36 : vector<8x512xf32>
    %cst_20 = arith.constant 0.000000e+00 : f32
    %38 = vector.broadcast %cst_20 : f32 to vector<8x512xf32>
    %39 = arith.maximumf %37, %38 : vector<8x512xf32>
    %c0_21 = arith.constant 0 : index
    %c0_22 = arith.constant 0 : index
    %40 = vector.load %arg6[%c0_21, %c0_22] : memref<8x512xf32, #tpu.memory_space<vmem>>, vector<8x512xf32>
    tpu.vector_store %arg6[%c0_21, %c0_22], %39 {strides = array<i32>} : memref<8x512xf32, #tpu.memory_space<vmem>>, vector<8x512xf32>,
    %cst_23 = arith.constant dense<0.000000e+00> : vector<8xf32>
    %41 = vector.multi_reduction <add>, %39, %cst_23 [1] : vector<8x512xf32> to vector<8xf32>
    %42 = vector.shape_cast %41 : vector<8xf32> to vector<8x1xf32>
    %c0_24 = arith.constant 0 : index
    %c0_25 = arith.constant 0 : index
    %43 = vector.load %arg7[%c0_24, %c0_25] : memref<8x1xf32, #tpu.memory_space<vmem>>, vector<8x1xf32>
    tpu.vector_store %arg7[%c0_24, %c0_25], %42 {strides = array<i32>} : memref<8x1xf32, #tpu.memory_space<vmem>>, vector<8x1xf32>,
    %44 = arith.mulf %39, %39 : vector<8x512xf32>
    %cst_26 = arith.constant dense<0.000000e+00> : vector<8xf32>
    %45 = vector.multi_reduction <add>, %44, %cst_26 [1] : vector<8x512xf32> to vector<8xf32>
    %46 = vector.shape_cast %45 : vector<8xf32> to vector<8x1xf32>
    %c0_27 = arith.constant 0 : index
    %c0_28 = arith.constant 0 : index
    %47 = vector.load %arg8[%c0_27, %c0_28] : memref<8x1xf32, #tpu.memory_space<vmem>>, vector<8x1xf32>
    tpu.vector_store %arg8[%c0_27, %c0_28], %46 {strides = array<i32>} : memref<8x1xf32, #tpu.memory_space<vmem>>, vector<8x1xf32>,
    return
  }
}

module attributes {stable_mosaic.version = 11 : i64} {
  func.func @_affine_kernel(%arg0: memref<8x512xf32, #tpu.memory_space<vmem>>, %arg1: memref<8x1xf32, #tpu.memory_space<vmem>>, %arg2: memref<8x1xf32, #tpu.memory_space<vmem>>, %arg3: memref<8x512xf32, #tpu.memory_space<vmem>>) attributes {dimension_semantics = [], scalar_prefetch = 0 : i64, scratch_operands = 0 : i64, tpu.core_type = #tpu.core_type<tc>} {
    %c0 = arith.constant 0 : index
    %c0_0 = arith.constant 0 : index
    %0 = vector.load %arg0[%c0, %c0_0] : memref<8x512xf32, #tpu.memory_space<vmem>>, vector<8x512xf32>
    %c0_1 = arith.constant 0 : index
    %c0_2 = arith.constant 0 : index
    %1 = vector.load %arg1[%c0_1, %c0_2] : memref<8x1xf32, #tpu.memory_space<vmem>>, vector<8x1xf32>
    %2 = vector.broadcast %1 : vector<8x1xf32> to vector<8x512xf32>
    %3 = arith.mulf %0, %2 : vector<8x512xf32>
    %c0_3 = arith.constant 0 : index
    %c0_4 = arith.constant 0 : index
    %4 = vector.load %arg2[%c0_3, %c0_4] : memref<8x1xf32, #tpu.memory_space<vmem>>, vector<8x1xf32>
    %5 = vector.broadcast %4 : vector<8x1xf32> to vector<8x512xf32>
    %6 = arith.addf %3, %5 : vector<8x512xf32>
    %c0_5 = arith.constant 0 : index
    %c0_6 = arith.constant 0 : index
    %7 = vector.load %arg3[%c0_5, %c0_6] : memref<8x512xf32, #tpu.memory_space<vmem>>, vector<8x512xf32>
    tpu.vector_store %arg3[%c0_5, %c0_6], %6 {strides = array<i32>} : memref<8x512xf32, #tpu.memory_space<vmem>>, vector<8x512xf32>,
    return
  }
}

</mosaic_0001>

<bundles_post_ra>
// kernel: duckv2_forward.24
= control target key start
LH: loop header
LB: loop body
LE: loop exit
PB: predicated region body
PF: predicated region fallthrough
CT: control target
= control target key end

     0   :  { %vm18_vm0 = vcmask 1043456   ;;  %vm28_vm1 = vcmask 3072   ;;  %s93_s0 = inlined_call_operand.vmem [shape: f32[4,512], index: 0, kind: input, shape index: {}]   ;;  %s94_s1 = inlined_call_operand.vmem [shape: f32[4,1], index: 1, kind: output, shape index: {0}]   ;;  %s95_s2 = inlined_call_operand.vmem [shape: f32[4,1], index: 2, kind: output, shape index: {1}]  }
   0x1   :  { %v10_v0 = vld [vmem:[%s93_s0] sm:$0xff]  ;;  %v11_v1 = vld [vmem:[%s93_s0 + $0x8] sm:$0xff] }
   0x2   :  { %v14_v2 = vcombine.high %v10_v0, %v10_v0  ;;  %v15_v3 = vcombine.high %v11_v1, %v11_v1  ;;  %v19_v4 = vsel %vm18_vm0, %v10_v0, 0.0  ;;  %v30_v5 = vmul.f32 %v10_v0, %v10_v0 }
   0x3   :  { %v31_v6 = vmul.f32 %v11_v1, %v11_v1  ;;  %v22_v8 = vsel %vm18_vm0, %v11_v1, 0.0 }
   0x4   :  { %v20_v7 = vsel %vm18_vm0, %v14_v2, 0.0  ;;  %v34_v10 = vcombine.high %v30_v5, %v30_v5  ;;  %v38_v12 = vsel %vm18_vm0, %v30_v5, 0.0  ;;  %v24_v13 = vsel %vm18_vm0, %v15_v3, 0.0 }
   0x5   :  { %v21_v9 = vadd.f32 %v20_v7, %v19_v4  ;;  %v35_v11 = vcombine.high %v31_v6, %v31_v6  ;;  %v41_v16 = vsel %vm18_vm0, %v31_v6, 0.0 }
   0x6   :  { %v39_v15 = vsel %vm18_vm0, %v34_v10, 0.0 }
   0x7   :  { %v23_v14 = vadd.f32 %v22_v8, %v21_v9  ;;  %v40_v17 = vadd.f32 %v39_v15, %v38_v12  ;;  %v43_v19 = vsel %vm18_vm0, %v35_v11, 0.0 }
   0x9   :  { %v25_v18 = vadd.f32 %v24_v13, %v23_v14  ;;  %v42_v20 = vadd.f32 %v41_v16, %v40_v17 }
   0xb   :  { %26 = vadd.xlane.f32.xlu0 %v25_v18  ;;  %v44_v21 = vadd.f32 %v43_v19, %v42_v20 }
   0xf   :  { %45 = vadd.xlane.f32.xlu0 %v44_v21 }
  0x98   :  { %v27_v22 = vpop.xlane.xlu0 %26 }
  0x99   :  { %29 = vst.msk [vmem:[%s94_s1] sm:$0xf] %vm28_vm1, %v27_v22 }
  0x9c   :  { %v46_v23 = vpop.xlane.xlu0 %45 }
  0x9d   :  { %47 = vst.msk [vmem:[%s95_s2] sm:$0xf] %vm28_vm1, %v46_v23 }

// kernel: duckv2_forward.26
= control target key start
LH: loop header
LB: loop body
LE: loop exit
PB: predicated region body
PF: predicated region fallthrough
CT: control target
= control target key end

     0   :  { %v613_v0 = vmov 0   ;;  %s616_s17 = smov 30   ;;  %s618_s18 = smov 126   ;;  %v621_v17 = vmov 0.0   ;;  %v58_v19 = vlaneseq  ;;  %vm378_vm8 = vcmask 588800   ;;  %s892_s1 = inlined_call_operand.vmem [shape: f32[8,1], index: 1, kind: input, shape index: {}]   ;;  %s893_s2 = inlined_call_operand.vmem [shape: f32[8,1], index: 2, kind: input, shape index: {}]   ;;  %s894_s0 = inlined_call_operand.vmem [shape: f32[8,512], index: 0, kind: input, shape index: {}]   ;;  %s895_s5 = inlined_call_operand.vmem [shape: f32[8,1], index: 5, kind: input, shape index: {}]   ;;  %s896_s3 = inlined_call_operand.vmem [shape: f32[9,1,512], index: 3, kind: input, shape index: {}]   ;;  %s897_s4 = inlined_call_operand.vmem [shape: f32[8,72], index: 4, kind: input, shape index: {}]   ;;  %s898_s6 = inlined_call_operand.vmem [shape: f32[8,512], index: 6, kind: output, shape index: {0}]   ;;  %s899_s7 = inlined_call_operand.vmem [shape: f32[8,1], index: 7, kind: output, shape index: {1}]   ;;  %s900_s8 = inlined_call_operand.vmem [shape: f32[8,1], index: 8, kind: output, shape index: {2}]  }
   0x1   :  { %612 = vset.pattern.permute.xlu0 %v613_v0  ;;  %v30_v1 = vld [vmem:[%s892_s1] sm:$0xff]  ;;  %v27_v6 = vld [vmem:[%s894_s0 + $0x8] sm:$0xff]  ;;  %v29_v7 = vld [vmem:[%s894_s0 + $0x18] sm:$0xff]  ;;  %s614_s1 = smov 32   ;;  %s619_s19 = smov 98   ;;  %446 = vmatprep.mubr.f32.mxu0 %v621_v17  ;;  %vm537_vm9 = vcmask 7168  }
   0x2   :  { %33 = vperm.xlu0 %612, %v30_v1   ;;  %v40_v2 = vld [vmem:[%s893_s2] sm:$0xff]  ;;  %s615_s2 = smov 34   ;;  %v28_v12 = vld [vmem:[%s894_s0 + $0x10] sm:$0xff]  ;;  %s620_s20 = smov 96   ;;  %517 = vmatprep.mubr.f32.mxu1 %v621_v17  ;;  %v68_v20 = vshrl.u32 %v58_v19, 7  ;;  %v729_v23 = vand.u32 127, %v58_v19 }
   0x3   :  { %v26_v4 = vld [vmem:[%s894_s0] sm:$0xff]  ;;  %s617_s0 = smov 2   ;;  %s622_s21 = smov 94   ;;  %v562_v0 = vld [vmem:[%s896_s3 + $0x8] sm:$0xf] }
   0x4   :  { %v372_v18 = vld [vmem:[%s895_s5] sm:$0xff]  ;;  %v731_v24 = vsub.s32 1, %v68_v20  ;;  %vm60_vm0 = vcmp.lt.s32.totalorder %v729_v23, 34  ;;  %v740_v29 = vsub.s32 0, %v68_v20  ;;  %vm99_vm1 = vcmp.lt.s32.totalorder %v729_v23, 32 }
   0x5   :  { %v65_v25 = vld [vmem:[%s896_s3] sm:$0xf]  ;;  %v561_v26 = vld [vmem:[%s896_s3 + $0x4] sm:$0xf]  ;;  %v747_v35 = vsub.s32 2, %v68_v20  ;;  %v751_v37 = vsub.s32 3, %v68_v20 }
   0x6   :  { %43 = vperm.xlu0 %612, %v40_v2   ;;  %v74_v30 = vrot.slane %v65_v25, %v731_v24  ;;  %v114_v31 = vrot.slane %v561_v26, %v731_v24  ;;  %v70_v38 = vrot.slane %v65_v25, %v740_v29  ;;  %v110_v39 = vrot.slane %v561_v26, %v740_v29  ;;  %v563_v1 = vld [vmem:[%s896_s3 + $0xc] sm:$0xf] }
   0x7   :  { %v78_v46 = vrot.slane %v65_v25, %v747_v35  ;;  %v82_v48 = vrot.slane %v65_v25, %v751_v37  ;;  %v118_v51 = vrot.slane %v561_v26, %v747_v35  ;;  %v122_v52 = vrot.slane %v561_v26, %v751_v37 }
   0x8   :  { %vm139_vm2 = vcmp.lt.s32.totalorder %v729_v23, 30  ;;  %vm179_vm3 = vcmp.lt.s32.totalorder %v729_v23, 2  ;;  %v190_v19 = vrot.slane %v563_v1, %v740_v29  ;;  %v158_v26 = vrot.slane %v562_v0, %v747_v35 }
   0x9   :  { %vm219_vm4 = vcmp.lt.s32.totalorder %v729_v23, 126  ;;  %vm259_vm5 = vcmp.lt.s32.totalorder %v729_v23, 98  ;;  %vm299_vm6 = vcmp.lt.s32.totalorder %v729_v23, 96  ;;  %vm339_vm7 = vcmp.lt.s32.totalorder %v729_v23, 94 }
  0x81   :  { %v34_v3 = vpop.permute.xlu0 %33 }
  0x82   :  { %v36_v5 = vmul.f32 %v34_v3, %v26_v4  ;;  %v37_v10 = vmul.f32 %v34_v3, %v27_v6  ;;  %v39_v11 = vmul.f32 %v34_v3, %v29_v7  ;;  %v38_v15 = vmul.f32 %v34_v3, %v28_v12 }
  0x83   :  { %v154_v6 = vrot.slane %v562_v0, %v731_v24  ;;  %v194_v7 = vrot.slane %v563_v1, %v731_v24 }
  0x85   :  { %v44_v8 = vpop.permute.xlu0 %43 }
  0x86   :  { %v683_v9 = vadd.f32 %v44_v8, %v36_v5  ;;  %v690_v13 = vadd.f32 %v44_v8, %v37_v10  ;;  %v692_v14 = vadd.f32 %v44_v8, %v39_v11  ;;  %v696_v16 = vadd.f32 %v44_v8, %v38_v15 }
  0x87   :  { %v150_v15 = vrot.slane %v562_v0, %v740_v29 }
  0x88   :  { %91 = vrot.lane.b32.xlu0 %v683_v9, %s614_s1  ;;  %50 = vrot.lane.b32.xlu1 %v683_v9, %s615_s2 }
  0x8c   :  { %56 = vrot.lane.b32.xlu0 %v692_v14, %s615_s2  ;;  %52 = vrot.lane.b32.xlu1 %v690_v13, %s615_s2 }
  0x90   :  { %54 = vrot.lane.b32.xlu0 %v696_v16, %s615_s2  ;;  %93 = vrot.lane.b32.xlu1 %v690_v13, %s614_s1 }
  0x94   :  { %131 = vrot.lane.b32.xlu0 %v683_v9, %s616_s17  ;;  %97 = vrot.lane.b32.xlu1 %v692_v14, %s614_s1 }
  0x98   :  { %171 = vrot.lane.b32.xlu0 %v683_v9, %s617_s0  ;;  %95 = vrot.lane.b32.xlu1 %v696_v16, %s614_s1 }
  0x9c   :  { %137 = vrot.lane.b32.xlu0 %v692_v14, %s616_s17  ;;  %133 = vrot.lane.b32.xlu1 %v690_v13, %s616_s17 }
  0xa0   :  { %135 = vrot.lane.b32.xlu0 %v696_v16, %s616_s17  ;;  %173 = vrot.lane.b32.xlu1 %v690_v13, %s617_s0 }
  0xa4   :  { %213 = vrot.lane.b32.xlu0 %v690_v13, %s618_s18  ;;  %177 = vrot.lane.b32.xlu1 %v692_v14, %s617_s0 }
  0xa8   :  { %211 = vrot.lane.b32.xlu0 %v683_v9, %s618_s18  ;;  %175 = vrot.lane.b32.xlu1 %v696_v16, %s617_s0 }
  0xac   :  { %253 = vrot.lane.b32.xlu0 %v690_v13, %s619_s19  ;;  %215 = vrot.lane.b32.xlu1 %v696_v16, %s618_s18 }
  0xb0   :  { %293 = vrot.lane.b32.xlu0 %v690_v13, %s620_s20  ;;  %217 = vrot.lane.b32.xlu1 %v692_v14, %s618_s18 }
  0xb4   :  { %251 = vrot.lane.b32.xlu0 %v683_v9, %s619_s19  ;;  %255 = vrot.lane.b32.xlu1 %v696_v16, %s619_s19 }
  0xb8   :  { %257 = vrot.lane.b32.xlu0 %v692_v14, %s619_s19  ;;  %295 = vrot.lane.b32.xlu1 %v696_v16, %s620_s20 }
  0xbc   :  { %333 = vrot.lane.b32.xlu0 %v690_v13, %s622_s21  ;;  %291 = vrot.lane.b32.xlu1 %v683_v9, %s620_s20 }
  0xc0   :  { %331 = vrot.lane.b32.xlu0 %v683_v9, %s622_s21  ;;  %297 = vrot.lane.b32.xlu1 %v692_v14, %s620_s20 }
  0xc4   :  { %375 = vperm.xlu0 %612, %v372_v18   ;;  %335 = vrot.lane.b32.xlu1 %v696_v16, %s622_s21 }
  0xc8   :  { %337 = vrot.lane.b32.xlu1 %v692_v14, %s622_s21 }
  0xfa   :  { %v92_v21 = vpop.permute.xlu0 %91  ;;  %v51_v22 = vpop.permute.xlu1 %50 }
  0xfe   :  { %v57_v27 = vpop.permute.xlu0 %56  ;;  %v53_v28 = vpop.permute.xlu1 %52 }
  0xff   :  { %v63_v32 = vsel %vm60_vm0, %v51_v22, %v53_v28  ;;  %v64_v42 = vsel %vm60_vm0, %v57_v27, %v51_v22 }
 0x100   :  { %v88_v40 = vmul.f32 %v74_v30, %v63_v32  ;;  %v87_v49 = vmul.f32 %v70_v38, %v64_v42  ;;  %v564_v30 = vld [vmem:[%s896_s3 + $0x14] sm:$0xf] }
 0x102   :  { %v55_v33 = vpop.permute.xlu0 %54  ;;  %v94_v34 = vpop.permute.xlu1 %93 }
 0x103   :  { %v102_v36 = vsel %vm99_vm1, %v92_v21, %v94_v34  ;;  %v61_v53 = vsel %vm60_vm0, %v55_v33, %v57_v27  ;;  %v62_v54 = vsel %vm60_vm0, %v53_v28, %v55_v33  ;;  %v162_v27 = vrot.slane %v562_v0, %v751_v37 }
 0x104   :  { %v128_v41 = vmul.f32 %v114_v31, %v102_v36  ;;  %v89_v60 = vmul.f32 %v78_v46, %v62_v54  ;;  %v90_v62 = vmul.f32 %v82_v48, %v61_v53  ;;  %v198_v31 = vrot.slane %v563_v1, %v747_v35 }
 0x105   :  { %v202_v36 = vrot.slane %v563_v1, %v751_v37  ;;  %v234_v46 = vrot.slane %v564_v30, %v731_v24 }
 0x106   :  { %v132_v43 = vpop.permute.xlu0 %131  ;;  %v98_v44 = vpop.permute.xlu1 %97  ;;  %v570_v45 = vpack.c.bf16 %v128_v41, %v88_v40 }
 0x107   :  { %v103_v47 = vsel %vm99_vm1, %v98_v44, %v92_v21 }
 0x108   :  { %v127_v50 = vmul.f32 %v110_v39, %v103_v47  ;;  %571 = vmatprep.subr.bf16.mxu0 %v570_v45  ;;  %v230_v39 = vrot.slane %v564_v30, %v740_v29 }
 0x10a   :  { %v172_v55 = vpop.permute.xlu0 %171  ;;  %v96_v56 = vpop.permute.xlu1 %95  ;;  %v572_v57 = vpack.c.bf16 %v127_v50, %v87_v49 }
 0x10b   :  { %v100_v58 = vsel %vm99_vm1, %v96_v56, %v98_v44  ;;  %v101_v59 = vsel %vm99_vm1, %v94_v34, %v96_v56 }
 0x10c   :  { %v129_v61 = vmul.f32 %v118_v51, %v101_v59  ;;  %573 = vmatpush1.bf16.msra.mxu0 %v572_v57  ;;  %v130_v63 = vmul.f32 %v122_v52, %v100_v58  ;;  %v238_v58 = vrot.slane %v564_v30, %v747_v35  ;;  %v242_v59 = vrot.slane %v564_v30, %v751_v37 }
 0x10e   :  { %v138_v2 = vpop.permute.xlu0 %137  ;;  %v134_v3 = vpop.permute.xlu1 %133  ;;  %v586_v4 = vpack.c.bf16 %v130_v63, %v90_v62  ;;  %v588_v5 = vpack.c.bf16 %v129_v61, %v89_v60 }
 0x10f   :  { %v142_v8 = vsel %vm139_vm2, %v132_v43, %v134_v3  ;;  %v143_v20 = vsel %vm139_vm2, %v138_v2, %v132_v43 }
 0x110   :  { %587 = vmatprep.subr.bf16.mxu1 %v586_v4  ;;  %v168_v17 = vmul.f32 %v154_v6, %v142_v8  ;;  %v167_v32 = vmul.f32 %v150_v15, %v143_v20  ;;  %v565_v4 = vld [vmem:[%s896_s3 + $0x18] sm:$0xf] }
 0x111   :  { %589 = vmatpush1.bf16.msra.mxu1 %v588_v5  ;;  %v274_v8 = vrot.slane %v565_v4, %v731_v24 }
 0x112   :  { %v136_v10 = vpop.permute.xlu0 %135  ;;  %v174_v11 = vpop.permute.xlu1 %173 }
 0x113   :  { %v182_v12 = vsel %vm179_vm3, %v172_v55, %v174_v11  ;;  %v141_v33 = vsel %vm139_vm2, %v134_v3, %v136_v10  ;;  %v140_v38 = vsel %vm139_vm2, %v136_v10, %v138_v2 }
 0x114   :  { %v208_v18 = vmul.f32 %v194_v7, %v182_v12  ;;  %v169_v43 = vmul.f32 %v158_v26, %v141_v33  ;;  %v170_v47 = vmul.f32 %v162_v27, %v140_v38  ;;  %v278_v26 = vrot.slane %v565_v4, %v747_v35  ;;  %v567_v38 = vld [vmem:[%s896_s3 + $0x20] sm:$0xf] }
 0x115   :  { %v282_v27 = vrot.slane %v565_v4, %v751_v37 }
 0x116   :  { %v214_v21 = vpop.permute.xlu0 %213  ;;  %v178_v22 = vpop.permute.xlu1 %177  ;;  %v574_v25 = vpack.c.bf16 %v208_v18, %v168_v17 }
 0x117   :  { %v183_v28 = vsel %vm179_vm3, %v178_v22, %v172_v55 }
 0x118   :  { %v207_v34 = vmul.f32 %v190_v19, %v183_v28  ;;  %575 = vmatprep.subr.bf16.mxu0 %v574_v25 }
 0x11a   :  { %v212_v40 = vpop.permute.xlu0 %211  ;;  %v176_v41 = vpop.permute.xlu1 %175  ;;  %v576_v42 = vpack.c.bf16 %v207_v34, %v167_v32 }
 0x11b   :  { %v180_v44 = vsel %vm179_vm3, %v176_v41, %v178_v22  ;;  %v181_v45 = vsel %vm179_vm3, %v174_v11, %v176_v41  ;;  %v222_v48 = vsel %vm219_vm4, %v212_v40, %v214_v21 }
 0x11c   :  { %v209_v49 = vmul.f32 %v198_v31, %v181_v45  ;;  %v210_v50 = vmul.f32 %v202_v36, %v180_v44  ;;  %577 = vmatpush1.bf16.msra.mxu0 %v576_v42  ;;  %v247_v55 = vmul.f32 %v230_v39, %v222_v48  ;;  %v354_v44 = vrot.slane %v567_v38, %v731_v24 }
 0x11e   :  { %v254_v51 = vpop.permute.xlu0 %253  ;;  %v216_v52 = vpop.permute.xlu1 %215  ;;  %v590_v53 = vpack.c.bf16 %v210_v50, %v170_v47  ;;  %v592_v54 = vpack.c.bf16 %v209_v49, %v169_v43  ;;  %v580_v1 = vpack.c.bf16 %v247_v55, %v683_v9  ;;  %v350_v49 = vrot.slane %v567_v38, %v740_v29 }
 0x11f   :  { %v221_v56 = vsel %vm219_vm4, %v214_v21, %v216_v52 }
 0x120   :  { %v248_v57 = vmul.f32 %v234_v46, %v221_v56  ;;  %591 = vmatprep.subr.bf16.mxu1 %v590_v53  ;;  %v362_v56 = vrot.slane %v567_v38, %v751_v37 }
 0x121   :  { %593 = vmatpush1.bf16.msra.mxu1 %v592_v54 }
 0x122   :  { %v294_v60 = vpop.permute.xlu0 %293  ;;  %v218_v61 = vpop.permute.xlu1 %217  ;;  %v578_v62 = vpack.c.bf16 %v248_v57, %v690_v13  ;;  %v566_v13 = vld [vmem:[%s896_s3 + $0x1c] sm:$0xf] }
 0x123   :  { %v220_v63 = vsel %vm219_vm4, %v216_v52, %v218_v61  ;;  %v223_v0 = vsel %vm219_vm4, %v218_v61, %v212_v40  ;;  %v314_v10 = vrot.slane %v566_v13, %v731_v24  ;;  %v310_v19 = vrot.slane %v566_v13, %v740_v29 }
 0x124   :  { %v249_v2 = vmul.f32 %v238_v58, %v220_v63  ;;  %v250_v3 = vmul.f32 %v242_v59, %v223_v0  ;;  %579 = vmatprep.subr.bf16.mxu0 %v578_v62  ;;  %v318_v32 = vrot.slane %v566_v13, %v747_v35  ;;  %v322_v33 = vrot.slane %v566_v13, %v751_v37 }
 0x125   :  { %581 = vmatpush1.bf16.msra.mxu0 %v580_v1  ;;  %v358_v24 = vrot.slane %v567_v38, %v747_v35 }
 0x126   :  { %v252_v5 = vpop.permute.xlu0 %251  ;;  %v256_v6 = vpop.permute.xlu1 %255  ;;  %v594_v7 = vpack.c.bf16 %v250_v3, %v692_v14  ;;  %v596_v9 = vpack.c.bf16 %v249_v2, %v696_v16  ;;  %v270_v14 = vrot.slane %v565_v4, %v740_v29  ;;  %v371_v29 = vld [vmem:[%s897_s4] sm:$0xff] }
 0x127   :  { %v261_v11 = vsel %vm259_vm5, %v254_v51, %v256_v6  ;;  %v262_v20 = vsel %vm259_vm5, %v252_v5, %v254_v51 }
 0x128   :  { %595 = vmatprep.subr.bf16.mxu1 %v594_v7  ;;  %v288_v18 = vmul.f32 %v274_v8, %v261_v11  ;;  %v287_v30 = vmul.f32 %v270_v14, %v262_v20 }
 0x129   :  { %597 = vmatpush1.bf16.msra.mxu1 %v596_v9 }
 0x12a   :  { %v258_v12 = vpop.permute.xlu0 %257  ;;  %v296_v15 = vpop.permute.xlu1 %295 }
 0x12b   :  { %v301_v17 = vsel %vm299_vm6, %v294_v60, %v296_v15  ;;  %v260_v34 = vsel %vm259_vm5, %v256_v6, %v258_v12  ;;  %v263_v36 = vsel %vm259_vm5, %v258_v12, %v252_v5 }
 0x12c   :  { %v328_v16 = vmul.f32 %v314_v10, %v301_v17  ;;  %v289_v45 = vmul.f32 %v278_v26, %v260_v34  ;;  %v290_v46 = vmul.f32 %v282_v27, %v263_v36 }
 0x12e   :  { %v334_v21 = vpop.permute.xlu0 %333  ;;  %v292_v22 = vpop.permute.xlu1 %291  ;;  %v582_v25 = vpack.c.bf16 %v328_v16, %v288_v18 }
 0x12f   :  { %v302_v28 = vsel %vm299_vm6, %v292_v22, %v294_v60 }
 0x130   :  { %v327_v31 = vmul.f32 %v310_v19, %v302_v28  ;;  %583 = vmatprep.subr.bf16.mxu0 %v582_v25 }
 0x132   :  { %v298_v39 = vpop.permute.xlu1 %297  ;;  %v584_v40 = vpack.c.bf16 %v327_v31, %v287_v30  ;;  %v332_v41 = vpop.permute.xlu0 %331 }
 0x133   :  { %v300_v42 = vsel %vm299_vm6, %v296_v15, %v298_v39  ;;  %v303_v43 = vsel %vm299_vm6, %v298_v39, %v292_v22  ;;  %v342_v50 = vsel %vm339_vm7, %v332_v41, %v334_v21 }
 0x134   :  { %v329_v47 = vmul.f32 %v318_v32, %v300_v42  ;;  %v330_v48 = vmul.f32 %v322_v33, %v303_v43  ;;  %585 = vmatpush1.bf16.msra.mxu0 %v584_v40  ;;  %v367_v57 = vmul.f32 %v350_v49, %v342_v50 }
 0x136   :  { %v336_v51 = vpop.permute.xlu1 %335  ;;  %v598_v52 = vpack.c.bf16 %v330_v48, %v290_v46  ;;  %v600_v53 = vpack.c.bf16 %v329_v47, %v289_v45 }
 0x137   :  { %v341_v54 = vsel %vm339_vm7, %v334_v21, %v336_v51 }
 0x138   :  { %v368_v55 = vmul.f32 %v354_v44, %v341_v54  ;;  %599 = vmatprep.subr.bf16.mxu1 %v598_v52 }
 0x139   :  { %601 = vmatpush1.bf16.msra.mxu1 %v600_v53 }
 0x13a   :  { %398 = vmatprep.subr.mxu0 %v368_v55  ;;  %v338_v58 = vpop.permute.xlu1 %337 }
 0x13b   :  { %v340_v59 = vsel %vm339_vm7, %v336_v51, %v338_v58  ;;  %v343_v60 = vsel %vm339_vm7, %v338_v58, %v332_v41  ;;  %399 = vmatpush1.msra.mxu0 %v367_v57 }
 0x13c   :  { %v369_v61 = vmul.f32 %v358_v24, %v340_v59  ;;  %v370_v35 = vmul.f32 %v362_v56, %v343_v60  ;;  %568 = vmatmul.mubr.msk.f32.vlgmr.msra.gmra.mrb[0].mxu0 %vm378_vm8, %v371_v29 }
 0x13e   :  { %469 = vmatprep.subr.mxu1 %v370_v35 }
 0x13f   :  { %470 = vmatpush1.msra.mxu1 %v369_v61 }
 0x140   :  { %569 = vmatmul.mubr.msk.f32.vlgmr.msra.gmra.mrb[0].mxu1 %vm378_vm8, %v371_v29 }
 0x143   :  { %v376_v37 = vpop.permute.xlu0 %375 }
 0x20f   :  { %v448_v62 = vpop.f32.mrb[0].mxu0 }
 0x210   :  { %v449_v63 = vadd.f32 %v448_v62, %v376_v37  ;;  %v450_v0 = vpop.f32.mrb[1].mxu0 }
 0x211   :  { %v451_v1 = vadd.f32 %v450_v0, %v376_v37 }
 0x212   :  { %v524_v2 = vmax.f32 %v449_v63, 0.0 }
 0x213   :  { %v525_v3 = vmax.f32 %v451_v1, 0.0  ;;  %v519_v4 = vpop.f32.mrb[0].mxu1 }
 0x214   :  { %528 = vst [vmem:[%s898_s6] sm:$0xff] %v524_v2  ;;  %v539_v23 = vmul.f32 %v524_v2, %v524_v2  ;;  %v520_v13 = vadd.f32 %v519_v4, %v376_v37  ;;  %v521_v5 = vpop.f32.mrb[1].mxu1 }
 0x215   :  { %529 = vst [vmem:[%s898_s6 + $0x8] sm:$0xff] %v525_v3  ;;  %v540_v6 = vmul.f32 %v525_v3, %v525_v3  ;;  %v522_v7 = vadd.f32 %v521_v5, %v376_v37  ;;  %v532_v9 = vadd.f32 %v525_v3, %v524_v2 }
 0x216   :  { %v526_v8 = vmax.f32 %v520_v13, 0.0 }
 0x217   :  { %v527_v10 = vmax.f32 %v522_v7, 0.0  ;;  %v543_v11 = vadd.f32 %v540_v6, %v539_v23 }
 0x218   :  { %530 = vst [vmem:[%s898_s6 + $0x10] sm:$0xff] %v526_v8  ;;  %v533_v12 = vadd.f32 %v532_v9, %v526_v8  ;;  %v541_v15 = vmul.f32 %v526_v8, %v526_v8 }
 0x219   :  { %531 = vst [vmem:[%s898_s6 + $0x18] sm:$0xff] %v527_v10  ;;  %v542_v17 = vmul.f32 %v527_v10, %v527_v10 }
 0x21a   :  { %v534_v14 = vadd.f32 %v533_v12, %v527_v10  ;;  %v544_v18 = vadd.f32 %v543_v11, %v541_v15 }
 0x21c   :  { %535 = vadd.xlane.f32.xlu1 %v534_v14  ;;  %v545_v16 = vadd.f32 %v544_v18, %v542_v17 }
 0x21e   :  { %546 = vadd.xlane.f32.xlu0 %v545_v16 }
 0x2a9   :  { %v536_v19 = vpop.xlane.xlu1 %535 }
 0x2aa   :  { %538 = vst.msk [vmem:[%s899_s7] sm:$0xff] %vm537_vm9, %v536_v19 }
 0x2ab   :  { %v547_v20 = vpop.xlane.xlu0 %546 }
 0x2ac   :  { %548 = vst.msk [vmem:[%s900_s8] sm:$0xff] %vm537_vm9, %v547_v20 }

// kernel: duckv2_forward.25
= control target key start
LH: loop header
LB: loop body
LE: loop exit
PB: predicated region body
PF: predicated region fallthrough
CT: control target
= control target key end

     0   :  { %v950_v0 = vmov 0   ;;  %s953_s17 = smov 15   ;;  %s955_s18 = smov 127   ;;  %v958_v17 = vmov 0.0   ;;  %v58_v26 = vlaneseq  ;;  %vm427_vm8 = vcmask 588800   ;;  %s1469_s1 = inlined_call_operand.vmem [shape: f32[8,1], index: 1, kind: input, shape index: {}]   ;;  %s1470_s2 = inlined_call_operand.vmem [shape: f32[8,1], index: 2, kind: input, shape index: {}]   ;;  %s1471_s0 = inlined_call_operand.vmem [shape: f32[8,512], index: 0, kind: input, shape index: {}]   ;;  %s1472_s5 = inlined_call_operand.vmem [shape: f32[64,1], index: 5, kind: input, shape index: {}]   ;;  %s1473_s3 = inlined_call_operand.vmem [shape: f32[9,1,512], index: 3, kind: input, shape index: {}]   ;;  %s1474_s4 = inlined_call_operand.vmem [shape: f32[64,72], index: 4, kind: input, shape index: {}]   ;;  %s1475_s6 = inlined_call_operand.vmem [shape: f32[64,512], index: 6, kind: output, shape index: {0}]   ;;  %s1476_s7 = inlined_call_operand.vmem [shape: f32[64,1], index: 7, kind: output, shape index: {1}]   ;;  %s1477_s8 = inlined_call_operand.vmem [shape: f32[64,1], index: 8, kind: output, shape index: {2}]  }
   0x1   :  { %948 = vset.pattern.permute.xlu0 %v950_v0  ;;  %v30_v1 = vld [vmem:[%s1469_s1] sm:$0xff]  ;;  %949 = vset.pattern.permute.xlu1 %v950_v0  ;;  %v27_v6 = vld [vmem:[%s1471_s0 + $0x8] sm:$0xff]  ;;  %v29_v7 = vld [vmem:[%s1471_s0 + $0x18] sm:$0xff]  ;;  %s951_s1 = smov 16   ;;  %s956_s19 = smov 113   ;;  %vm782_vm9 = vcmask 7168  }
   0x2   :  { %33 = vperm.xlu0 %948, %v30_v1   ;;  %v40_v2 = vld [vmem:[%s1470_s2] sm:$0xff]  ;;  %s952_s2 = smov 17   ;;  %v28_v12 = vld [vmem:[%s1471_s0 + $0x10] sm:$0xff]  ;;  %s957_s20 = smov 112   ;;  %516 = vmatprep.mubr.f32.mxu0 %v958_v17  ;;  %v380_v22 = vld [vmem:[%s1472_s5 + $0x8] sm:$0xff]  ;;  %v68_v27 = vshrl.u32 %v58_v26, 7 }
   0x3   :  { %v26_v4 = vld [vmem:[%s1471_s0] sm:$0xff]  ;;  %s954_s0 = smov 1   ;;  %629 = vmatprep.mubr.f32.mxu1 %v958_v17  ;;  %s959_s21 = smov 111   ;;  %v381_v19 = vld [vmem:[%s1472_s5 + $0x10] sm:$0xff]  ;;  %v382_v23 = vld [vmem:[%s1472_s5 + $0x18] sm:$0xff]  ;;  %v1089_v30 = vand.u32 127, %v58_v26 }
   0x4   :  { %v379_v18 = vld [vmem:[%s1472_s5] sm:$0xff]  ;;  %v385_v21 = vld [vmem:[%s1472_s5 + $0x30] sm:$0xff]  ;;  %v384_v24 = vld [vmem:[%s1472_s5 + $0x28] sm:$0xff]  ;;  %v1091_v31 = vsub.s32 1, %v68_v27  ;;  %v1100_v36 = vsub.s32 0, %v68_v27  ;;  %v1107_v42 = vsub.s32 2, %v68_v27 }
   0x5   :  { %v383_v20 = vld [vmem:[%s1472_s5 + $0x20] sm:$0xff]  ;;  %v386_v25 = vld [vmem:[%s1472_s5 + $0x38] sm:$0xff]  ;;  %vm60_vm0 = vcmp.lt.s32.totalorder %v1089_v30, 17  ;;  %vm99_vm1 = vcmp.lt.s32.totalorder %v1089_v30, 16  ;;  %v1111_v44 = vsub.s32 3, %v68_v27  ;;  %vm139_vm2 = vcmp.lt.s32.totalorder %v1089_v30, 15 }
   0x6   :  { %43 = vperm.xlu0 %948, %v40_v2   ;;  %v65_v32 = vld [vmem:[%s1473_s3] sm:$0xf]  ;;  %v883_v33 = vld [vmem:[%s1473_s3 + $0x4] sm:$0xf]  ;;  %vm179_vm3 = vcmp.lt.s32.totalorder %v1089_v30, 1  ;;  %vm219_vm4 = vcmp.lt.s32.totalorder %v1089_v30, 127 }
   0x7   :  { %v74_v37 = vrot.slane %v65_v32, %v1091_v31  ;;  %v114_v38 = vrot.slane %v883_v33, %v1091_v31  ;;  %v70_v45 = vrot.slane %v65_v32, %v1100_v36  ;;  %v110_v46 = vrot.slane %v883_v33, %v1100_v36 }
   0x8   :  { %v78_v53 = vrot.slane %v65_v32, %v1107_v42  ;;  %v82_v55 = vrot.slane %v65_v32, %v1111_v44  ;;  %v118_v58 = vrot.slane %v883_v33, %v1107_v42  ;;  %v122_v59 = vrot.slane %v883_v33, %v1111_v44 }
   0x9   :  { %vm259_vm5 = vcmp.lt.s32.totalorder %v1089_v30, 113  ;;  %vm299_vm6 = vcmp.lt.s32.totalorder %v1089_v30, 112  ;;  %vm339_vm7 = vcmp.lt.s32.totalorder %v1089_v30, 111  ;;  %v373_v30 = vld [vmem:[%s1474_s4 + $0x10] sm:$0xff] }
  0x81   :  { %v34_v3 = vpop.permute.xlu0 %33 }
  0x82   :  { %v36_v5 = vmul.f32 %v34_v3, %v26_v4  ;;  %v37_v10 = vmul.f32 %v34_v3, %v27_v6  ;;  %v39_v11 = vmul.f32 %v34_v3, %v29_v7  ;;  %v38_v15 = vmul.f32 %v34_v3, %v28_v12  ;;  %v884_v7 = vld [vmem:[%s1473_s3 + $0x8] sm:$0xf] }
  0x85   :  { %v44_v8 = vpop.permute.xlu0 %43 }
  0x86   :  { %v1020_v9 = vadd.f32 %v44_v8, %v36_v5  ;;  %v1027_v13 = vadd.f32 %v44_v8, %v37_v10  ;;  %v1029_v14 = vadd.f32 %v44_v8, %v39_v11  ;;  %v1033_v16 = vadd.f32 %v44_v8, %v38_v15  ;;  %v885_v8 = vld [vmem:[%s1473_s3 + $0xc] sm:$0xf] }
  0x87   :  { %v190_v27 = vrot.slane %v885_v8, %v1100_v36 }
  0x88   :  { %91 = vrot.lane.b32.xlu0 %v1020_v9, %s951_s1  ;;  %50 = vrot.lane.b32.xlu1 %v1020_v9, %s952_s2 }
  0x8c   :  { %56 = vrot.lane.b32.xlu0 %v1029_v14, %s952_s2  ;;  %52 = vrot.lane.b32.xlu1 %v1027_v13, %s952_s2 }
  0x90   :  { %54 = vrot.lane.b32.xlu0 %v1033_v16, %s952_s2  ;;  %93 = vrot.lane.b32.xlu1 %v1027_v13, %s951_s1 }
  0x94   :  { %131 = vrot.lane.b32.xlu0 %v1020_v9, %s953_s17  ;;  %97 = vrot.lane.b32.xlu1 %v1029_v14, %s951_s1 }
  0x98   :  { %171 = vrot.lane.b32.xlu0 %v1020_v9, %s954_s0  ;;  %95 = vrot.lane.b32.xlu1 %v1033_v16, %s951_s1 }
  0x9c   :  { %137 = vrot.lane.b32.xlu0 %v1029_v14, %s953_s17  ;;  %133 = vrot.lane.b32.xlu1 %v1027_v13, %s953_s17 }
  0xa0   :  { %135 = vrot.lane.b32.xlu0 %v1033_v16, %s953_s17  ;;  %173 = vrot.lane.b32.xlu1 %v1027_v13, %s954_s0 }
  0xa4   :  { %213 = vrot.lane.b32.xlu0 %v1027_v13, %s955_s18  ;;  %177 = vrot.lane.b32.xlu1 %v1029_v14, %s954_s0 }
  0xa8   :  { %211 = vrot.lane.b32.xlu0 %v1020_v9, %s955_s18  ;;  %175 = vrot.lane.b32.xlu1 %v1033_v16, %s954_s0 }
  0xac   :  { %253 = vrot.lane.b32.xlu0 %v1027_v13, %s956_s19  ;;  %215 = vrot.lane.b32.xlu1 %v1033_v16, %s955_s18 }
  0xb0   :  { %293 = vrot.lane.b32.xlu0 %v1027_v13, %s957_s20  ;;  %217 = vrot.lane.b32.xlu1 %v1029_v14, %s955_s18 }
  0xb4   :  { %251 = vrot.lane.b32.xlu0 %v1020_v9, %s956_s19  ;;  %255 = vrot.lane.b32.xlu1 %v1033_v16, %s956_s19 }
  0xb8   :  { %257 = vrot.lane.b32.xlu0 %v1029_v14, %s956_s19  ;;  %295 = vrot.lane.b32.xlu1 %v1033_v16, %s957_s20 }
  0xbc   :  { %333 = vrot.lane.b32.xlu0 %v1027_v13, %s959_s21  ;;  %291 = vrot.lane.b32.xlu1 %v1020_v9, %s957_s20 }
  0xc0   :  { %331 = vrot.lane.b32.xlu0 %v1020_v9, %s959_s21  ;;  %297 = vrot.lane.b32.xlu1 %v1029_v14, %s957_s20 }
  0xc4   :  { %389 = vperm.xlu0 %948, %v379_v18   ;;  %335 = vrot.lane.b32.xlu1 %v1033_v16, %s959_s21  ;;  %v154_v18 = vrot.slane %v884_v7, %v1091_v31 }
  0xc8   :  { %399 = vperm.xlu0 %948, %v381_v19   ;;  %337 = vrot.lane.b32.xlu1 %v1029_v14, %s959_s21  ;;  %v194_v19 = vrot.slane %v885_v8, %v1091_v31 }
  0xcc   :  { %409 = vperm.xlu0 %948, %v383_v20   ;;  %394 = vperm.xlu1 %949, %v380_v22  }
  0xd0   :  { %419 = vperm.xlu0 %948, %v385_v21   ;;  %404 = vperm.xlu1 %949, %v382_v23  }
  0xd4   :  { %414 = vperm.xlu1 %949, %v384_v24   ;;  %v150_v24 = vrot.slane %v884_v7, %v1100_v36 }
  0xd8   :  { %424 = vperm.xlu1 %949, %v386_v25  }
  0xfa   :  { %v92_v28 = vpop.permute.xlu0 %91  ;;  %v51_v29 = vpop.permute.xlu1 %50 }
  0xfe   :  { %v57_v34 = vpop.permute.xlu0 %56  ;;  %v53_v35 = vpop.permute.xlu1 %52 }
  0xff   :  { %v63_v39 = vsel %vm60_vm0, %v51_v29, %v53_v35  ;;  %v64_v49 = vsel %vm60_vm0, %v57_v34, %v51_v29 }
 0x100   :  { %v88_v47 = vmul.f32 %v74_v37, %v63_v39  ;;  %v87_v56 = vmul.f32 %v70_v45, %v64_v49  ;;  %v198_v39 = vrot.slane %v885_v8, %v1107_v42  ;;  %v202_v45 = vrot.slane %v885_v8, %v1111_v44 }
 0x102   :  { %v55_v40 = vpop.permute.xlu0 %54  ;;  %v94_v41 = vpop.permute.xlu1 %93 }
 0x103   :  { %v102_v43 = vsel %vm99_vm1, %v92_v28, %v94_v41  ;;  %v61_v60 = vsel %vm60_vm0, %v55_v40, %v57_v34  ;;  %v62_v61 = vsel %vm60_vm0, %v53_v35, %v55_v40  ;;  %v158_v34 = vrot.slane %v884_v7, %v1107_v42 }
 0x104   :  { %v128_v48 = vmul.f32 %v114_v38, %v102_v43  ;;  %v89_v3 = vmul.f32 %v78_v53, %v62_v61  ;;  %v90_v5 = vmul.f32 %v82_v55, %v61_v60  ;;  %v162_v35 = vrot.slane %v884_v7, %v1111_v44  ;;  %v886_v38 = vld [vmem:[%s1473_s3 + $0x14] sm:$0xf] }
 0x106   :  { %v132_v50 = vpop.permute.xlu0 %131  ;;  %v98_v51 = vpop.permute.xlu1 %97  ;;  %v906_v52 = vpack.c.bf16 %v128_v48, %v88_v47  ;;  %v230_v47 = vrot.slane %v886_v38, %v1100_v36 }
 0x107   :  { %v103_v54 = vsel %vm99_vm1, %v98_v51, %v92_v28 }
 0x108   :  { %v127_v57 = vmul.f32 %v110_v46, %v103_v54  ;;  %907 = vmatprep.subr.bf16.mxu0 %v906_v52  ;;  %v234_v54 = vrot.slane %v886_v38, %v1091_v31 }
 0x10a   :  { %v172_v62 = vpop.permute.xlu0 %171  ;;  %v96_v63 = vpop.permute.xlu1 %95  ;;  %v908_v0 = vpack.c.bf16 %v127_v57, %v87_v56 }
 0x10b   :  { %v100_v1 = vsel %vm99_vm1, %v96_v63, %v98_v51  ;;  %v101_v2 = vsel %vm99_vm1, %v94_v41, %v96_v63 }
 0x10c   :  { %v129_v4 = vmul.f32 %v118_v58, %v101_v2  ;;  %909 = vmatpush1.bf16.msra.mxu0 %v908_v0  ;;  %v130_v6 = vmul.f32 %v122_v59, %v100_v1  ;;  %v238_v2 = vrot.slane %v886_v38, %v1107_v42 }
 0x10e   :  { %v138_v10 = vpop.permute.xlu0 %137  ;;  %v134_v11 = vpop.permute.xlu1 %133  ;;  %v922_v12 = vpack.c.bf16 %v130_v6, %v90_v5  ;;  %v924_v15 = vpack.c.bf16 %v129_v4, %v89_v3  ;;  %v242_v3 = vrot.slane %v886_v38, %v1111_v44 }
 0x10f   :  { %v142_v20 = vsel %vm139_vm2, %v132_v50, %v134_v11  ;;  %v143_v28 = vsel %vm139_vm2, %v138_v10, %v132_v50 }
 0x110   :  { %923 = vmatprep.subr.bf16.mxu1 %v922_v12  ;;  %v168_v25 = vmul.f32 %v154_v18, %v142_v20  ;;  %v167_v40 = vmul.f32 %v150_v24, %v143_v28 }
 0x111   :  { %925 = vmatpush1.bf16.msra.mxu1 %v924_v15  ;;  %v887_v15 = vld [vmem:[%s1473_s3 + $0x18] sm:$0xf] }
 0x112   :  { %v136_v21 = vpop.permute.xlu0 %135  ;;  %v174_v22 = vpop.permute.xlu1 %173 }
 0x113   :  { %v182_v23 = vsel %vm179_vm3, %v172_v62, %v174_v22  ;;  %v141_v41 = vsel %vm139_vm2, %v134_v11, %v136_v21  ;;  %v140_v46 = vsel %vm139_vm2, %v136_v21, %v138_v10  ;;  %v274_v21 = vrot.slane %v887_v15, %v1091_v31 }
 0x114   :  { %v208_v26 = vmul.f32 %v194_v19, %v182_v23  ;;  %v169_v51 = vmul.f32 %v158_v34, %v141_v41  ;;  %v170_v55 = vmul.f32 %v162_v35, %v140_v46  ;;  %v278_v35 = vrot.slane %v887_v15, %v1107_v42 }
 0x116   :  { %v214_v29 = vpop.permute.xlu0 %213  ;;  %v178_v32 = vpop.permute.xlu1 %177  ;;  %v910_v33 = vpack.c.bf16 %v208_v26, %v168_v25 }
 0x117   :  { %v183_v37 = vsel %vm179_vm3, %v178_v32, %v172_v62 }
 0x118   :  { %v207_v43 = vmul.f32 %v190_v27, %v183_v37  ;;  %911 = vmatprep.subr.bf16.mxu0 %v910_v33  ;;  %v282_v37 = vrot.slane %v887_v15, %v1111_v44 }
 0x11a   :  { %v212_v48 = vpop.permute.xlu0 %211  ;;  %v176_v49 = vpop.permute.xlu1 %175  ;;  %v912_v50 = vpack.c.bf16 %v207_v43, %v167_v40 }
 0x11b   :  { %v180_v52 = vsel %vm179_vm3, %v176_v49, %v178_v32  ;;  %v181_v53 = vsel %vm179_vm3, %v174_v22, %v176_v49  ;;  %v222_v56 = vsel %vm219_vm4, %v212_v48, %v214_v29 }
 0x11c   :  { %v209_v57 = vmul.f32 %v198_v39, %v181_v53  ;;  %v210_v58 = vmul.f32 %v202_v45, %v180_v52  ;;  %913 = vmatpush1.bf16.msra.mxu0 %v912_v50  ;;  %v247_v63 = vmul.f32 %v230_v47, %v222_v56  ;;  %v889_v47 = vld [vmem:[%s1473_s3 + $0x20] sm:$0xf] }
 0x11d   :  { %v354_v53 = vrot.slane %v889_v47, %v1091_v31 }
 0x11e   :  { %v254_v59 = vpop.permute.xlu0 %253  ;;  %v216_v60 = vpop.permute.xlu1 %215  ;;  %v926_v61 = vpack.c.bf16 %v210_v58, %v170_v55  ;;  %v928_v62 = vpack.c.bf16 %v209_v57, %v169_v51  ;;  %v916_v10 = vpack.c.bf16 %v247_v63, %v1020_v9  ;;  %v350_v58 = vrot.slane %v889_v47, %v1100_v36 }
 0x11f   :  { %v221_v0 = vsel %vm219_vm4, %v214_v29, %v216_v60 }
 0x120   :  { %v248_v1 = vmul.f32 %v234_v54, %v221_v0  ;;  %927 = vmatprep.subr.bf16.mxu1 %v926_v61 }
 0x121   :  { %929 = vmatpush1.bf16.msra.mxu1 %v928_v62 }
 0x122   :  { %v294_v4 = vpop.permute.xlu0 %293  ;;  %v218_v5 = vpop.permute.xlu1 %217  ;;  %v914_v6 = vpack.c.bf16 %v248_v1, %v1027_v13  ;;  %v888_v13 = vld [vmem:[%s1473_s3 + $0x1c] sm:$0xf]  ;;  %v362_v1 = vrot.slane %v889_v47, %v1111_v44 }
 0x123   :  { %v220_v7 = vsel %vm219_vm4, %v216_v60, %v218_v5  ;;  %v223_v8 = vsel %vm219_vm4, %v218_v5, %v212_v48  ;;  %v314_v22 = vrot.slane %v888_v13, %v1091_v31  ;;  %v310_v28 = vrot.slane %v888_v13, %v1100_v36 }
 0x124   :  { %v249_v11 = vmul.f32 %v238_v2, %v220_v7  ;;  %v250_v12 = vmul.f32 %v242_v3, %v223_v8  ;;  %915 = vmatprep.subr.bf16.mxu0 %v914_v6  ;;  %v318_v41 = vrot.slane %v888_v13, %v1107_v42  ;;  %v322_v43 = vrot.slane %v888_v13, %v1111_v44  ;;  %v372_v44 = vld [vmem:[%s1474_s4 + $0x8] sm:$0xff]  ;;  %v374_v7 = vld [vmem:[%s1474_s4 + $0x18] sm:$0xff]  ;;  %v375_v8 = vld [vmem:[%s1474_s4 + $0x20] sm:$0xff] }
 0x125   :  { %917 = vmatpush1.bf16.msra.mxu0 %v916_v10  ;;  %v358_v31 = vrot.slane %v889_v47, %v1107_v42  ;;  %v376_v10 = vld [vmem:[%s1474_s4 + $0x28] sm:$0xff] }
 0x126   :  { %v252_v18 = vpop.permute.xlu0 %251  ;;  %v256_v19 = vpop.permute.xlu1 %255  ;;  %v930_v20 = vpack.c.bf16 %v250_v12, %v1029_v14  ;;  %v932_v9 = vpack.c.bf16 %v249_v11, %v1033_v16  ;;  %v270_v14 = vrot.slane %v887_v15, %v1100_v36  ;;  %v371_v36 = vld [vmem:[%s1474_s4] sm:$0xff]  ;;  %v377_v11 = vld [vmem:[%s1474_s4 + $0x30] sm:$0xff]  ;;  %v378_v12 = vld [vmem:[%s1474_s4 + $0x38] sm:$0xff] }
 0x127   :  { %v261_v23 = vsel %vm259_vm5, %v254_v59, %v256_v19  ;;  %v262_v29 = vsel %vm259_vm5, %v252_v18, %v254_v59 }
 0x128   :  { %931 = vmatprep.subr.bf16.mxu1 %v930_v20  ;;  %v288_v27 = vmul.f32 %v274_v21, %v261_v23  ;;  %v287_v39 = vmul.f32 %v270_v14, %v262_v29 }
 0x129   :  { %933 = vmatpush1.bf16.msra.mxu1 %v932_v9 }
 0x12a   :  { %v258_v24 = vpop.permute.xlu0 %257  ;;  %v296_v25 = vpop.permute.xlu1 %295 }
 0x12b   :  { %v301_v26 = vsel %vm299_vm6, %v294_v4, %v296_v25  ;;  %v260_v45 = vsel %vm259_vm5, %v256_v19, %v258_v24  ;;  %v263_v46 = vsel %vm259_vm5, %v258_v24, %v252_v18 }
 0x12c   :  { %v328_v16 = vmul.f32 %v314_v22, %v301_v26  ;;  %v289_v54 = vmul.f32 %v278_v35, %v260_v45  ;;  %v290_v55 = vmul.f32 %v282_v37, %v263_v46 }
 0x12e   :  { %v334_v32 = vpop.permute.xlu0 %333  ;;  %v292_v33 = vpop.permute.xlu1 %291  ;;  %v918_v34 = vpack.c.bf16 %v328_v16, %v288_v27 }
 0x12f   :  { %v302_v38 = vsel %vm299_vm6, %v292_v33, %v294_v4 }
 0x130   :  { %v327_v40 = vmul.f32 %v310_v28, %v302_v38  ;;  %919 = vmatprep.subr.bf16.mxu0 %v918_v34 }
 0x132   :  { %v298_v48 = vpop.permute.xlu1 %297  ;;  %v920_v49 = vpack.c.bf16 %v327_v40, %v287_v39  ;;  %v332_v50 = vpop.permute.xlu0 %331 }
 0x133   :  { %v300_v51 = vsel %vm299_vm6, %v296_v25, %v298_v48  ;;  %v303_v52 = vsel %vm299_vm6, %v298_v48, %v292_v33  ;;  %v342_v59 = vsel %vm339_vm7, %v332_v50, %v334_v32 }
 0x134   :  { %v329_v56 = vmul.f32 %v318_v41, %v300_v51  ;;  %v330_v57 = vmul.f32 %v322_v43, %v303_v52  ;;  %921 = vmatpush1.bf16.msra.mxu0 %v920_v49  ;;  %v367_v2 = vmul.f32 %v350_v58, %v342_v59 }
 0x136   :  { %v336_v60 = vpop.permute.xlu1 %335  ;;  %v934_v61 = vpack.c.bf16 %v330_v57, %v290_v55  ;;  %v936_v62 = vpack.c.bf16 %v329_v56, %v289_v54 }
 0x137   :  { %v341_v63 = vsel %vm339_vm7, %v334_v32, %v336_v60 }
 0x138   :  { %v368_v0 = vmul.f32 %v354_v53, %v341_v63  ;;  %935 = vmatprep.subr.bf16.mxu1 %v934_v61 }
 0x139   :  { %937 = vmatpush1.bf16.msra.mxu1 %v936_v62 }
 0x13a   :  { %468 = vmatprep.subr.mxu0 %v368_v0  ;;  %v338_v3 = vpop.permute.xlu1 %337 }
 0x13b   :  { %v340_v4 = vsel %vm339_vm7, %v336_v60, %v338_v3  ;;  %v343_v5 = vsel %vm339_vm7, %v338_v3, %v332_v50  ;;  %469 = vmatpush1.msra.mxu0 %v367_v2 }
 0x13c   :  { %v369_v6 = vmul.f32 %v358_v31, %v340_v4  ;;  %v370_v42 = vmul.f32 %v362_v1, %v343_v5  ;;  %890 = vmatmul.mubr.msk.f32.vlgmr.msra.gmra.mrb[0].mxu0 %vm427_vm8, %v371_v36 }
 0x13d   :  { %522 = vmatprep.mubr.f32.mxu0 %v958_v17 }
 0x13e   :  { %581 = vmatprep.subr.mxu1 %v370_v42 }
 0x13f   :  { %582 = vmatpush1.msra.mxu1 %v369_v6 }
 0x140   :  { %891 = vmatmul.mubr.msk.f32.gmra.mrb[2].mxu0 %vm427_vm8, %v372_v44  ;;  %898 = vmatmul.mubr.msk.f32.vlgmr.msra.gmra.mrb[0].mxu1 %vm427_vm8, %v371_v36 }
 0x141   :  { %528 = vmatprep.mubr.f32.mxu0 %v958_v17  ;;  %635 = vmatprep.mubr.f32.mxu1 %v958_v17 }
 0x143   :  { %v390_v15 = vpop.permute.xlu0 %389 }
 0x144   :  { %892 = vmatmul.mubr.msk.f32.gmra.mrb[4].mxu0 %vm427_vm8, %v373_v30  ;;  %899 = vmatmul.mubr.msk.f32.gmra.mrb[2].mxu1 %vm427_vm8, %v372_v44 }
 0x145   :  { %534 = vmatprep.mubr.f32.mxu0 %v958_v17  ;;  %641 = vmatprep.mubr.f32.mxu1 %v958_v17 }
 0x147   :  { %v400_v33 = vpop.permute.xlu0 %399 }
 0x148   :  { %893 = vmatmul.mubr.msk.f32.gmra.mrb[6].mxu0 %vm427_vm8, %v374_v7  ;;  %900 = vmatmul.mubr.msk.f32.gmra.mrb[4].mxu1 %vm427_vm8, %v373_v30 }
 0x149   :  { %540 = vmatprep.mubr.f32.mxu0 %v958_v17  ;;  %647 = vmatprep.mubr.f32.mxu1 %v958_v17 }
 0x14b   :  { %v395_v9 = vpop.permute.xlu1 %394  ;;  %v410_v30 = vpop.permute.xlu0 %409 }
 0x14c   :  { %894 = vmatmul.mubr.msk.f32.gmra.mrb[8].mxu0 %vm427_vm8, %v375_v8  ;;  %901 = vmatmul.mubr.msk.f32.gmra.mrb[6].mxu1 %vm427_vm8, %v374_v7 }
 0x14d   :  { %546 = vmatprep.mubr.f32.mxu0 %v958_v17  ;;  %653 = vmatprep.mubr.f32.mxu1 %v958_v17 }
 0x14f   :  { %v405_v54 = vpop.permute.xlu1 %404 }
 0x150   :  { %895 = vmatmul.mubr.msk.f32.gmra.mrb[10].mxu0 %vm427_vm8, %v376_v10  ;;  %902 = vmatmul.mubr.msk.f32.gmra.mrb[8].mxu1 %vm427_vm8, %v375_v8 }
 0x151   :  { %552 = vmatprep.mubr.f32.mxu0 %v958_v17  ;;  %659 = vmatprep.mubr.f32.mxu1 %v958_v17 }
 0x154   :  { %896 = vmatmul.mubr.msk.f32.gmra.mrb[12].mxu0 %vm427_vm8, %v377_v11  ;;  %903 = vmatmul.mubr.msk.f32.gmra.mrb[10].mxu1 %vm427_vm8, %v376_v10 }
 0x155   :  { %558 = vmatprep.mubr.f32.mxu0 %v958_v17  ;;  %665 = vmatprep.mubr.f32.mxu1 %v958_v17 }
 0x158   :  { %897 = vmatmul.mubr.msk.f32.gmra.mrb[14].mxu0 %vm427_vm8, %v378_v12  ;;  %904 = vmatmul.mubr.msk.f32.gmra.mrb[12].mxu1 %vm427_vm8, %v377_v11 }
 0x159   :  { %671 = vmatprep.mubr.f32.mxu1 %v958_v17 }
 0x15c   :  { %905 = vmatmul.mubr.msk.f32.gmra.mrb[14].mxu1 %vm427_vm8, %v378_v12 }
 0x20f   :  { %v518_v13 = vpop.f32.mrb[0].mxu0 }
 0x210   :  { %v519_v18 = vadd.f32 %v518_v13, %v390_v15  ;;  %v520_v19 = vpop.f32.mrb[1].mxu0 }
 0x211   :  { %v521_v20 = vadd.f32 %v520_v19, %v390_v15 }
 0x212   :  { %v678_v21 = vmax.f32 %v519_v18, 0.0 }
 0x213   :  { %v679_v22 = vmax.f32 %v521_v20, 0.0  ;;  %v524_v23 = vpop.f32.mrb[2].mxu0  ;;  %v631_v24 = vpop.f32.mrb[0].mxu1 }
 0x214   :  { %710 = vst [vmem:[%s1475_s6] sm:$0xff] %v678_v21  ;;  %v791_v25 = vmul.f32 %v678_v21, %v678_v21  ;;  %v525_v26 = vadd.f32 %v524_v23, %v395_v9  ;;  %v632_v14 = vadd.f32 %v631_v24, %v390_v15  ;;  %v526_v17 = vpop.f32.mrb[3].mxu0  ;;  %v633_v27 = vpop.f32.mrb[1].mxu1 }
 0x215   :  { %711 = vst [vmem:[%s1475_s6 + $0x8] sm:$0xff] %v679_v22  ;;  %v792_v16 = vmul.f32 %v679_v22, %v679_v22  ;;  %v527_v28 = vadd.f32 %v526_v17, %v395_v9  ;;  %v634_v29 = vadd.f32 %v633_v27, %v390_v15  ;;  %v742_v32 = vadd.f32 %v679_v22, %v678_v21 }
 0x216   :  { %v682_v34 = vmax.f32 %v525_v26, 0.0  ;;  %v680_v35 = vmax.f32 %v632_v14, 0.0 }
 0x217   :  { %v683_v37 = vmax.f32 %v527_v28, 0.0  ;;  %v681_v38 = vmax.f32 %v634_v29, 0.0  ;;  %v530_v39 = vpop.f32.mrb[4].mxu0  ;;  %v637_v40 = vpop.f32.mrb[2].mxu1  ;;  %v823_v41 = vadd.f32 %v792_v16, %v791_v25 }
 0x218   :  { %714 = vst [vmem:[%s1475_s6 + $0x20] sm:$0xff] %v682_v34  ;;  %v795_v43 = vmul.f32 %v682_v34, %v682_v34  ;;  %712 = vst [vmem:[%s1475_s6 + $0x10] sm:$0xff] %v680_v35  ;;  %v531_v45 = vadd.f32 %v530_v39, %v400_v33  ;;  %v638_v46 = vadd.f32 %v637_v40, %v395_v9  ;;  %v532_v47 = vpop.f32.mrb[5].mxu0  ;;  %v639_v48 = vpop.f32.mrb[3].mxu1 }
 0x219   :  { %v743_v49 = vadd.f32 %v742_v32, %v680_v35  ;;  %715 = vst [vmem:[%s1475_s6 + $0x28] sm:$0xff] %v683_v37  ;;  %v796_v50 = vmul.f32 %v683_v37, %v683_v37  ;;  %713 = vst [vmem:[%s1475_s6 + $0x18] sm:$0xff] %v681_v38  ;;  %v533_v51 = vadd.f32 %v532_v47, %v400_v33  ;;  %v415_v16 = vpop.permute.xlu1 %414 }
 0x21a   :  { %v640_v52 = vadd.f32 %v639_v48, %v395_v9  ;;  %v793_v53 = vmul.f32 %v680_v35, %v680_v35  ;;  %v686_v55 = vmax.f32 %v531_v45, 0.0  ;;  %v684_v56 = vmax.f32 %v638_v46, 0.0 }
 0x21b   :  { %v744_v57 = vadd.f32 %v743_v49, %v681_v38  ;;  %v794_v58 = vmul.f32 %v681_v38, %v681_v38  ;;  %v687_v59 = vmax.f32 %v533_v51, 0.0  ;;  %v536_v61 = vpop.f32.mrb[6].mxu0  ;;  %v643_v62 = vpop.f32.mrb[4].mxu1  ;;  %v828_v0 = vadd.f32 %v796_v50, %v795_v43 }
 0x21c   :  { %v685_v60 = vmax.f32 %v640_v52, 0.0  ;;  %v824_v63 = vadd.f32 %v823_v41, %v793_v53  ;;  %718 = vst [vmem:[%s1475_s6 + $0x40] sm:$0xff] %v686_v55  ;;  %v1306_v31 = vmul.f32 %v686_v55, %v686_v55  ;;  %716 = vst [vmem:[%s1475_s6 + $0x30] sm:$0xff] %v684_v56  ;;  %v537_v1 = vadd.f32 %v536_v61, %v405_v54  ;;  %v538_v36 = vpop.f32.mrb[7].mxu0  ;;  %v645_v3 = vpop.f32.mrb[5].mxu1 }
 0x21d   :  { %v644_v2 = vadd.f32 %v643_v62, %v400_v33  ;;  %745 = vadd.xlane.f32.xlu0 %v744_v57  ;;  %v797_v4 = vmul.f32 %v684_v56, %v684_v56  ;;  %719 = vst [vmem:[%s1475_s6 + $0x48] sm:$0xff] %v687_v59  ;;  %v800_v5 = vmul.f32 %v687_v59, %v687_v59  ;;  %v420_v53 = vpop.permute.xlu0 %419 }
 0x21e   :  { %717 = vst [vmem:[%s1475_s6 + $0x38] sm:$0xff] %v685_v60  ;;  %v539_v6 = vadd.f32 %v538_v36, %v405_v54  ;;  %v646_v42 = vadd.f32 %v645_v3, %v400_v33  ;;  %v825_v44 = vadd.f32 %v824_v63, %v794_v58  ;;  %v690_v7 = vmax.f32 %v537_v1, 0.0 }
 0x21f   :  { %v688_v8 = vmax.f32 %v644_v2, 0.0  ;;  %v798_v10 = vmul.f32 %v685_v60, %v685_v60  ;;  %v829_v11 = vadd.f32 %v828_v0, %v797_v4  ;;  %v542_v13 = vpop.f32.mrb[8].mxu0  ;;  %v649_v18 = vpop.f32.mrb[6].mxu1  ;;  %v747_v19 = vadd.f32 %v683_v37, %v682_v34 }
 0x220   :  { %v691_v12 = vmax.f32 %v539_v6, 0.0  ;;  %v689_v15 = vmax.f32 %v646_v42, 0.0  ;;  %826 = vadd.xlane.f32.xlu1 %v825_v44  ;;  %v752_v20 = vadd.f32 %v687_v59, %v686_v55  ;;  %722 = vst [vmem:[%s1475_s6 + $0x60] sm:$0xff] %v690_v7  ;;  %v1320_v9 = vmul.f32 %v690_v7, %v690_v7  ;;  %v544_v23 = vpop.f32.mrb[9].mxu0  ;;  %v651_v24 = vpop.f32.mrb[7].mxu1 }
 0x221   :  { %720 = vst [vmem:[%s1475_s6 + $0x50] sm:$0xff] %v688_v8  ;;  %v543_v21 = vadd.f32 %v542_v13, %v410_v30  ;;  %v650_v22 = vadd.f32 %v649_v18, %v405_v54  ;;  %v830_v25 = vadd.f32 %v829_v11, %v798_v10  ;;  %v545_v14 = vadd.f32 %v544_v23, %v410_v30  ;;  %v425_v44 = vpop.permute.xlu1 %424 }
 0x222   :  { %723 = vst [vmem:[%s1475_s6 + $0x68] sm:$0xff] %v691_v12  ;;  %v1328_v26 = vmul.f32 %v691_v12, %v691_v12  ;;  %721 = vst [vmem:[%s1475_s6 + $0x58] sm:$0xff] %v689_v15  ;;  %v652_v17 = vadd.f32 %v651_v24, %v405_v54  ;;  %v748_v27 = vadd.f32 %v747_v19, %v684_v56 }
 0x223   :  { %v694_v28 = vmax.f32 %v543_v21, 0.0  ;;  %v692_v29 = vmax.f32 %v650_v22, 0.0  ;;  %831 = vadd.xlane.f32.xlu0 %v830_v25  ;;  %v753_v32 = vadd.f32 %v752_v20, %v688_v8  ;;  %v801_v33 = vmul.f32 %v688_v8, %v688_v8  ;;  %v548_v38 = vpop.f32.mrb[10].mxu0  ;;  %v655_v39 = vpop.f32.mrb[8].mxu1 }
 0x224   :  { %v695_v34 = vmax.f32 %v545_v14, 0.0  ;;  %v693_v35 = vmax.f32 %v652_v17, 0.0  ;;  %v749_v37 = vadd.f32 %v748_v27, %v685_v60  ;;  %v802_v40 = vmul.f32 %v689_v15, %v689_v15  ;;  %v550_v46 = vpop.f32.mrb[11].mxu0  ;;  %v657_v47 = vpop.f32.mrb[9].mxu1 }
 0x225   :  { %726 = vst [vmem:[%s1475_s6 + $0x80] sm:$0xff] %v694_v28  ;;  %v1336_v41 = vmul.f32 %v694_v28, %v694_v28  ;;  %724 = vst [vmem:[%s1475_s6 + $0x70] sm:$0xff] %v692_v29  ;;  %v549_v43 = vadd.f32 %v548_v38, %v415_v16  ;;  %v656_v45 = vadd.f32 %v655_v39, %v410_v30 }
 0x226   :  { %v754_v48 = vadd.f32 %v753_v32, %v689_v15  ;;  %727 = vst [vmem:[%s1475_s6 + $0x88] sm:$0xff] %v695_v34  ;;  %v1344_v49 = vmul.f32 %v695_v34, %v695_v34  ;;  %725 = vst [vmem:[%s1475_s6 + $0x78] sm:$0xff] %v693_v35  ;;  %750 = vadd.xlane.f32.xlu1 %v749_v37  ;;  %v551_v50 = vadd.f32 %v550_v46, %v415_v16 }
 0x227   :  { %v658_v51 = vadd.f32 %v657_v47, %v410_v30  ;;  %v833_v52 = vadd.f32 %v800_v5, %v1306_v31  ;;  %v1350_v54 = vmax.f32 %v549_v43, 0.0  ;;  %v696_v55 = vmax.f32 %v656_v45, 0.0  ;;  %v554_v61 = vpop.f32.mrb[12].mxu0  ;;  %v661_v62 = vpop.f32.mrb[10].mxu1 }
 0x228   :  { %755 = vadd.xlane.f32.xlu0 %v754_v48  ;;  %v757_v56 = vadd.f32 %v691_v12, %v690_v7  ;;  %v762_v57 = vadd.f32 %v695_v34, %v694_v28  ;;  %v699_v58 = vmax.f32 %v551_v50, 0.0  ;;  %v805_v63 = vmul.f32 %v692_v29, %v692_v29  ;;  %v556_v2 = vpop.f32.mrb[13].mxu0  ;;  %v663_v36 = vpop.f32.mrb[11].mxu1 }
 0x229   :  { %v697_v59 = vmax.f32 %v658_v51, 0.0  ;;  %v834_v60 = vadd.f32 %v833_v52, %v801_v33  ;;  %730 = vst [vmem:[%s1475_s6 + $0xa0] sm:$0xff] %v1350_v54  ;;  %v1358_v0 = vmul.f32 %v1350_v54, %v1350_v54  ;;  %728 = vst [vmem:[%s1475_s6 + $0x90] sm:$0xff] %v696_v55  ;;  %v555_v31 = vadd.f32 %v554_v61, %v420_v53 }
 0x22a   :  { %v662_v1 = vadd.f32 %v661_v62, %v415_v16  ;;  %v758_v3 = vadd.f32 %v757_v56, %v692_v29  ;;  %731 = vst [vmem:[%s1475_s6 + $0xa8] sm:$0xff] %v699_v58  ;;  %v812_v4 = vmul.f32 %v699_v58, %v699_v58  ;;  %v557_v6 = vadd.f32 %v556_v2, %v420_v53 }
 0x22b   :  { %729 = vst [vmem:[%s1475_s6 + $0x98] sm:$0xff] %v697_v59  ;;  %v835_v5 = vadd.f32 %v834_v60, %v802_v40  ;;  %v664_v42 = vadd.f32 %v663_v36, %v415_v16  ;;  %v702_v30 = vmax.f32 %v555_v31, 0.0  ;;  %v763_v10 = vadd.f32 %v762_v57, %v696_v55  ;;  %v560_v15 = vpop.f32.mrb[14].mxu0  ;;  %v667_v13 = vpop.f32.mrb[12].mxu1 }
 0x22c   :  { %v700_v7 = vmax.f32 %v662_v1, 0.0  ;;  %v759_v8 = vadd.f32 %v758_v3, %v693_v35  ;;  %v703_v11 = vmax.f32 %v557_v6, 0.0  ;;  %v806_v18 = vmul.f32 %v693_v35, %v693_v35  ;;  %v562_v23 = vpop.f32.mrb[15].mxu0  ;;  %v669_v24 = vpop.f32.mrb[13].mxu1 }
 0x22d   :  { %836 = vadd.xlane.f32.xlu1 %v835_v5  ;;  %v701_v12 = vmax.f32 %v664_v42, 0.0  ;;  %v838_v19 = vadd.f32 %v1328_v26, %v1320_v9  ;;  %734 = vst [vmem:[%s1475_s6 + $0xc0] sm:$0xff] %v702_v30  ;;  %v815_v20 = vmul.f32 %v702_v30, %v702_v30  ;;  %v561_v21 = vadd.f32 %v560_v15, %v425_v44 }
 0x22e   :  { %732 = vst [vmem:[%s1475_s6 + $0xb0] sm:$0xff] %v700_v7  ;;  %760 = vadd.xlane.f32.xlu0 %v759_v8  ;;  %v668_v22 = vadd.f32 %v667_v13, %v420_v53  ;;  %v764_v25 = vadd.f32 %v763_v10, %v697_v59  ;;  %735 = vst [vmem:[%s1475_s6 + $0xc8] sm:$0xff] %v703_v11  ;;  %v816_v9 = vmul.f32 %v703_v11, %v703_v11 }
 0x22f   :  { %733 = vst [vmem:[%s1475_s6 + $0xb8] sm:$0xff] %v701_v12  ;;  %v563_v26 = vadd.f32 %v562_v23, %v425_v44  ;;  %v670_v14 = vadd.f32 %v669_v24, %v420_v53  ;;  %v839_v17 = vadd.f32 %v838_v19, %v805_v63  ;;  %v706_v27 = vmax.f32 %v561_v21, 0.0  ;;  %v673_v35 = vpop.f32.mrb[14].mxu1 }
 0x230   :  { %v704_v16 = vmax.f32 %v668_v22, 0.0  ;;  %v809_v28 = vmul.f32 %v696_v55, %v696_v55  ;;  %v810_v29 = vmul.f32 %v697_v59, %v697_v59  ;;  %v843_v37 = vadd.f32 %v1344_v49, %v1336_v41  ;;  %v675_v40 = vpop.f32.mrb[15].mxu1 }
 0x231   :  { %v707_v32 = vmax.f32 %v563_v26, 0.0  ;;  %v705_v33 = vmax.f32 %v670_v14, 0.0  ;;  %765 = vadd.xlane.f32.xlu1 %v764_v25  ;;  %v840_v34 = vadd.f32 %v839_v17, %v806_v18  ;;  %738 = vst [vmem:[%s1475_s6 + $0xe0] sm:$0xff] %v706_v27  ;;  %v819_v38 = vmul.f32 %v706_v27, %v706_v27 }
 0x232   :  { %736 = vst [vmem:[%s1475_s6 + $0xd0] sm:$0xff] %v704_v16  ;;  %v674_v39 = vadd.f32 %v673_v35, %v425_v44  ;;  %v767_v43 = vadd.f32 %v699_v58, %v1350_v54  ;;  %v772_v45 = vadd.f32 %v703_v11, %v702_v30  ;;  %v676_v41 = vadd.f32 %v675_v40, %v425_v44 }
 0x233   :  { %739 = vst [vmem:[%s1475_s6 + $0xe8] sm:$0xff] %v707_v32  ;;  %v820_v46 = vmul.f32 %v707_v32, %v707_v32  ;;  %737 = vst [vmem:[%s1475_s6 + $0xd8] sm:$0xff] %v705_v33  ;;  %841 = vadd.xlane.f32.xlu0 %v840_v34  ;;  %v844_v47 = vadd.f32 %v843_v37, %v809_v28  ;;  %v813_v48 = vmul.f32 %v700_v7, %v700_v7 }
 0x234   :  { %v708_v49 = vmax.f32 %v674_v39, 0.0  ;;  %v768_v50 = vadd.f32 %v767_v43, %v700_v7  ;;  %v773_v51 = vadd.f32 %v772_v45, %v704_v16  ;;  %v814_v52 = vmul.f32 %v701_v12, %v701_v12 }
 0x235   :  { %v709_v53 = vmax.f32 %v676_v41, 0.0  ;;  %v845_v54 = vadd.f32 %v844_v47, %v810_v29  ;;  %v848_v55 = vadd.f32 %v812_v4, %v1358_v0  ;;  %v817_v56 = vmul.f32 %v704_v16, %v704_v16 }
 0x236   :  { %740 = vst [vmem:[%s1475_s6 + $0xf0] sm:$0xff] %v708_v49  ;;  %v769_v57 = vadd.f32 %v768_v50, %v701_v12  ;;  %v774_v58 = vadd.f32 %v773_v51, %v705_v33  ;;  %v818_v59 = vmul.f32 %v705_v33, %v705_v33  ;;  %v853_v60 = vadd.f32 %v816_v9, %v815_v20 }
 0x237   :  { %741 = vst [vmem:[%s1475_s6 + $0xf8] sm:$0xff] %v709_v53  ;;  %846 = vadd.xlane.f32.xlu1 %v845_v54  ;;  %v849_v61 = vadd.f32 %v848_v55, %v813_v48  ;;  %v777_v62 = vadd.f32 %v707_v32, %v706_v27  ;;  %v821_v63 = vmul.f32 %v708_v49, %v708_v49 }
 0x238   :  { %770 = vadd.xlane.f32.xlu0 %v769_v57  ;;  %v854_v31 = vadd.f32 %v853_v60, %v817_v56  ;;  %v822_v0 = vmul.f32 %v709_v53, %v709_v53  ;;  %v858_v1 = vadd.f32 %v820_v46, %v819_v38 }
 0x239   :  { %v850_v2 = vadd.f32 %v849_v61, %v814_v52  ;;  %v778_v36 = vadd.f32 %v777_v62, %v708_v49 }
 0x23a   :  { %v855_v3 = vadd.f32 %v854_v31, %v818_v59  ;;  %v859_v4 = vadd.f32 %v858_v1, %v821_v63 }
 0x23b   :  { %775 = vadd.xlane.f32.xlu1 %v774_v58  ;;  %v779_v5 = vadd.f32 %v778_v36, %v709_v53 }
 0x23c   :  { %851 = vadd.xlane.f32.xlu0 %v850_v2  ;;  %v860_v6 = vadd.f32 %v859_v4, %v822_v0 }
 0x23f   :  { %856 = vadd.xlane.f32.xlu1 %v855_v3 }
 0x240   :  { %780 = vadd.xlane.f32.xlu0 %v779_v5 }
 0x244   :  { %861 = vadd.xlane.f32.xlu0 %v860_v6 }
 0x2aa   :  { %v746_v42 = vpop.xlane.xlu0 %745 }
 0x2ab   :  { %783 = vst.msk [vmem:[%s1476_s7] sm:$0xff] %vm782_vm9, %v746_v42 }
 0x2ad   :  { %v827_v44 = vpop.xlane.xlu1 %826 }
 0x2ae   :  { %863 = vst.msk [vmem:[%s1477_s8] sm:$0xff] %vm782_vm9, %v827_v44 }
 0x2b0   :  { %v832_v30 = vpop.xlane.xlu0 %831 }
 0x2b1   :  { %864 = vst.msk [vmem:[%s1477_s8 + $0x8] sm:$0xff] %vm782_vm9, %v832_v30 }
 0x2b3   :  { %v751_v7 = vpop.xlane.xlu1 %750 }
 0x2b4   :  { %784 = vst.msk [vmem:[%s1476_s7 + $0x8] sm:$0xff] %vm782_vm9, %v751_v7 }
 0x2b5   :  { %v756_v8 = vpop.xlane.xlu0 %755 }
 0x2b6   :  { %785 = vst.msk [vmem:[%s1476_s7 + $0x10] sm:$0xff] %vm782_vm9, %v756_v8 }
 0x2ba   :  { %v837_v10 = vpop.xlane.xlu1 %836 }
 0x2bb   :  { %865 = vst.msk [vmem:[%s1477_s8 + $0x10] sm:$0xff] %vm782_vm9, %v837_v10  ;;  %v761_v11 = vpop.xlane.xlu0 %760 }
 0x2bc   :  { %786 = vst.msk [vmem:[%s1476_s7 + $0x18] sm:$0xff] %vm782_vm9, %v761_v11 }
 0x2be   :  { %v766_v12 = vpop.xlane.xlu1 %765 }
 0x2bf   :  { %787 = vst.msk [vmem:[%s1476_s7 + $0x20] sm:$0xff] %vm782_vm9, %v766_v12 }
 0x2c0   :  { %v842_v15 = vpop.xlane.xlu0 %841 }
 0x2c1   :  { %866 = vst.msk [vmem:[%s1477_s8 + $0x18] sm:$0xff] %vm782_vm9, %v842_v15 }
 0x2c4   :  { %v847_v13 = vpop.xlane.xlu1 %846 }
 0x2c5   :  { %867 = vst.msk [vmem:[%s1477_s8 + $0x20] sm:$0xff] %vm782_vm9, %v847_v13  ;;  %v771_v18 = vpop.xlane.xlu0 %770 }
 0x2c6   :  { %788 = vst.msk [vmem:[%s1476_s7 + $0x28] sm:$0xff] %vm782_vm9, %v771_v18 }
 0x2c8   :  { %v776_v19 = vpop.xlane.xlu1 %775 }
 0x2c9   :  { %789 = vst.msk [vmem:[%s1476_s7 + $0x30] sm:$0xff] %vm782_vm9, %v776_v19  ;;  %v852_v20 = vpop.xlane.xlu0 %851 }
 0x2ca   :  { %868 = vst.msk [vmem:[%s1477_s8 + $0x28] sm:$0xff] %vm782_vm9, %v852_v20 }
 0x2cc   :  { %v857_v21 = vpop.xlane.xlu1 %856 }
 0x2cd   :  { %869 = vst.msk [vmem:[%s1477_s8 + $0x30] sm:$0xff] %vm782_vm9, %v857_v21  ;;  %v781_v22 = vpop.xlane.xlu0 %780 }
 0x2ce   :  { %790 = vst.msk [vmem:[%s1476_s7 + $0x38] sm:$0xff] %vm782_vm9, %v781_v22 }
 0x2d1   :  { %v862_v23 = vpop.xlane.xlu0 %861 }
 0x2d2   :  { %870 = vst.msk [vmem:[%s1477_s8 + $0x38] sm:$0xff] %vm782_vm9, %v862_v23 }

// kernel: duckv2_forward.30
= control target key start
LH: loop header
LB: loop body
LE: loop exit
PB: predicated region body
PF: predicated region fallthrough
CT: control target
= control target key end

     0   :  { %v112_v0 = vmov 0   ;;  %vm83_vm0 = vcmask 7168   ;;  %s202_s2 = inlined_call_operand.vmem [shape: f32[2,8,1], index: 2, kind: input, shape index: {}]   ;;  %s203_s3 = inlined_call_operand.vmem [shape: f32[2,8,1], index: 3, kind: input, shape index: {}]   ;;  %s204_s1 = inlined_call_operand.vmem [shape: f32[8,512], index: 1, kind: input, shape index: {}]   ;;  %s205_s0 = inlined_call_operand.vmem [shape: f32[8,512], index: 0, kind: input, shape index: {}]   ;;  %s206_s4 = inlined_call_operand.vmem [shape: f32[8,512], index: 4, kind: output, shape index: {0}]   ;;  %s207_s5 = inlined_call_operand.vmem [shape: f32[8,1], index: 5, kind: output, shape index: {1}]   ;;  %s208_s6 = inlined_call_operand.vmem [shape: f32[8,1], index: 6, kind: output, shape index: {2}]  }
   0x1   :  { %111 = vset.pattern.permute.xlu1 %v112_v0  ;;  %110 = vset.pattern.permute.xlu0 %v112_v0  ;;  %v107_v1 = vld [vmem:[%s202_s2 + $0x8] sm:$0xff]  ;;  %v24_v2 = vld [vmem:[%s202_s2] sm:$0xff]  ;;  %v46_v7 = vld [vmem:[%s204_s1 + $0x10] sm:$0xff] }
   0x2   :  { %52 = vperm.xlu1 %111, %v107_v1   ;;  %27 = vperm.xlu0 %110, %v24_v2   ;;  %v108_v3 = vld [vmem:[%s203_s3 + $0x8] sm:$0xff]  ;;  %v34_v4 = vld [vmem:[%s203_s3] sm:$0xff]  ;;  %v47_v8 = vld [vmem:[%s204_s1 + $0x18] sm:$0xff] }
   0x3   :  { %v44_v5 = vld [vmem:[%s204_s1] sm:$0xff]  ;;  %v45_v6 = vld [vmem:[%s204_s1 + $0x8] sm:$0xff]  ;;  %v22_v12 = vld [vmem:[%s205_s0 + $0x10] sm:$0xff] }
   0x4   :  { %v20_v9 = vld [vmem:[%s205_s0] sm:$0xff]  ;;  %v21_v11 = vld [vmem:[%s205_s0 + $0x8] sm:$0xff]  ;;  %v23_v13 = vld [vmem:[%s205_s0 + $0x18] sm:$0xff] }
   0x6   :  { %67 = vperm.xlu1 %111, %v108_v3   ;;  %37 = vperm.xlu0 %110, %v34_v4  }
  0x81   :  { %v28_v10 = vpop.permute.xlu0 %27  ;;  %v53_v14 = vpop.permute.xlu1 %52 }
  0x82   :  { %v55_v15 = vmul.f32 %v53_v14, %v44_v5  ;;  %v56_v16 = vmul.f32 %v53_v14, %v45_v6  ;;  %v57_v17 = vmul.f32 %v53_v14, %v46_v7  ;;  %v58_v18 = vmul.f32 %v53_v14, %v47_v8 }
  0x83   :  { %v30_v19 = vmul.f32 %v28_v10, %v20_v9  ;;  %v31_v20 = vmul.f32 %v28_v10, %v21_v11  ;;  %v32_v21 = vmul.f32 %v28_v10, %v22_v12  ;;  %v33_v22 = vmul.f32 %v28_v10, %v23_v13 }
  0x85   :  { %v38_v23 = vpop.permute.xlu0 %37  ;;  %v68_v32 = vpop.permute.xlu1 %67 }
  0x86   :  { %v40_v24 = vadd.f32 %v38_v23, %v30_v19  ;;  %v41_v25 = vadd.f32 %v38_v23, %v31_v20  ;;  %v42_v26 = vadd.f32 %v38_v23, %v32_v21  ;;  %v43_v27 = vadd.f32 %v38_v23, %v33_v22 }
  0x88   :  { %v59_v28 = vadd.f32 %v55_v15, %v40_v24  ;;  %v60_v29 = vadd.f32 %v56_v16, %v41_v25  ;;  %v61_v30 = vadd.f32 %v57_v17, %v42_v26  ;;  %v62_v31 = vadd.f32 %v58_v18, %v43_v27 }
  0x8a   :  { %v70_v33 = vadd.f32 %v68_v32, %v59_v28  ;;  %v71_v34 = vadd.f32 %v68_v32, %v60_v29  ;;  %v72_v35 = vadd.f32 %v68_v32, %v61_v30  ;;  %v73_v36 = vadd.f32 %v68_v32, %v62_v31 }
  0x8c   :  { %74 = vst [vmem:[%s206_s4] sm:$0xff] %v70_v33  ;;  %75 = vst [vmem:[%s206_s4 + $0x8] sm:$0xff] %v71_v34  ;;  %v78_v37 = vadd.f32 %v71_v34, %v70_v33  ;;  %v85_v38 = vmul.f32 %v70_v33, %v70_v33  ;;  %v86_v39 = vmul.f32 %v71_v34, %v71_v34 }
  0x8d   :  { %76 = vst [vmem:[%s206_s4 + $0x10] sm:$0xff] %v72_v35  ;;  %77 = vst [vmem:[%s206_s4 + $0x18] sm:$0xff] %v73_v36  ;;  %v87_v41 = vmul.f32 %v72_v35, %v72_v35  ;;  %v88_v44 = vmul.f32 %v73_v36, %v73_v36 }
  0x8e   :  { %v79_v40 = vadd.f32 %v78_v37, %v72_v35  ;;  %v89_v42 = vadd.f32 %v86_v39, %v85_v38 }
  0x90   :  { %v80_v43 = vadd.f32 %v79_v40, %v73_v36  ;;  %v90_v45 = vadd.f32 %v89_v42, %v87_v41 }
  0x92   :  { %81 = vadd.xlane.f32.xlu0 %v80_v43  ;;  %v91_v46 = vadd.f32 %v90_v45, %v88_v44 }
  0x94   :  { %92 = vadd.xlane.f32.xlu1 %v91_v46 }
 0x11f   :  { %v82_v47 = vpop.xlane.xlu0 %81 }
 0x120   :  { %84 = vst.msk [vmem:[%s207_s5] sm:$0xff] %vm83_vm0, %v82_v47 }
 0x121   :  { %v93_v48 = vpop.xlane.xlu1 %92 }
 0x122   :  { %94 = vst.msk [vmem:[%s208_s6] sm:$0xff] %vm83_vm0, %v93_v48 }

// kernel: duckv2_forward.27
= control target key start
LH: loop header
LB: loop body
LE: loop exit
PB: predicated region body
PF: predicated region fallthrough
CT: control target
= control target key end

     0   :  { %v613_v0 = vmov 0   ;;  %s616_s17 = smov 45   ;;  %s618_s18 = smov 125   ;;  %v621_v17 = vmov 0.0   ;;  %v58_v19 = vlaneseq  ;;  %vm378_vm8 = vcmask 588800   ;;  %s892_s1 = inlined_call_operand.vmem [shape: f32[8,1], index: 1, kind: input, shape index: {}]   ;;  %s893_s2 = inlined_call_operand.vmem [shape: f32[8,1], index: 2, kind: input, shape index: {}]   ;;  %s894_s0 = inlined_call_operand.vmem [shape: f32[8,512], index: 0, kind: input, shape index: {}]   ;;  %s895_s5 = inlined_call_operand.vmem [shape: f32[8,1], index: 5, kind: input, shape index: {}]   ;;  %s896_s3 = inlined_call_operand.vmem [shape: f32[9,1,512], index: 3, kind: input, shape index: {}]   ;;  %s897_s4 = inlined_call_operand.vmem [shape: f32[8,72], index: 4, kind: input, shape index: {}]   ;;  %s898_s6 = inlined_call_operand.vmem [shape: f32[8,512], index: 6, kind: output, shape index: {0}]   ;;  %s899_s7 = inlined_call_operand.vmem [shape: f32[8,1], index: 7, kind: output, shape index: {1}]   ;;  %s900_s8 = inlined_call_operand.vmem [shape: f32[8,1], index: 8, kind: output, shape index: {2}]  }
   0x1   :  { %612 = vset.pattern.permute.xlu0 %v613_v0  ;;  %v30_v1 = vld [vmem:[%s892_s1] sm:$0xff]  ;;  %v27_v6 = vld [vmem:[%s894_s0 + $0x8] sm:$0xff]  ;;  %v29_v7 = vld [vmem:[%s894_s0 + $0x18] sm:$0xff]  ;;  %s614_s1 = smov 48   ;;  %s619_s19 = smov 83   ;;  %446 = vmatprep.mubr.f32.mxu0 %v621_v17  ;;  %vm537_vm9 = vcmask 7168  }
   0x2   :  { %33 = vperm.xlu0 %612, %v30_v1   ;;  %v40_v2 = vld [vmem:[%s893_s2] sm:$0xff]  ;;  %s615_s2 = smov 51   ;;  %v28_v12 = vld [vmem:[%s894_s0 + $0x10] sm:$0xff]  ;;  %s620_s20 = smov 80   ;;  %517 = vmatprep.mubr.f32.mxu1 %v621_v17  ;;  %v68_v20 = vshrl.u32 %v58_v19, 7  ;;  %v729_v23 = vand.u32 127, %v58_v19 }
   0x3   :  { %v26_v4 = vld [vmem:[%s894_s0] sm:$0xff]  ;;  %s617_s0 = smov 3   ;;  %s622_s21 = smov 77   ;;  %v562_v0 = vld [vmem:[%s896_s3 + $0x8] sm:$0xf] }
   0x4   :  { %v372_v18 = vld [vmem:[%s895_s5] sm:$0xff]  ;;  %v731_v24 = vsub.s32 1, %v68_v20  ;;  %vm60_vm0 = vcmp.lt.s32.totalorder %v729_v23, 51  ;;  %v740_v29 = vsub.s32 0, %v68_v20  ;;  %vm99_vm1 = vcmp.lt.s32.totalorder %v729_v23, 48 }
   0x5   :  { %v65_v25 = vld [vmem:[%s896_s3] sm:$0xf]  ;;  %v561_v26 = vld [vmem:[%s896_s3 + $0x4] sm:$0xf]  ;;  %v747_v35 = vsub.s32 2, %v68_v20  ;;  %v751_v37 = vsub.s32 3, %v68_v20 }
   0x6   :  { %43 = vperm.xlu0 %612, %v40_v2   ;;  %v74_v30 = vrot.slane %v65_v25, %v731_v24  ;;  %v114_v31 = vrot.slane %v561_v26, %v731_v24  ;;  %v70_v38 = vrot.slane %v65_v25, %v740_v29  ;;  %v110_v39 = vrot.slane %v561_v26, %v740_v29  ;;  %v563_v1 = vld [vmem:[%s896_s3 + $0xc] sm:$0xf] }
   0x7   :  { %v78_v46 = vrot.slane %v65_v25, %v747_v35  ;;  %v82_v48 = vrot.slane %v65_v25, %v751_v37  ;;  %v118_v51 = vrot.slane %v561_v26, %v747_v35  ;;  %v122_v52 = vrot.slane %v561_v26, %v751_v37 }
   0x8   :  { %vm139_vm2 = vcmp.lt.s32.totalorder %v729_v23, 45  ;;  %vm179_vm3 = vcmp.lt.s32.totalorder %v729_v23, 3  ;;  %v190_v19 = vrot.slane %v563_v1, %v740_v29  ;;  %v158_v26 = vrot.slane %v562_v0, %v747_v35 }
   0x9   :  { %vm219_vm4 = vcmp.lt.s32.totalorder %v729_v23, 125  ;;  %vm259_vm5 = vcmp.lt.s32.totalorder %v729_v23, 83  ;;  %vm299_vm6 = vcmp.lt.s32.totalorder %v729_v23, 80  ;;  %vm339_vm7 = vcmp.lt.s32.totalorder %v729_v23, 77 }
  0x81   :  { %v34_v3 = vpop.permute.xlu0 %33 }
  0x82   :  { %v36_v5 = vmul.f32 %v34_v3, %v26_v4  ;;  %v37_v10 = vmul.f32 %v34_v3, %v27_v6  ;;  %v39_v11 = vmul.f32 %v34_v3, %v29_v7  ;;  %v38_v15 = vmul.f32 %v34_v3, %v28_v12 }
  0x83   :  { %v154_v6 = vrot.slane %v562_v0, %v731_v24  ;;  %v194_v7 = vrot.slane %v563_v1, %v731_v24 }
  0x85   :  { %v44_v8 = vpop.permute.xlu0 %43 }
  0x86   :  { %v683_v9 = vadd.f32 %v44_v8, %v36_v5  ;;  %v690_v13 = vadd.f32 %v44_v8, %v37_v10  ;;  %v692_v14 = vadd.f32 %v44_v8, %v39_v11  ;;  %v696_v16 = vadd.f32 %v44_v8, %v38_v15 }
  0x87   :  { %v150_v15 = vrot.slane %v562_v0, %v740_v29 }
  0x88   :  { %91 = vrot.lane.b32.xlu0 %v683_v9, %s614_s1  ;;  %50 = vrot.lane.b32.xlu1 %v683_v9, %s615_s2 }
  0x8c   :  { %56 = vrot.lane.b32.xlu0 %v692_v14, %s615_s2  ;;  %52 = vrot.lane.b32.xlu1 %v690_v13, %s615_s2 }
  0x90   :  { %54 = vrot.lane.b32.xlu0 %v696_v16, %s615_s2  ;;  %93 = vrot.lane.b32.xlu1 %v690_v13, %s614_s1 }
  0x94   :  { %131 = vrot.lane.b32.xlu0 %v683_v9, %s616_s17  ;;  %97 = vrot.lane.b32.xlu1 %v692_v14, %s614_s1 }
  0x98   :  { %171 = vrot.lane.b32.xlu0 %v683_v9, %s617_s0  ;;  %95 = vrot.lane.b32.xlu1 %v696_v16, %s614_s1 }
  0x9c   :  { %137 = vrot.lane.b32.xlu0 %v692_v14, %s616_s17  ;;  %133 = vrot.lane.b32.xlu1 %v690_v13, %s616_s17 }
  0xa0   :  { %135 = vrot.lane.b32.xlu0 %v696_v16, %s616_s17  ;;  %173 = vrot.lane.b32.xlu1 %v690_v13, %s617_s0 }
  0xa4   :  { %213 = vrot.lane.b32.xlu0 %v690_v13, %s618_s18  ;;  %177 = vrot.lane.b32.xlu1 %v692_v14, %s617_s0 }
  0xa8   :  { %211 = vrot.lane.b32.xlu0 %v683_v9, %s618_s18  ;;  %175 = vrot.lane.b32.xlu1 %v696_v16, %s617_s0 }
  0xac   :  { %253 = vrot.lane.b32.xlu0 %v690_v13, %s619_s19  ;;  %215 = vrot.lane.b32.xlu1 %v696_v16, %s618_s18 }
  0xb0   :  { %293 = vrot.lane.b32.xlu0 %v690_v13, %s620_s20  ;;  %217 = vrot.lane.b32.xlu1 %v692_v14, %s618_s18 }
  0xb4   :  { %251 = vrot.lane.b32.xlu0 %v683_v9, %s619_s19  ;;  %255 = vrot.lane.b32.xlu1 %v696_v16, %s619_s19 }
  0xb8   :  { %257 = vrot.lane.b32.xlu0 %v692_v14, %s619_s19  ;;  %295 = vrot.lane.b32.xlu1 %v696_v16, %s620_s20 }
  0xbc   :  { %333 = vrot.lane.b32.xlu0 %v690_v13, %s622_s21  ;;  %291 = vrot.lane.b32.xlu1 %v683_v9, %s620_s20 }
  0xc0   :  { %331 = vrot.lane.b32.xlu0 %v683_v9, %s622_s21  ;;  %297 = vrot.lane.b32.xlu1 %v692_v14, %s620_s20 }
  0xc4   :  { %375 = vperm.xlu0 %612, %v372_v18   ;;  %335 = vrot.lane.b32.xlu1 %v696_v16, %s622_s21 }
  0xc8   :  { %337 = vrot.lane.b32.xlu1 %v692_v14, %s622_s21 }
  0xfa   :  { %v92_v21 = vpop.permute.xlu0 %91  ;;  %v51_v22 = vpop.permute.xlu1 %50 }
  0xfe   :  { %v57_v27 = vpop.permute.xlu0 %56  ;;  %v53_v28 = vpop.permute.xlu1 %52 }
  0xff   :  { %v63_v32 = vsel %vm60_vm0, %v51_v22, %v53_v28  ;;  %v64_v42 = vsel %vm60_vm0, %v57_v27, %v51_v22 }
 0x100   :  { %v88_v40 = vmul.f32 %v74_v30, %v63_v32  ;;  %v87_v49 = vmul.f32 %v70_v38, %v64_v42  ;;  %v564_v30 = vld [vmem:[%s896_s3 + $0x14] sm:$0xf] }
 0x102   :  { %v55_v33 = vpop.permute.xlu0 %54  ;;  %v94_v34 = vpop.permute.xlu1 %93 }
 0x103   :  { %v102_v36 = vsel %vm99_vm1, %v92_v21, %v94_v34  ;;  %v61_v53 = vsel %vm60_vm0, %v55_v33, %v57_v27  ;;  %v62_v54 = vsel %vm60_vm0, %v53_v28, %v55_v33  ;;  %v162_v27 = vrot.slane %v562_v0, %v751_v37 }
 0x104   :  { %v128_v41 = vmul.f32 %v114_v31, %v102_v36  ;;  %v89_v60 = vmul.f32 %v78_v46, %v62_v54  ;;  %v90_v62 = vmul.f32 %v82_v48, %v61_v53  ;;  %v198_v31 = vrot.slane %v563_v1, %v747_v35 }
 0x105   :  { %v202_v36 = vrot.slane %v563_v1, %v751_v37  ;;  %v234_v46 = vrot.slane %v564_v30, %v731_v24 }
 0x106   :  { %v132_v43 = vpop.permute.xlu0 %131  ;;  %v98_v44 = vpop.permute.xlu1 %97  ;;  %v570_v45 = vpack.c.bf16 %v128_v41, %v88_v40 }
 0x107   :  { %v103_v47 = vsel %vm99_vm1, %v98_v44, %v92_v21 }
 0x108   :  { %v127_v50 = vmul.f32 %v110_v39, %v103_v47  ;;  %571 = vmatprep.subr.bf16.mxu0 %v570_v45  ;;  %v230_v39 = vrot.slane %v564_v30, %v740_v29 }
 0x10a   :  { %v172_v55 = vpop.permute.xlu0 %171  ;;  %v96_v56 = vpop.permute.xlu1 %95  ;;  %v572_v57 = vpack.c.bf16 %v127_v50, %v87_v49 }
 0x10b   :  { %v100_v58 = vsel %vm99_vm1, %v96_v56, %v98_v44  ;;  %v101_v59 = vsel %vm99_vm1, %v94_v34, %v96_v56 }
 0x10c   :  { %v129_v61 = vmul.f32 %v118_v51, %v101_v59  ;;  %573 = vmatpush1.bf16.msra.mxu0 %v572_v57  ;;  %v130_v63 = vmul.f32 %v122_v52, %v100_v58  ;;  %v238_v58 = vrot.slane %v564_v30, %v747_v35  ;;  %v242_v59 = vrot.slane %v564_v30, %v751_v37 }
 0x10e   :  { %v138_v2 = vpop.permute.xlu0 %137  ;;  %v134_v3 = vpop.permute.xlu1 %133  ;;  %v586_v4 = vpack.c.bf16 %v130_v63, %v90_v62  ;;  %v588_v5 = vpack.c.bf16 %v129_v61, %v89_v60 }
 0x10f   :  { %v142_v8 = vsel %vm139_vm2, %v132_v43, %v134_v3  ;;  %v143_v20 = vsel %vm139_vm2, %v138_v2, %v132_v43 }
 0x110   :  { %587 = vmatprep.subr.bf16.mxu1 %v586_v4  ;;  %v168_v17 = vmul.f32 %v154_v6, %v142_v8  ;;  %v167_v32 = vmul.f32 %v150_v15, %v143_v20  ;;  %v565_v4 = vld [vmem:[%s896_s3 + $0x18] sm:$0xf] }
 0x111   :  { %589 = vmatpush1.bf16.msra.mxu1 %v588_v5  ;;  %v274_v8 = vrot.slane %v565_v4, %v731_v24 }
 0x112   :  { %v136_v10 = vpop.permute.xlu0 %135  ;;  %v174_v11 = vpop.permute.xlu1 %173 }
 0x113   :  { %v182_v12 = vsel %vm179_vm3, %v172_v55, %v174_v11  ;;  %v141_v33 = vsel %vm139_vm2, %v134_v3, %v136_v10  ;;  %v140_v38 = vsel %vm139_vm2, %v136_v10, %v138_v2 }
 0x114   :  { %v208_v18 = vmul.f32 %v194_v7, %v182_v12  ;;  %v169_v43 = vmul.f32 %v158_v26, %v141_v33  ;;  %v170_v47 = vmul.f32 %v162_v27, %v140_v38  ;;  %v278_v26 = vrot.slane %v565_v4, %v747_v35  ;;  %v567_v38 = vld [vmem:[%s896_s3 + $0x20] sm:$0xf] }
 0x115   :  { %v282_v27 = vrot.slane %v565_v4, %v751_v37 }
 0x116   :  { %v214_v21 = vpop.permute.xlu0 %213  ;;  %v178_v22 = vpop.permute.xlu1 %177  ;;  %v574_v25 = vpack.c.bf16 %v208_v18, %v168_v17 }
 0x117   :  { %v183_v28 = vsel %vm179_vm3, %v178_v22, %v172_v55 }
 0x118   :  { %v207_v34 = vmul.f32 %v190_v19, %v183_v28  ;;  %575 = vmatprep.subr.bf16.mxu0 %v574_v25 }
 0x11a   :  { %v212_v40 = vpop.permute.xlu0 %211  ;;  %v176_v41 = vpop.permute.xlu1 %175  ;;  %v576_v42 = vpack.c.bf16 %v207_v34, %v167_v32 }
 0x11b   :  { %v180_v44 = vsel %vm179_vm3, %v176_v41, %v178_v22  ;;  %v181_v45 = vsel %vm179_vm3, %v174_v11, %v176_v41  ;;  %v222_v48 = vsel %vm219_vm4, %v212_v40, %v214_v21 }
 0x11c   :  { %v209_v49 = vmul.f32 %v198_v31, %v181_v45  ;;  %v210_v50 = vmul.f32 %v202_v36, %v180_v44  ;;  %577 = vmatpush1.bf16.msra.mxu0 %v576_v42  ;;  %v247_v55 = vmul.f32 %v230_v39, %v222_v48  ;;  %v354_v44 = vrot.slane %v567_v38, %v731_v24 }
 0x11e   :  { %v254_v51 = vpop.permute.xlu0 %253  ;;  %v216_v52 = vpop.permute.xlu1 %215  ;;  %v590_v53 = vpack.c.bf16 %v210_v50, %v170_v47  ;;  %v592_v54 = vpack.c.bf16 %v209_v49, %v169_v43  ;;  %v580_v1 = vpack.c.bf16 %v247_v55, %v683_v9  ;;  %v350_v49 = vrot.slane %v567_v38, %v740_v29 }
 0x11f   :  { %v221_v56 = vsel %vm219_vm4, %v214_v21, %v216_v52 }
 0x120   :  { %v248_v57 = vmul.f32 %v234_v46, %v221_v56  ;;  %591 = vmatprep.subr.bf16.mxu1 %v590_v53  ;;  %v362_v56 = vrot.slane %v567_v38, %v751_v37 }
 0x121   :  { %593 = vmatpush1.bf16.msra.mxu1 %v592_v54 }
 0x122   :  { %v294_v60 = vpop.permute.xlu0 %293  ;;  %v218_v61 = vpop.permute.xlu1 %217  ;;  %v578_v62 = vpack.c.bf16 %v248_v57, %v690_v13  ;;  %v566_v13 = vld [vmem:[%s896_s3 + $0x1c] sm:$0xf] }
 0x123   :  { %v220_v63 = vsel %vm219_vm4, %v216_v52, %v218_v61  ;;  %v223_v0 = vsel %vm219_vm4, %v218_v61, %v212_v40  ;;  %v314_v10 = vrot.slane %v566_v13, %v731_v24  ;;  %v310_v19 = vrot.slane %v566_v13, %v740_v29 }
 0x124   :  { %v249_v2 = vmul.f32 %v238_v58, %v220_v63  ;;  %v250_v3 = vmul.f32 %v242_v59, %v223_v0  ;;  %579 = vmatprep.subr.bf16.mxu0 %v578_v62  ;;  %v318_v32 = vrot.slane %v566_v13, %v747_v35  ;;  %v322_v33 = vrot.slane %v566_v13, %v751_v37 }
 0x125   :  { %581 = vmatpush1.bf16.msra.mxu0 %v580_v1  ;;  %v358_v24 = vrot.slane %v567_v38, %v747_v35 }
 0x126   :  { %v252_v5 = vpop.permute.xlu0 %251  ;;  %v256_v6 = vpop.permute.xlu1 %255  ;;  %v594_v7 = vpack.c.bf16 %v250_v3, %v692_v14  ;;  %v596_v9 = vpack.c.bf16 %v249_v2, %v696_v16  ;;  %v270_v14 = vrot.slane %v565_v4, %v740_v29  ;;  %v371_v29 = vld [vmem:[%s897_s4] sm:$0xff] }
 0x127   :  { %v261_v11 = vsel %vm259_vm5, %v254_v51, %v256_v6  ;;  %v262_v20 = vsel %vm259_vm5, %v252_v5, %v254_v51 }
 0x128   :  { %595 = vmatprep.subr.bf16.mxu1 %v594_v7  ;;  %v288_v18 = vmul.f32 %v274_v8, %v261_v11  ;;  %v287_v30 = vmul.f32 %v270_v14, %v262_v20 }
 0x129   :  { %597 = vmatpush1.bf16.msra.mxu1 %v596_v9 }
 0x12a   :  { %v258_v12 = vpop.permute.xlu0 %257  ;;  %v296_v15 = vpop.permute.xlu1 %295 }
 0x12b   :  { %v301_v17 = vsel %vm299_vm6, %v294_v60, %v296_v15  ;;  %v260_v34 = vsel %vm259_vm5, %v256_v6, %v258_v12  ;;  %v263_v36 = vsel %vm259_vm5, %v258_v12, %v252_v5 }
 0x12c   :  { %v328_v16 = vmul.f32 %v314_v10, %v301_v17  ;;  %v289_v45 = vmul.f32 %v278_v26, %v260_v34  ;;  %v290_v46 = vmul.f32 %v282_v27, %v263_v36 }
 0x12e   :  { %v334_v21 = vpop.permute.xlu0 %333  ;;  %v292_v22 = vpop.permute.xlu1 %291  ;;  %v582_v25 = vpack.c.bf16 %v328_v16, %v288_v18 }
 0x12f   :  { %v302_v28 = vsel %vm299_vm6, %v292_v22, %v294_v60 }
 0x130   :  { %v327_v31 = vmul.f32 %v310_v19, %v302_v28  ;;  %583 = vmatprep.subr.bf16.mxu0 %v582_v25 }
 0x132   :  { %v298_v39 = vpop.permute.xlu1 %297  ;;  %v584_v40 = vpack.c.bf16 %v327_v31, %v287_v30  ;;  %v332_v41 = vpop.permute.xlu0 %331 }
 0x133   :  { %v300_v42 = vsel %vm299_vm6, %v296_v15, %v298_v39  ;;  %v303_v43 = vsel %vm299_vm6, %v298_v39, %v292_v22  ;;  %v342_v50 = vsel %vm339_vm7, %v332_v41, %v334_v21 }
 0x134   :  { %v329_v47 = vmul.f32 %v318_v32, %v300_v42  ;;  %v330_v48 = vmul.f32 %v322_v33, %v303_v43  ;;  %585 = vmatpush1.bf16.msra.mxu0 %v584_v40  ;;  %v367_v57 = vmul.f32 %v350_v49, %v342_v50 }
 0x136   :  { %v336_v51 = vpop.permute.xlu1 %335  ;;  %v598_v52 = vpack.c.bf16 %v330_v48, %v290_v46  ;;  %v600_v53 = vpack.c.bf16 %v329_v47, %v289_v45 }
 0x137   :  { %v341_v54 = vsel %vm339_vm7, %v334_v21, %v336_v51 }
 0x138   :  { %v368_v55 = vmul.f32 %v354_v44, %v341_v54  ;;  %599 = vmatprep.subr.bf16.mxu1 %v598_v52 }
 0x139   :  { %601 = vmatpush1.bf16.msra.mxu1 %v600_v53 }
 0x13a   :  { %398 = vmatprep.subr.mxu0 %v368_v55  ;;  %v338_v58 = vpop.permute.xlu1 %337 }
 0x13b   :  { %v340_v59 = vsel %vm339_vm7, %v336_v51, %v338_v58  ;;  %v343_v60 = vsel %vm339_vm7, %v338_v58, %v332_v41  ;;  %399 = vmatpush1.msra.mxu0 %v367_v57 }
 0x13c   :  { %v369_v61 = vmul.f32 %v358_v24, %v340_v59  ;;  %v370_v35 = vmul.f32 %v362_v56, %v343_v60  ;;  %568 = vmatmul.mubr.msk.f32.vlgmr.msra.gmra.mrb[0].mxu0 %vm378_vm8, %v371_v29 }
 0x13e   :  { %469 = vmatprep.subr.mxu1 %v370_v35 }
 0x13f   :  { %470 = vmatpush1.msra.mxu1 %v369_v61 }
 0x140   :  { %569 = vmatmul.mubr.msk.f32.vlgmr.msra.gmra.mrb[0].mxu1 %vm378_vm8, %v371_v29 }
 0x143   :  { %v376_v37 = vpop.permute.xlu0 %375 }
 0x20f   :  { %v448_v62 = vpop.f32.mrb[0].mxu0 }
 0x210   :  { %v449_v63 = vadd.f32 %v448_v62, %v376_v37  ;;  %v450_v0 = vpop.f32.mrb[1].mxu0 }
 0x211   :  { %v451_v1 = vadd.f32 %v450_v0, %v376_v37 }
 0x212   :  { %v524_v2 = vmax.f32 %v449_v63, 0.0 }
 0x213   :  { %v525_v3 = vmax.f32 %v451_v1, 0.0  ;;  %v519_v4 = vpop.f32.mrb[0].mxu1 }
 0x214   :  { %528 = vst [vmem:[%s898_s6] sm:$0xff] %v524_v2  ;;  %v539_v23 = vmul.f32 %v524_v2, %v524_v2  ;;  %v520_v13 = vadd.f32 %v519_v4, %v376_v37  ;;  %v521_v5 = vpop.f32.mrb[1].mxu1 }
 0x215   :  { %529 = vst [vmem:[%s898_s6 + $0x8] sm:$0xff] %v525_v3  ;;  %v540_v6 = vmul.f32 %v525_v3, %v525_v3  ;;  %v522_v7 = vadd.f32 %v521_v5, %v376_v37  ;;  %v532_v9 = vadd.f32 %v525_v3, %v524_v2 }
 0x216   :  { %v526_v8 = vmax.f32 %v520_v13, 0.0 }
 0x217   :  { %v527_v10 = vmax.f32 %v522_v7, 0.0  ;;  %v543_v11 = vadd.f32 %v540_v6, %v539_v23 }
 0x218   :  { %530 = vst [vmem:[%s898_s6 + $0x10] sm:$0xff] %v526_v8  ;;  %v533_v12 = vadd.f32 %v532_v9, %v526_v8  ;;  %v541_v15 = vmul.f32 %v526_v8, %v526_v8 }
 0x219   :  { %531 = vst [vmem:[%s898_s6 + $0x18] sm:$0xff] %v527_v10  ;;  %v542_v17 = vmul.f32 %v527_v10, %v527_v10 }
 0x21a   :  { %v534_v14 = vadd.f32 %v533_v12, %v527_v10  ;;  %v544_v18 = vadd.f32 %v543_v11, %v541_v15 }
 0x21c   :  { %535 = vadd.xlane.f32.xlu1 %v534_v14  ;;  %v545_v16 = vadd.f32 %v544_v18, %v542_v17 }
 0x21e   :  { %546 = vadd.xlane.f32.xlu0 %v545_v16 }
 0x2a9   :  { %v536_v19 = vpop.xlane.xlu1 %535 }
 0x2aa   :  { %538 = vst.msk [vmem:[%s899_s7] sm:$0xff] %vm537_vm9, %v536_v19 }
 0x2ab   :  { %v547_v20 = vpop.xlane.xlu0 %546 }
 0x2ac   :  { %548 = vst.msk [vmem:[%s900_s8] sm:$0xff] %vm537_vm9, %v547_v20 }

// kernel: duckv2_forward.29
= control target key start
LH: loop header
LB: loop body
LE: loop exit
PB: predicated region body
PF: predicated region fallthrough
CT: control target
= control target key end

     0   :  { %v613_v0 = vmov 0   ;;  %s616_s17 = smov 15   ;;  %s618_s18 = smov 127   ;;  %v621_v17 = vmov 0.0   ;;  %v58_v19 = vlaneseq  ;;  %vm378_vm8 = vcmask 588800   ;;  %s892_s1 = inlined_call_operand.vmem [shape: f32[8,1], index: 1, kind: input, shape index: {}]   ;;  %s893_s2 = inlined_call_operand.vmem [shape: f32[8,1], index: 2, kind: input, shape index: {}]   ;;  %s894_s0 = inlined_call_operand.vmem [shape: f32[8,512], index: 0, kind: input, shape index: {}]   ;;  %s895_s5 = inlined_call_operand.vmem [shape: f32[8,1], index: 5, kind: input, shape index: {}]   ;;  %s896_s3 = inlined_call_operand.vmem [shape: f32[9,1,512], index: 3, kind: input, shape index: {}]   ;;  %s897_s4 = inlined_call_operand.vmem [shape: f32[8,72], index: 4, kind: input, shape index: {}]   ;;  %s898_s6 = inlined_call_operand.vmem [shape: f32[8,512], index: 6, kind: output, shape index: {0}]   ;;  %s899_s7 = inlined_call_operand.vmem [shape: f32[8,1], index: 7, kind: output, shape index: {1}]   ;;  %s900_s8 = inlined_call_operand.vmem [shape: f32[8,1], index: 8, kind: output, shape index: {2}]  }
   0x1   :  { %612 = vset.pattern.permute.xlu0 %v613_v0  ;;  %v30_v1 = vld [vmem:[%s892_s1] sm:$0xff]  ;;  %v27_v6 = vld [vmem:[%s894_s0 + $0x8] sm:$0xff]  ;;  %v29_v7 = vld [vmem:[%s894_s0 + $0x18] sm:$0xff]  ;;  %s614_s1 = smov 16   ;;  %s619_s19 = smov 113   ;;  %446 = vmatprep.mubr.f32.mxu0 %v621_v17  ;;  %vm537_vm9 = vcmask 7168  }
   0x2   :  { %33 = vperm.xlu0 %612, %v30_v1   ;;  %v40_v2 = vld [vmem:[%s893_s2] sm:$0xff]  ;;  %s615_s2 = smov 17   ;;  %v28_v12 = vld [vmem:[%s894_s0 + $0x10] sm:$0xff]  ;;  %s620_s20 = smov 112   ;;  %517 = vmatprep.mubr.f32.mxu1 %v621_v17  ;;  %v68_v20 = vshrl.u32 %v58_v19, 7  ;;  %v729_v23 = vand.u32 127, %v58_v19 }
   0x3   :  { %v26_v4 = vld [vmem:[%s894_s0] sm:$0xff]  ;;  %s617_s0 = smov 1   ;;  %s622_s21 = smov 111   ;;  %v562_v0 = vld [vmem:[%s896_s3 + $0x8] sm:$0xf] }
   0x4   :  { %v372_v18 = vld [vmem:[%s895_s5] sm:$0xff]  ;;  %v731_v24 = vsub.s32 1, %v68_v20  ;;  %vm60_vm0 = vcmp.lt.s32.totalorder %v729_v23, 17  ;;  %v740_v29 = vsub.s32 0, %v68_v20  ;;  %vm99_vm1 = vcmp.lt.s32.totalorder %v729_v23, 16 }
   0x5   :  { %v65_v25 = vld [vmem:[%s896_s3] sm:$0xf]  ;;  %v561_v26 = vld [vmem:[%s896_s3 + $0x4] sm:$0xf]  ;;  %v747_v35 = vsub.s32 2, %v68_v20  ;;  %v751_v37 = vsub.s32 3, %v68_v20 }
   0x6   :  { %43 = vperm.xlu0 %612, %v40_v2   ;;  %v74_v30 = vrot.slane %v65_v25, %v731_v24  ;;  %v114_v31 = vrot.slane %v561_v26, %v731_v24  ;;  %v70_v38 = vrot.slane %v65_v25, %v740_v29  ;;  %v110_v39 = vrot.slane %v561_v26, %v740_v29  ;;  %v563_v1 = vld [vmem:[%s896_s3 + $0xc] sm:$0xf] }
   0x7   :  { %v78_v46 = vrot.slane %v65_v25, %v747_v35  ;;  %v82_v48 = vrot.slane %v65_v25, %v751_v37  ;;  %v118_v51 = vrot.slane %v561_v26, %v747_v35  ;;  %v122_v52 = vrot.slane %v561_v26, %v751_v37 }
   0x8   :  { %vm139_vm2 = vcmp.lt.s32.totalorder %v729_v23, 15  ;;  %vm179_vm3 = vcmp.lt.s32.totalorder %v729_v23, 1  ;;  %v190_v19 = vrot.slane %v563_v1, %v740_v29  ;;  %v158_v26 = vrot.slane %v562_v0, %v747_v35 }
   0x9   :  { %vm219_vm4 = vcmp.lt.s32.totalorder %v729_v23, 127  ;;  %vm259_vm5 = vcmp.lt.s32.totalorder %v729_v23, 113  ;;  %vm299_vm6 = vcmp.lt.s32.totalorder %v729_v23, 112  ;;  %vm339_vm7 = vcmp.lt.s32.totalorder %v729_v23, 111 }
  0x81   :  { %v34_v3 = vpop.permute.xlu0 %33 }
  0x82   :  { %v36_v5 = vmul.f32 %v34_v3, %v26_v4  ;;  %v37_v10 = vmul.f32 %v34_v3, %v27_v6  ;;  %v39_v11 = vmul.f32 %v34_v3, %v29_v7  ;;  %v38_v15 = vmul.f32 %v34_v3, %v28_v12 }
  0x83   :  { %v154_v6 = vrot.slane %v562_v0, %v731_v24  ;;  %v194_v7 = vrot.slane %v563_v1, %v731_v24 }
  0x85   :  { %v44_v8 = vpop.permute.xlu0 %43 }
  0x86   :  { %v683_v9 = vadd.f32 %v44_v8, %v36_v5  ;;  %v690_v13 = vadd.f32 %v44_v8, %v37_v10  ;;  %v692_v14 = vadd.f32 %v44_v8, %v39_v11  ;;  %v696_v16 = vadd.f32 %v44_v8, %v38_v15 }
  0x87   :  { %v150_v15 = vrot.slane %v562_v0, %v740_v29 }
  0x88   :  { %91 = vrot.lane.b32.xlu0 %v683_v9, %s614_s1  ;;  %50 = vrot.lane.b32.xlu1 %v683_v9, %s615_s2 }
  0x8c   :  { %56 = vrot.lane.b32.xlu0 %v692_v14, %s615_s2  ;;  %52 = vrot.lane.b32.xlu1 %v690_v13, %s615_s2 }
  0x90   :  { %54 = vrot.lane.b32.xlu0 %v696_v16, %s615_s2  ;;  %93 = vrot.lane.b32.xlu1 %v690_v13, %s614_s1 }
  0x94   :  { %131 = vrot.lane.b32.xlu0 %v683_v9, %s616_s17  ;;  %97 = vrot.lane.b32.xlu1 %v692_v14, %s614_s1 }
  0x98   :  { %171 = vrot.lane.b32.xlu0 %v683_v9, %s617_s0  ;;  %95 = vrot.lane.b32.xlu1 %v696_v16, %s614_s1 }
  0x9c   :  { %137 = vrot.lane.b32.xlu0 %v692_v14, %s616_s17  ;;  %133 = vrot.lane.b32.xlu1 %v690_v13, %s616_s17 }
  0xa0   :  { %135 = vrot.lane.b32.xlu0 %v696_v16, %s616_s17  ;;  %173 = vrot.lane.b32.xlu1 %v690_v13, %s617_s0 }
  0xa4   :  { %213 = vrot.lane.b32.xlu0 %v690_v13, %s618_s18  ;;  %177 = vrot.lane.b32.xlu1 %v692_v14, %s617_s0 }
  0xa8   :  { %211 = vrot.lane.b32.xlu0 %v683_v9, %s618_s18  ;;  %175 = vrot.lane.b32.xlu1 %v696_v16, %s617_s0 }
  0xac   :  { %253 = vrot.lane.b32.xlu0 %v690_v13, %s619_s19  ;;  %215 = vrot.lane.b32.xlu1 %v696_v16, %s618_s18 }
  0xb0   :  { %293 = vrot.lane.b32.xlu0 %v690_v13, %s620_s20  ;;  %217 = vrot.lane.b32.xlu1 %v692_v14, %s618_s18 }
  0xb4   :  { %251 = vrot.lane.b32.xlu0 %v683_v9, %s619_s19  ;;  %255 = vrot.lane.b32.xlu1 %v696_v16, %s619_s19 }
  0xb8   :  { %257 = vrot.lane.b32.xlu0 %v692_v14, %s619_s19  ;;  %295 = vrot.lane.b32.xlu1 %v696_v16, %s620_s20 }
  0xbc   :  { %333 = vrot.lane.b32.xlu0 %v690_v13, %s622_s21  ;;  %291 = vrot.lane.b32.xlu1 %v683_v9, %s620_s20 }
  0xc0   :  { %331 = vrot.lane.b32.xlu0 %v683_v9, %s622_s21  ;;  %297 = vrot.lane.b32.xlu1 %v692_v14, %s620_s20 }
  0xc4   :  { %375 = vperm.xlu0 %612, %v372_v18   ;;  %335 = vrot.lane.b32.xlu1 %v696_v16, %s622_s21 }
  0xc8   :  { %337 = vrot.lane.b32.xlu1 %v692_v14, %s622_s21 }
  0xfa   :  { %v92_v21 = vpop.permute.xlu0 %91  ;;  %v51_v22 = vpop.permute.xlu1 %50 }
  0xfe   :  { %v57_v27 = vpop.permute.xlu0 %56  ;;  %v53_v28 = vpop.permute.xlu1 %52 }
  0xff   :  { %v63_v32 = vsel %vm60_vm0, %v51_v22, %v53_v28  ;;  %v64_v42 = vsel %vm60_vm0, %v57_v27, %v51_v22 }
 0x100   :  { %v88_v40 = vmul.f32 %v74_v30, %v63_v32  ;;  %v87_v49 = vmul.f32 %v70_v38, %v64_v42  ;;  %v564_v30 = vld [vmem:[%s896_s3 + $0x14] sm:$0xf] }
 0x102   :  { %v55_v33 = vpop.permute.xlu0 %54  ;;  %v94_v34 = vpop.permute.xlu1 %93 }
 0x103   :  { %v102_v36 = vsel %vm99_vm1, %v92_v21, %v94_v34  ;;  %v61_v53 = vsel %vm60_vm0, %v55_v33, %v57_v27  ;;  %v62_v54 = vsel %vm60_vm0, %v53_v28, %v55_v33  ;;  %v162_v27 = vrot.slane %v562_v0, %v751_v37 }
 0x104   :  { %v128_v41 = vmul.f32 %v114_v31, %v102_v36  ;;  %v89_v60 = vmul.f32 %v78_v46, %v62_v54  ;;  %v90_v62 = vmul.f32 %v82_v48, %v61_v53  ;;  %v198_v31 = vrot.slane %v563_v1, %v747_v35 }
 0x105   :  { %v202_v36 = vrot.slane %v563_v1, %v751_v37  ;;  %v234_v46 = vrot.slane %v564_v30, %v731_v24 }
 0x106   :  { %v132_v43 = vpop.permute.xlu0 %131  ;;  %v98_v44 = vpop.permute.xlu1 %97  ;;  %v570_v45 = vpack.c.bf16 %v128_v41, %v88_v40 }
 0x107   :  { %v103_v47 = vsel %vm99_vm1, %v98_v44, %v92_v21 }
 0x108   :  { %v127_v50 = vmul.f32 %v110_v39, %v103_v47  ;;  %571 = vmatprep.subr.bf16.mxu0 %v570_v45  ;;  %v230_v39 = vrot.slane %v564_v30, %v740_v29 }
 0x10a   :  { %v172_v55 = vpop.permute.xlu0 %171  ;;  %v96_v56 = vpop.permute.xlu1 %95  ;;  %v572_v57 = vpack.c.bf16 %v127_v50, %v87_v49 }
 0x10b   :  { %v100_v58 = vsel %vm99_vm1, %v96_v56, %v98_v44  ;;  %v101_v59 = vsel %vm99_vm1, %v94_v34, %v96_v56 }
 0x10c   :  { %v129_v61 = vmul.f32 %v118_v51, %v101_v59  ;;  %573 = vmatpush1.bf16.msra.mxu0 %v572_v57  ;;  %v130_v63 = vmul.f32 %v122_v52, %v100_v58  ;;  %v238_v58 = vrot.slane %v564_v30, %v747_v35  ;;  %v242_v59 = vrot.slane %v564_v30, %v751_v37 }
 0x10e   :  { %v138_v2 = vpop.permute.xlu0 %137  ;;  %v134_v3 = vpop.permute.xlu1 %133  ;;  %v586_v4 = vpack.c.bf16 %v130_v63, %v90_v62  ;;  %v588_v5 = vpack.c.bf16 %v129_v61, %v89_v60 }
 0x10f   :  { %v142_v8 = vsel %vm139_vm2, %v132_v43, %v134_v3  ;;  %v143_v20 = vsel %vm139_vm2, %v138_v2, %v132_v43 }
 0x110   :  { %587 = vmatprep.subr.bf16.mxu1 %v586_v4  ;;  %v168_v17 = vmul.f32 %v154_v6, %v142_v8  ;;  %v167_v32 = vmul.f32 %v150_v15, %v143_v20  ;;  %v565_v4 = vld [vmem:[%s896_s3 + $0x18] sm:$0xf] }
 0x111   :  { %589 = vmatpush1.bf16.msra.mxu1 %v588_v5  ;;  %v274_v8 = vrot.slane %v565_v4, %v731_v24 }
 0x112   :  { %v136_v10 = vpop.permute.xlu0 %135  ;;  %v174_v11 = vpop.permute.xlu1 %173 }
 0x113   :  { %v182_v12 = vsel %vm179_vm3, %v172_v55, %v174_v11  ;;  %v141_v33 = vsel %vm139_vm2, %v134_v3, %v136_v10  ;;  %v140_v38 = vsel %vm139_vm2, %v136_v10, %v138_v2 }
 0x114   :  { %v208_v18 = vmul.f32 %v194_v7, %v182_v12  ;;  %v169_v43 = vmul.f32 %v158_v26, %v141_v33  ;;  %v170_v47 = vmul.f32 %v162_v27, %v140_v38  ;;  %v278_v26 = vrot.slane %v565_v4, %v747_v35  ;;  %v567_v38 = vld [vmem:[%s896_s3 + $0x20] sm:$0xf] }
 0x115   :  { %v282_v27 = vrot.slane %v565_v4, %v751_v37 }
 0x116   :  { %v214_v21 = vpop.permute.xlu0 %213  ;;  %v178_v22 = vpop.permute.xlu1 %177  ;;  %v574_v25 = vpack.c.bf16 %v208_v18, %v168_v17 }
 0x117   :  { %v183_v28 = vsel %vm179_vm3, %v178_v22, %v172_v55 }
 0x118   :  { %v207_v34 = vmul.f32 %v190_v19, %v183_v28  ;;  %575 = vmatprep.subr.bf16.mxu0 %v574_v25 }
 0x11a   :  { %v212_v40 = vpop.permute.xlu0 %211  ;;  %v176_v41 = vpop.permute.xlu1 %175  ;;  %v576_v42 = vpack.c.bf16 %v207_v34, %v167_v32 }
 0x11b   :  { %v180_v44 = vsel %vm179_vm3, %v176_v41, %v178_v22  ;;  %v181_v45 = vsel %vm179_vm3, %v174_v11, %v176_v41  ;;  %v222_v48 = vsel %vm219_vm4, %v212_v40, %v214_v21 }
 0x11c   :  { %v209_v49 = vmul.f32 %v198_v31, %v181_v45  ;;  %v210_v50 = vmul.f32 %v202_v36, %v180_v44  ;;  %577 = vmatpush1.bf16.msra.mxu0 %v576_v42  ;;  %v247_v55 = vmul.f32 %v230_v39, %v222_v48  ;;  %v354_v44 = vrot.slane %v567_v38, %v731_v24 }
 0x11e   :  { %v254_v51 = vpop.permute.xlu0 %253  ;;  %v216_v52 = vpop.permute.xlu1 %215  ;;  %v590_v53 = vpack.c.bf16 %v210_v50, %v170_v47  ;;  %v592_v54 = vpack.c.bf16 %v209_v49, %v169_v43  ;;  %v580_v1 = vpack.c.bf16 %v247_v55, %v683_v9  ;;  %v350_v49 = vrot.slane %v567_v38, %v740_v29 }
 0x11f   :  { %v221_v56 = vsel %vm219_vm4, %v214_v21, %v216_v52 }
 0x120   :  { %v248_v57 = vmul.f32 %v234_v46, %v221_v56  ;;  %591 = vmatprep.subr.bf16.mxu1 %v590_v53  ;;  %v362_v56 = vrot.slane %v567_v38, %v751_v37 }
 0x121   :  { %593 = vmatpush1.bf16.msra.mxu1 %v592_v54 }
 0x122   :  { %v294_v60 = vpop.permute.xlu0 %293  ;;  %v218_v61 = vpop.permute.xlu1 %217  ;;  %v578_v62 = vpack.c.bf16 %v248_v57, %v690_v13  ;;  %v566_v13 = vld [vmem:[%s896_s3 + $0x1c] sm:$0xf] }
 0x123   :  { %v220_v63 = vsel %vm219_vm4, %v216_v52, %v218_v61  ;;  %v223_v0 = vsel %vm219_vm4, %v218_v61, %v212_v40  ;;  %v314_v10 = vrot.slane %v566_v13, %v731_v24  ;;  %v310_v19 = vrot.slane %v566_v13, %v740_v29 }
 0x124   :  { %v249_v2 = vmul.f32 %v238_v58, %v220_v63  ;;  %v250_v3 = vmul.f32 %v242_v59, %v223_v0  ;;  %579 = vmatprep.subr.bf16.mxu0 %v578_v62  ;;  %v318_v32 = vrot.slane %v566_v13, %v747_v35  ;;  %v322_v33 = vrot.slane %v566_v13, %v751_v37 }
 0x125   :  { %581 = vmatpush1.bf16.msra.mxu0 %v580_v1  ;;  %v358_v24 = vrot.slane %v567_v38, %v747_v35 }
 0x126   :  { %v252_v5 = vpop.permute.xlu0 %251  ;;  %v256_v6 = vpop.permute.xlu1 %255  ;;  %v594_v7 = vpack.c.bf16 %v250_v3, %v692_v14  ;;  %v596_v9 = vpack.c.bf16 %v249_v2, %v696_v16  ;;  %v270_v14 = vrot.slane %v565_v4, %v740_v29  ;;  %v371_v29 = vld [vmem:[%s897_s4] sm:$0xff] }
 0x127   :  { %v261_v11 = vsel %vm259_vm5, %v254_v51, %v256_v6  ;;  %v262_v20 = vsel %vm259_vm5, %v252_v5, %v254_v51 }
 0x128   :  { %595 = vmatprep.subr.bf16.mxu1 %v594_v7  ;;  %v288_v18 = vmul.f32 %v274_v8, %v261_v11  ;;  %v287_v30 = vmul.f32 %v270_v14, %v262_v20 }
 0x129   :  { %597 = vmatpush1.bf16.msra.mxu1 %v596_v9 }
 0x12a   :  { %v258_v12 = vpop.permute.xlu0 %257  ;;  %v296_v15 = vpop.permute.xlu1 %295 }
 0x12b   :  { %v301_v17 = vsel %vm299_vm6, %v294_v60, %v296_v15  ;;  %v260_v34 = vsel %vm259_vm5, %v256_v6, %v258_v12  ;;  %v263_v36 = vsel %vm259_vm5, %v258_v12, %v252_v5 }
 0x12c   :  { %v328_v16 = vmul.f32 %v314_v10, %v301_v17  ;;  %v289_v45 = vmul.f32 %v278_v26, %v260_v34  ;;  %v290_v46 = vmul.f32 %v282_v27, %v263_v36 }
 0x12e   :  { %v334_v21 = vpop.permute.xlu0 %333  ;;  %v292_v22 = vpop.permute.xlu1 %291  ;;  %v582_v25 = vpack.c.bf16 %v328_v16, %v288_v18 }
 0x12f   :  { %v302_v28 = vsel %vm299_vm6, %v292_v22, %v294_v60 }
 0x130   :  { %v327_v31 = vmul.f32 %v310_v19, %v302_v28  ;;  %583 = vmatprep.subr.bf16.mxu0 %v582_v25 }
 0x132   :  { %v298_v39 = vpop.permute.xlu1 %297  ;;  %v584_v40 = vpack.c.bf16 %v327_v31, %v287_v30  ;;  %v332_v41 = vpop.permute.xlu0 %331 }
 0x133   :  { %v300_v42 = vsel %vm299_vm6, %v296_v15, %v298_v39  ;;  %v303_v43 = vsel %vm299_vm6, %v298_v39, %v292_v22  ;;  %v342_v50 = vsel %vm339_vm7, %v332_v41, %v334_v21 }
 0x134   :  { %v329_v47 = vmul.f32 %v318_v32, %v300_v42  ;;  %v330_v48 = vmul.f32 %v322_v33, %v303_v43  ;;  %585 = vmatpush1.bf16.msra.mxu0 %v584_v40  ;;  %v367_v57 = vmul.f32 %v350_v49, %v342_v50 }
 0x136   :  { %v336_v51 = vpop.permute.xlu1 %335  ;;  %v598_v52 = vpack.c.bf16 %v330_v48, %v290_v46  ;;  %v600_v53 = vpack.c.bf16 %v329_v47, %v289_v45 }
 0x137   :  { %v341_v54 = vsel %vm339_vm7, %v334_v21, %v336_v51 }
 0x138   :  { %v368_v55 = vmul.f32 %v354_v44, %v341_v54  ;;  %599 = vmatprep.subr.bf16.mxu1 %v598_v52 }
 0x139   :  { %601 = vmatpush1.bf16.msra.mxu1 %v600_v53 }
 0x13a   :  { %398 = vmatprep.subr.mxu0 %v368_v55  ;;  %v338_v58 = vpop.permute.xlu1 %337 }
 0x13b   :  { %v340_v59 = vsel %vm339_vm7, %v336_v51, %v338_v58  ;;  %v343_v60 = vsel %vm339_vm7, %v338_v58, %v332_v41  ;;  %399 = vmatpush1.msra.mxu0 %v367_v57 }
 0x13c   :  { %v369_v61 = vmul.f32 %v358_v24, %v340_v59  ;;  %v370_v35 = vmul.f32 %v362_v56, %v343_v60  ;;  %568 = vmatmul.mubr.msk.f32.vlgmr.msra.gmra.mrb[0].mxu0 %vm378_vm8, %v371_v29 }
 0x13e   :  { %469 = vmatprep.subr.mxu1 %v370_v35 }
 0x13f   :  { %470 = vmatpush1.msra.mxu1 %v369_v61 }
 0x140   :  { %569 = vmatmul.mubr.msk.f32.vlgmr.msra.gmra.mrb[0].mxu1 %vm378_vm8, %v371_v29 }
 0x143   :  { %v376_v37 = vpop.permute.xlu0 %375 }
 0x20f   :  { %v448_v62 = vpop.f32.mrb[0].mxu0 }
 0x210   :  { %v449_v63 = vadd.f32 %v448_v62, %v376_v37  ;;  %v450_v0 = vpop.f32.mrb[1].mxu0 }
 0x211   :  { %v451_v1 = vadd.f32 %v450_v0, %v376_v37 }
 0x212   :  { %v524_v2 = vmax.f32 %v449_v63, 0.0 }
 0x213   :  { %v525_v3 = vmax.f32 %v451_v1, 0.0  ;;  %v519_v4 = vpop.f32.mrb[0].mxu1 }
 0x214   :  { %528 = vst [vmem:[%s898_s6] sm:$0xff] %v524_v2  ;;  %v539_v23 = vmul.f32 %v524_v2, %v524_v2  ;;  %v520_v13 = vadd.f32 %v519_v4, %v376_v37  ;;  %v521_v5 = vpop.f32.mrb[1].mxu1 }
 0x215   :  { %529 = vst [vmem:[%s898_s6 + $0x8] sm:$0xff] %v525_v3  ;;  %v540_v6 = vmul.f32 %v525_v3, %v525_v3  ;;  %v522_v7 = vadd.f32 %v521_v5, %v376_v37  ;;  %v532_v9 = vadd.f32 %v525_v3, %v524_v2 }
 0x216   :  { %v526_v8 = vmax.f32 %v520_v13, 0.0 }
 0x217   :  { %v527_v10 = vmax.f32 %v522_v7, 0.0  ;;  %v543_v11 = vadd.f32 %v540_v6, %v539_v23 }
 0x218   :  { %530 = vst [vmem:[%s898_s6 + $0x10] sm:$0xff] %v526_v8  ;;  %v533_v12 = vadd.f32 %v532_v9, %v526_v8  ;;  %v541_v15 = vmul.f32 %v526_v8, %v526_v8 }
 0x219   :  { %531 = vst [vmem:[%s898_s6 + $0x18] sm:$0xff] %v527_v10  ;;  %v542_v17 = vmul.f32 %v527_v10, %v527_v10 }
 0x21a   :  { %v534_v14 = vadd.f32 %v533_v12, %v527_v10  ;;  %v544_v18 = vadd.f32 %v543_v11, %v541_v15 }
 0x21c   :  { %535 = vadd.xlane.f32.xlu1 %v534_v14  ;;  %v545_v16 = vadd.f32 %v544_v18, %v542_v17 }
 0x21e   :  { %546 = vadd.xlane.f32.xlu0 %v545_v16 }
 0x2a9   :  { %v536_v19 = vpop.xlane.xlu1 %535 }
 0x2aa   :  { %538 = vst.msk [vmem:[%s899_s7] sm:$0xff] %vm537_vm9, %v536_v19 }
 0x2ab   :  { %v547_v20 = vpop.xlane.xlu0 %546 }
 0x2ac   :  { %548 = vst.msk [vmem:[%s900_s8] sm:$0xff] %vm537_vm9, %v547_v20 }

// kernel: duckv2_forward.33
= control target key start
LH: loop header
LB: loop body
LE: loop exit
PB: predicated region body
PF: predicated region fallthrough
CT: control target
= control target key end

     0   :  { %v662_v0 = vmov 0   ;;  %s665_s17 = smov 15   ;;  %s667_s18 = smov 127   ;;  %v670_v17 = vmov 0.0   ;;  %v58_v20 = vlaneseq  ;;  %vm385_vm8 = vcmask 588800   ;;  %s973_s1 = inlined_call_operand.vmem [shape: f32[8,1], index: 1, kind: input, shape index: {}]   ;;  %s974_s2 = inlined_call_operand.vmem [shape: f32[8,1], index: 2, kind: input, shape index: {}]   ;;  %s975_s0 = inlined_call_operand.vmem [shape: f32[8,512], index: 0, kind: input, shape index: {}]   ;;  %s976_s5 = inlined_call_operand.vmem [shape: f32[16,1], index: 5, kind: input, shape index: {}]   ;;  %s977_s3 = inlined_call_operand.vmem [shape: f32[9,1,512], index: 3, kind: input, shape index: {}]   ;;  %s978_s4 = inlined_call_operand.vmem [shape: f32[16,72], index: 4, kind: input, shape index: {}]   ;;  %s979_s6 = inlined_call_operand.vmem [shape: f32[16,512], index: 6, kind: output, shape index: {0}]   ;;  %s980_s7 = inlined_call_operand.vmem [shape: f32[16,1], index: 7, kind: output, shape index: {1}]   ;;  %s981_s8 = inlined_call_operand.vmem [shape: f32[16,1], index: 8, kind: output, shape index: {2}]  }
   0x1   :  { %660 = vset.pattern.permute.xlu0 %v662_v0  ;;  %v30_v1 = vld [vmem:[%s973_s1] sm:$0xff]  ;;  %661 = vset.pattern.permute.xlu1 %v662_v0  ;;  %v27_v6 = vld [vmem:[%s975_s0 + $0x8] sm:$0xff]  ;;  %v29_v7 = vld [vmem:[%s975_s0 + $0x18] sm:$0xff]  ;;  %s663_s1 = smov 16   ;;  %s668_s19 = smov 113   ;;  %vm572_vm9 = vcmask 7168  }
   0x2   :  { %33 = vperm.xlu0 %660, %v30_v1   ;;  %v40_v2 = vld [vmem:[%s974_s2] sm:$0xff]  ;;  %s664_s2 = smov 17   ;;  %v28_v12 = vld [vmem:[%s975_s0 + $0x10] sm:$0xff]  ;;  %s669_s20 = smov 112   ;;  %456 = vmatprep.mubr.f32.mxu0 %v670_v17  ;;  %v374_v19 = vld [vmem:[%s976_s5 + $0x8] sm:$0xff]  ;;  %v68_v21 = vshrl.u32 %v58_v20, 7 }
   0x3   :  { %v26_v4 = vld [vmem:[%s975_s0] sm:$0xff]  ;;  %s666_s0 = smov 1   ;;  %533 = vmatprep.mubr.f32.mxu1 %v670_v17  ;;  %s671_s21 = smov 111   ;;  %v783_v24 = vand.u32 127, %v58_v20  ;;  %v608_v1 = vld [vmem:[%s977_s3 + $0x8] sm:$0xf] }
   0x4   :  { %v373_v18 = vld [vmem:[%s976_s5] sm:$0xff]  ;;  %v785_v25 = vsub.s32 1, %v68_v21  ;;  %v794_v30 = vsub.s32 0, %v68_v21  ;;  %v801_v36 = vsub.s32 2, %v68_v21  ;;  %v805_v38 = vsub.s32 3, %v68_v21 }
   0x5   :  { %v65_v26 = vld [vmem:[%s977_s3] sm:$0xf]  ;;  %v607_v27 = vld [vmem:[%s977_s3 + $0x4] sm:$0xf]  ;;  %vm60_vm0 = vcmp.lt.s32.totalorder %v783_v24, 17  ;;  %vm99_vm1 = vcmp.lt.s32.totalorder %v783_v24, 16 }
   0x6   :  { %43 = vperm.xlu0 %660, %v40_v2   ;;  %v74_v31 = vrot.slane %v65_v26, %v785_v25  ;;  %v114_v32 = vrot.slane %v607_v27, %v785_v25  ;;  %v70_v39 = vrot.slane %v65_v26, %v794_v30  ;;  %v110_v40 = vrot.slane %v607_v27, %v794_v30  ;;  %v609_v2 = vld [vmem:[%s977_s3 + $0xc] sm:$0xf] }
   0x7   :  { %v78_v47 = vrot.slane %v65_v26, %v801_v36  ;;  %v82_v49 = vrot.slane %v65_v26, %v805_v38  ;;  %v118_v52 = vrot.slane %v607_v27, %v801_v36  ;;  %v122_v53 = vrot.slane %v607_v27, %v805_v38 }
   0x8   :  { %vm139_vm2 = vcmp.lt.s32.totalorder %v783_v24, 15  ;;  %vm179_vm3 = vcmp.lt.s32.totalorder %v783_v24, 1  ;;  %v190_v21 = vrot.slane %v609_v2, %v794_v30  ;;  %vm219_vm4 = vcmp.lt.s32.totalorder %v783_v24, 127 }
   0x9   :  { %vm259_vm5 = vcmp.lt.s32.totalorder %v783_v24, 113  ;;  %vm299_vm6 = vcmp.lt.s32.totalorder %v783_v24, 112  ;;  %vm339_vm7 = vcmp.lt.s32.totalorder %v783_v24, 111 }
  0x81   :  { %v34_v3 = vpop.permute.xlu0 %33 }
  0x82   :  { %v36_v5 = vmul.f32 %v34_v3, %v26_v4  ;;  %v37_v10 = vmul.f32 %v34_v3, %v27_v6  ;;  %v39_v11 = vmul.f32 %v34_v3, %v29_v7  ;;  %v38_v15 = vmul.f32 %v34_v3, %v28_v12 }
  0x83   :  { %v154_v7 = vrot.slane %v608_v1, %v785_v25 }
  0x85   :  { %v44_v8 = vpop.permute.xlu0 %43 }
  0x86   :  { %v732_v9 = vadd.f32 %v44_v8, %v36_v5  ;;  %v739_v13 = vadd.f32 %v44_v8, %v37_v10  ;;  %v741_v14 = vadd.f32 %v44_v8, %v39_v11  ;;  %v745_v16 = vadd.f32 %v44_v8, %v38_v15 }
  0x87   :  { %v194_v8 = vrot.slane %v609_v2, %v785_v25 }
  0x88   :  { %91 = vrot.lane.b32.xlu0 %v732_v9, %s663_s1  ;;  %50 = vrot.lane.b32.xlu1 %v732_v9, %s664_s2 }
  0x8c   :  { %56 = vrot.lane.b32.xlu0 %v741_v14, %s664_s2  ;;  %52 = vrot.lane.b32.xlu1 %v739_v13, %s664_s2 }
  0x90   :  { %54 = vrot.lane.b32.xlu0 %v745_v16, %s664_s2  ;;  %93 = vrot.lane.b32.xlu1 %v739_v13, %s663_s1 }
  0x94   :  { %131 = vrot.lane.b32.xlu0 %v732_v9, %s665_s17  ;;  %97 = vrot.lane.b32.xlu1 %v741_v14, %s663_s1 }
  0x98   :  { %171 = vrot.lane.b32.xlu0 %v732_v9, %s666_s0  ;;  %95 = vrot.lane.b32.xlu1 %v745_v16, %s663_s1 }
  0x9c   :  { %137 = vrot.lane.b32.xlu0 %v741_v14, %s665_s17  ;;  %133 = vrot.lane.b32.xlu1 %v739_v13, %s665_s17 }
  0xa0   :  { %135 = vrot.lane.b32.xlu0 %v745_v16, %s665_s17  ;;  %173 = vrot.lane.b32.xlu1 %v739_v13, %s666_s0 }
  0xa4   :  { %213 = vrot.lane.b32.xlu0 %v739_v13, %s667_s18  ;;  %177 = vrot.lane.b32.xlu1 %v741_v14, %s666_s0 }
  0xa8   :  { %211 = vrot.lane.b32.xlu0 %v732_v9, %s667_s18  ;;  %175 = vrot.lane.b32.xlu1 %v745_v16, %s666_s0 }
  0xac   :  { %253 = vrot.lane.b32.xlu0 %v739_v13, %s668_s19  ;;  %215 = vrot.lane.b32.xlu1 %v745_v16, %s667_s18 }
  0xb0   :  { %293 = vrot.lane.b32.xlu0 %v739_v13, %s669_s20  ;;  %217 = vrot.lane.b32.xlu1 %v741_v14, %s667_s18 }
  0xb4   :  { %251 = vrot.lane.b32.xlu0 %v732_v9, %s668_s19  ;;  %255 = vrot.lane.b32.xlu1 %v745_v16, %s668_s19 }
  0xb8   :  { %257 = vrot.lane.b32.xlu0 %v741_v14, %s668_s19  ;;  %295 = vrot.lane.b32.xlu1 %v745_v16, %s669_s20 }
  0xbc   :  { %333 = vrot.lane.b32.xlu0 %v739_v13, %s671_s21  ;;  %291 = vrot.lane.b32.xlu1 %v732_v9, %s669_s20 }
  0xc0   :  { %331 = vrot.lane.b32.xlu0 %v732_v9, %s671_s21  ;;  %297 = vrot.lane.b32.xlu1 %v741_v14, %s669_s20 }
  0xc4   :  { %377 = vperm.xlu0 %660, %v373_v18   ;;  %335 = vrot.lane.b32.xlu1 %v745_v16, %s671_s21  ;;  %v150_v18 = vrot.slane %v608_v1, %v794_v30 }
  0xc8   :  { %337 = vrot.lane.b32.xlu1 %v741_v14, %s671_s21 }
  0xcc   :  { %382 = vperm.xlu1 %661, %v374_v19  }
  0xfa   :  { %v92_v22 = vpop.permute.xlu0 %91  ;;  %v51_v23 = vpop.permute.xlu1 %50 }
  0xfe   :  { %v57_v28 = vpop.permute.xlu0 %56  ;;  %v53_v29 = vpop.permute.xlu1 %52 }
  0xff   :  { %v63_v33 = vsel %vm60_vm0, %v51_v23, %v53_v29  ;;  %v64_v43 = vsel %vm60_vm0, %v57_v28, %v51_v23 }
 0x100   :  { %v88_v41 = vmul.f32 %v74_v31, %v63_v33  ;;  %v87_v50 = vmul.f32 %v70_v39, %v64_v43  ;;  %v198_v33 = vrot.slane %v609_v2, %v801_v36  ;;  %v202_v39 = vrot.slane %v609_v2, %v805_v38 }
 0x102   :  { %v55_v34 = vpop.permute.xlu0 %54  ;;  %v94_v35 = vpop.permute.xlu1 %93 }
 0x103   :  { %v102_v37 = vsel %vm99_vm1, %v92_v22, %v94_v35  ;;  %v61_v54 = vsel %vm60_vm0, %v55_v34, %v57_v28  ;;  %v62_v55 = vsel %vm60_vm0, %v53_v29, %v55_v34  ;;  %v158_v28 = vrot.slane %v608_v1, %v801_v36 }
 0x104   :  { %v128_v42 = vmul.f32 %v114_v32, %v102_v37  ;;  %v89_v61 = vmul.f32 %v78_v47, %v62_v55  ;;  %v90_v63 = vmul.f32 %v82_v49, %v61_v54  ;;  %v162_v29 = vrot.slane %v608_v1, %v805_v38  ;;  %v610_v32 = vld [vmem:[%s977_s3 + $0x14] sm:$0xf] }
 0x106   :  { %v132_v44 = vpop.permute.xlu0 %131  ;;  %v98_v45 = vpop.permute.xlu1 %97  ;;  %v618_v46 = vpack.c.bf16 %v128_v42, %v88_v41  ;;  %v230_v41 = vrot.slane %v610_v32, %v794_v30 }
 0x107   :  { %v103_v48 = vsel %vm99_vm1, %v98_v45, %v92_v22 }
 0x108   :  { %v127_v51 = vmul.f32 %v110_v40, %v103_v48  ;;  %619 = vmatprep.subr.bf16.mxu0 %v618_v46  ;;  %v234_v48 = vrot.slane %v610_v32, %v785_v25 }
 0x10a   :  { %v172_v56 = vpop.permute.xlu0 %171  ;;  %v96_v57 = vpop.permute.xlu1 %95  ;;  %v620_v58 = vpack.c.bf16 %v127_v51, %v87_v50 }
 0x10b   :  { %v100_v59 = vsel %vm99_vm1, %v96_v57, %v98_v45  ;;  %v101_v60 = vsel %vm99_vm1, %v94_v35, %v96_v57 }
 0x10c   :  { %v129_v62 = vmul.f32 %v118_v52, %v101_v60  ;;  %621 = vmatpush1.bf16.msra.mxu0 %v620_v58  ;;  %v130_v0 = vmul.f32 %v122_v53, %v100_v59  ;;  %v238_v60 = vrot.slane %v610_v32, %v801_v36 }
 0x10e   :  { %v138_v3 = vpop.permute.xlu0 %137  ;;  %v134_v4 = vpop.permute.xlu1 %133  ;;  %v634_v5 = vpack.c.bf16 %v130_v0, %v90_v63  ;;  %v636_v6 = vpack.c.bf16 %v129_v62, %v89_v61  ;;  %v242_v61 = vrot.slane %v610_v32, %v805_v38 }
 0x10f   :  { %v142_v10 = vsel %vm139_vm2, %v132_v44, %v134_v4  ;;  %v143_v22 = vsel %vm139_vm2, %v138_v3, %v132_v44 }
 0x110   :  { %635 = vmatprep.subr.bf16.mxu1 %v634_v5  ;;  %v168_v19 = vmul.f32 %v154_v7, %v142_v10  ;;  %v167_v34 = vmul.f32 %v150_v18, %v143_v22 }
 0x111   :  { %637 = vmatpush1.bf16.msra.mxu1 %v636_v6  ;;  %v611_v6 = vld [vmem:[%s977_s3 + $0x18] sm:$0xf] }
 0x112   :  { %v136_v11 = vpop.permute.xlu0 %135  ;;  %v174_v12 = vpop.permute.xlu1 %173 }
 0x113   :  { %v182_v15 = vsel %vm179_vm3, %v172_v56, %v174_v12  ;;  %v141_v35 = vsel %vm139_vm2, %v134_v4, %v136_v11  ;;  %v140_v40 = vsel %vm139_vm2, %v136_v11, %v138_v3  ;;  %v274_v11 = vrot.slane %v611_v6, %v785_v25 }
 0x114   :  { %v208_v20 = vmul.f32 %v194_v8, %v182_v15  ;;  %v169_v45 = vmul.f32 %v158_v28, %v141_v35  ;;  %v170_v49 = vmul.f32 %v162_v29, %v140_v40  ;;  %v278_v29 = vrot.slane %v611_v6, %v801_v36 }
 0x116   :  { %v214_v23 = vpop.permute.xlu0 %213  ;;  %v178_v26 = vpop.permute.xlu1 %177  ;;  %v622_v27 = vpack.c.bf16 %v208_v20, %v168_v19 }
 0x117   :  { %v183_v31 = vsel %vm179_vm3, %v178_v26, %v172_v56 }
 0x118   :  { %v207_v37 = vmul.f32 %v190_v21, %v183_v31  ;;  %623 = vmatprep.subr.bf16.mxu0 %v622_v27  ;;  %v282_v31 = vrot.slane %v611_v6, %v805_v38 }
 0x11a   :  { %v212_v42 = vpop.permute.xlu0 %211  ;;  %v176_v43 = vpop.permute.xlu1 %175  ;;  %v624_v44 = vpack.c.bf16 %v207_v37, %v167_v34 }
 0x11b   :  { %v180_v46 = vsel %vm179_vm3, %v176_v43, %v178_v26  ;;  %v181_v47 = vsel %vm179_vm3, %v174_v12, %v176_v43  ;;  %v222_v50 = vsel %vm219_vm4, %v212_v42, %v214_v23 }
 0x11c   :  { %v209_v51 = vmul.f32 %v198_v33, %v181_v47  ;;  %v210_v52 = vmul.f32 %v202_v39, %v180_v46  ;;  %625 = vmatpush1.bf16.msra.mxu0 %v624_v44  ;;  %v247_v57 = vmul.f32 %v230_v41, %v222_v50  ;;  %v613_v41 = vld [vmem:[%s977_s3 + $0x20] sm:$0xf] }
 0x11d   :  { %v354_v47 = vrot.slane %v613_v41, %v785_v25 }
 0x11e   :  { %v254_v53 = vpop.permute.xlu0 %253  ;;  %v216_v54 = vpop.permute.xlu1 %215  ;;  %v638_v55 = vpack.c.bf16 %v210_v52, %v170_v49  ;;  %v640_v56 = vpack.c.bf16 %v209_v51, %v169_v45  ;;  %v628_v3 = vpack.c.bf16 %v247_v57, %v732_v9  ;;  %v350_v52 = vrot.slane %v613_v41, %v794_v30 }
 0x11f   :  { %v221_v58 = vsel %vm219_vm4, %v214_v23, %v216_v54 }
 0x120   :  { %v248_v59 = vmul.f32 %v234_v48, %v221_v58  ;;  %639 = vmatprep.subr.bf16.mxu1 %v638_v55 }
 0x121   :  { %641 = vmatpush1.bf16.msra.mxu1 %v640_v56 }
 0x122   :  { %v294_v62 = vpop.permute.xlu0 %293  ;;  %v218_v63 = vpop.permute.xlu1 %217  ;;  %v626_v0 = vpack.c.bf16 %v248_v59, %v739_v13  ;;  %v612_v13 = vld [vmem:[%s977_s3 + $0x1c] sm:$0xf]  ;;  %v362_v59 = vrot.slane %v613_v41, %v805_v38 }
 0x123   :  { %v220_v1 = vsel %vm219_vm4, %v216_v54, %v218_v63  ;;  %v223_v2 = vsel %vm219_vm4, %v218_v63, %v212_v42  ;;  %v314_v12 = vrot.slane %v612_v13, %v785_v25  ;;  %v310_v22 = vrot.slane %v612_v13, %v794_v30 }
 0x124   :  { %v249_v4 = vmul.f32 %v238_v60, %v220_v1  ;;  %v250_v5 = vmul.f32 %v242_v61, %v223_v2  ;;  %627 = vmatprep.subr.bf16.mxu0 %v626_v0  ;;  %v318_v35 = vrot.slane %v612_v13, %v801_v36  ;;  %v322_v37 = vrot.slane %v612_v13, %v805_v38  ;;  %v372_v38 = vld [vmem:[%s978_s4 + $0x8] sm:$0xff] }
 0x125   :  { %629 = vmatpush1.bf16.msra.mxu0 %v628_v3  ;;  %v358_v25 = vrot.slane %v613_v41, %v801_v36 }
 0x126   :  { %v252_v7 = vpop.permute.xlu0 %251  ;;  %v256_v8 = vpop.permute.xlu1 %255  ;;  %v642_v10 = vpack.c.bf16 %v250_v5, %v741_v14  ;;  %v644_v9 = vpack.c.bf16 %v249_v4, %v745_v16  ;;  %v270_v14 = vrot.slane %v611_v6, %v794_v30  ;;  %v371_v30 = vld [vmem:[%s978_s4] sm:$0xff] }
 0x127   :  { %v261_v15 = vsel %vm259_vm5, %v254_v53, %v256_v8  ;;  %v262_v23 = vsel %vm259_vm5, %v252_v7, %v254_v53 }
 0x128   :  { %643 = vmatprep.subr.bf16.mxu1 %v642_v10  ;;  %v288_v21 = vmul.f32 %v274_v11, %v261_v15  ;;  %v287_v33 = vmul.f32 %v270_v14, %v262_v23 }
 0x129   :  { %645 = vmatpush1.bf16.msra.mxu1 %v644_v9 }
 0x12a   :  { %v258_v18 = vpop.permute.xlu0 %257  ;;  %v296_v19 = vpop.permute.xlu1 %295 }
 0x12b   :  { %v301_v20 = vsel %vm299_vm6, %v294_v62, %v296_v19  ;;  %v260_v39 = vsel %vm259_vm5, %v256_v8, %v258_v18  ;;  %v263_v40 = vsel %vm259_vm5, %v258_v18, %v252_v7 }
 0x12c   :  { %v328_v16 = vmul.f32 %v314_v12, %v301_v20  ;;  %v289_v48 = vmul.f32 %v278_v29, %v260_v39  ;;  %v290_v49 = vmul.f32 %v282_v31, %v263_v40 }
 0x12e   :  { %v334_v26 = vpop.permute.xlu0 %333  ;;  %v292_v27 = vpop.permute.xlu1 %291  ;;  %v630_v28 = vpack.c.bf16 %v328_v16, %v288_v21 }
 0x12f   :  { %v302_v32 = vsel %vm299_vm6, %v292_v27, %v294_v62 }
 0x130   :  { %v327_v34 = vmul.f32 %v310_v22, %v302_v32  ;;  %631 = vmatprep.subr.bf16.mxu0 %v630_v28 }
 0x132   :  { %v298_v42 = vpop.permute.xlu1 %297  ;;  %v632_v43 = vpack.c.bf16 %v327_v34, %v287_v33  ;;  %v332_v44 = vpop.permute.xlu0 %331 }
 0x133   :  { %v300_v45 = vsel %vm299_vm6, %v296_v19, %v298_v42  ;;  %v303_v46 = vsel %vm299_vm6, %v298_v42, %v292_v27  ;;  %v342_v53 = vsel %vm339_vm7, %v332_v44, %v334_v26 }
 0x134   :  { %v329_v50 = vmul.f32 %v318_v35, %v300_v45  ;;  %v330_v51 = vmul.f32 %v322_v37, %v303_v46  ;;  %633 = vmatpush1.bf16.msra.mxu0 %v632_v43  ;;  %v367_v60 = vmul.f32 %v350_v52, %v342_v53 }
 0x136   :  { %v336_v54 = vpop.permute.xlu1 %335  ;;  %v646_v55 = vpack.c.bf16 %v330_v51, %v290_v49  ;;  %v648_v56 = vpack.c.bf16 %v329_v50, %v289_v48 }
 0x137   :  { %v341_v57 = vsel %vm339_vm7, %v334_v26, %v336_v54 }
 0x138   :  { %v368_v58 = vmul.f32 %v354_v47, %v341_v57  ;;  %647 = vmatprep.subr.bf16.mxu1 %v646_v55 }
 0x139   :  { %649 = vmatpush1.bf16.msra.mxu1 %v648_v56 }
 0x13a   :  { %408 = vmatprep.subr.mxu0 %v368_v58  ;;  %v338_v61 = vpop.permute.xlu1 %337 }
 0x13b   :  { %v340_v62 = vsel %vm339_vm7, %v336_v54, %v338_v61  ;;  %v343_v63 = vsel %vm339_vm7, %v338_v61, %v332_v44  ;;  %409 = vmatpush1.msra.mxu0 %v367_v60 }
 0x13c   :  { %v369_v0 = vmul.f32 %v358_v25, %v340_v62  ;;  %v370_v36 = vmul.f32 %v362_v59, %v343_v63  ;;  %614 = vmatmul.mubr.msk.f32.vlgmr.msra.gmra.mrb[0].mxu0 %vm385_vm8, %v371_v30 }
 0x13d   :  { %462 = vmatprep.mubr.f32.mxu0 %v670_v17 }
 0x13e   :  { %485 = vmatprep.subr.mxu1 %v370_v36 }
 0x13f   :  { %486 = vmatpush1.msra.mxu1 %v369_v0 }
 0x140   :  { %616 = vmatmul.mubr.msk.f32.vlgmr.msra.gmra.mrb[0].mxu1 %vm385_vm8, %v371_v30  ;;  %615 = vmatmul.mubr.msk.f32.gmra.mrb[2].mxu0 %vm385_vm8, %v372_v38 }
 0x141   :  { %539 = vmatprep.mubr.f32.mxu1 %v670_v17 }
 0x143   :  { %v378_v24 = vpop.permute.xlu0 %377 }
 0x144   :  { %617 = vmatmul.mubr.msk.f32.gmra.mrb[2].mxu1 %vm385_vm8, %v372_v38 }
 0x14b   :  { %v383_v5 = vpop.permute.xlu1 %382 }
 0x20f   :  { %v458_v1 = vpop.f32.mrb[0].mxu0 }
 0x210   :  { %v459_v2 = vadd.f32 %v458_v1, %v378_v24  ;;  %v460_v3 = vpop.f32.mrb[1].mxu0 }
 0x211   :  { %v461_v4 = vadd.f32 %v460_v3, %v378_v24 }
 0x212   :  { %v546_v6 = vmax.f32 %v459_v2, 0.0 }
 0x213   :  { %v547_v13 = vmax.f32 %v461_v4, 0.0  ;;  %v535_v7 = vpop.f32.mrb[0].mxu1  ;;  %v464_v8 = vpop.f32.mrb[2].mxu0 }
 0x214   :  { %554 = vst [vmem:[%s979_s6] sm:$0xff] %v546_v6  ;;  %v575_v10 = vmul.f32 %v546_v6, %v546_v6  ;;  %v536_v9 = vadd.f32 %v535_v7, %v378_v24  ;;  %v537_v11 = vpop.f32.mrb[1].mxu1  ;;  %v466_v17 = vpop.f32.mrb[3].mxu0  ;;  %v465_v12 = vadd.f32 %v464_v8, %v383_v5 }
 0x215   :  { %555 = vst [vmem:[%s979_s6 + $0x8] sm:$0xff] %v547_v13  ;;  %v576_v15 = vmul.f32 %v547_v13, %v547_v13  ;;  %v538_v18 = vadd.f32 %v537_v11, %v378_v24  ;;  %v467_v19 = vadd.f32 %v466_v17, %v383_v5  ;;  %v562_v20 = vadd.f32 %v547_v13, %v546_v6 }
 0x216   :  { %v548_v14 = vmax.f32 %v536_v9, 0.0  ;;  %v550_v21 = vmax.f32 %v465_v12, 0.0 }
 0x217   :  { %v549_v16 = vmax.f32 %v538_v18, 0.0  ;;  %v551_v22 = vmax.f32 %v467_v19, 0.0  ;;  %v541_v23 = vpop.f32.mrb[2].mxu1  ;;  %v583_v26 = vadd.f32 %v576_v15, %v575_v10 }
 0x218   :  { %556 = vst [vmem:[%s979_s6 + $0x10] sm:$0xff] %v548_v14  ;;  %558 = vst [vmem:[%s979_s6 + $0x20] sm:$0xff] %v550_v21  ;;  %v542_v27 = vadd.f32 %v541_v23, %v383_v5  ;;  %v543_v28 = vpop.f32.mrb[3].mxu1  ;;  %v563_v29 = vadd.f32 %v562_v20, %v548_v14  ;;  %v577_v31 = vmul.f32 %v548_v14, %v548_v14 }
 0x219   :  { %v579_v32 = vmul.f32 %v550_v21, %v550_v21  ;;  %557 = vst [vmem:[%s979_s6 + $0x18] sm:$0xff] %v549_v16  ;;  %559 = vst [vmem:[%s979_s6 + $0x28] sm:$0xff] %v551_v22  ;;  %v544_v33 = vadd.f32 %v543_v28, %v383_v5  ;;  %v578_v34 = vmul.f32 %v549_v16, %v549_v16 }
 0x21a   :  { %v567_v35 = vadd.f32 %v551_v22, %v550_v21  ;;  %v580_v37 = vmul.f32 %v551_v22, %v551_v22  ;;  %v552_v39 = vmax.f32 %v542_v27, 0.0  ;;  %v564_v40 = vadd.f32 %v563_v29, %v549_v16 }
 0x21b   :  { %v584_v41 = vadd.f32 %v583_v26, %v577_v31  ;;  %v553_v42 = vmax.f32 %v544_v33, 0.0 }
 0x21c   :  { %v588_v43 = vadd.f32 %v580_v37, %v579_v32  ;;  %560 = vst [vmem:[%s979_s6 + $0x30] sm:$0xff] %v552_v39  ;;  %565 = vadd.xlane.f32.xlu0 %v564_v40  ;;  %v568_v45 = vadd.f32 %v567_v35, %v552_v39  ;;  %v581_v46 = vmul.f32 %v552_v39, %v552_v39 }
 0x21d   :  { %v585_v44 = vadd.f32 %v584_v41, %v578_v34  ;;  %561 = vst [vmem:[%s979_s6 + $0x38] sm:$0xff] %v553_v42  ;;  %v582_v47 = vmul.f32 %v553_v42, %v553_v42 }
 0x21e   :  { %v569_v48 = vadd.f32 %v568_v45, %v553_v42  ;;  %v589_v49 = vadd.f32 %v588_v43, %v581_v46 }
 0x220   :  { %586 = vadd.xlane.f32.xlu0 %v585_v44  ;;  %570 = vadd.xlane.f32.xlu1 %v569_v48  ;;  %v590_v50 = vadd.f32 %v589_v49, %v582_v47 }
 0x224   :  { %591 = vadd.xlane.f32.xlu0 %v590_v50 }
 0x2a9   :  { %v566_v51 = vpop.xlane.xlu0 %565 }
 0x2aa   :  { %573 = vst.msk [vmem:[%s980_s7] sm:$0xff] %vm572_vm9, %v566_v51 }
 0x2ad   :  { %v587_v52 = vpop.xlane.xlu0 %586  ;;  %v571_v53 = vpop.xlane.xlu1 %570 }
 0x2ae   :  { %593 = vst.msk [vmem:[%s981_s8] sm:$0xff] %vm572_vm9, %v587_v52  ;;  %574 = vst.msk [vmem:[%s980_s7 + $0x8] sm:$0xff] %vm572_vm9, %v571_v53 }
 0x2b1   :  { %v592_v54 = vpop.xlane.xlu0 %591 }
 0x2b2   :  { %594 = vst.msk [vmem:[%s981_s8 + $0x8] sm:$0xff] %vm572_vm9, %v592_v54 }

// kernel: duckv2_forward.44
= control target key start
LH: loop header
LB: loop body
LE: loop exit
PB: predicated region body
PF: predicated region fallthrough
CT: control target
= control target key end

     0   :  { %v479_v0 = vmov 0   ;;  %s482_s17 = smov 127   ;;  %s484_s18 = smov 125   ;;  %v485_v17 = vmov 0.0   ;;  %v58_v19 = vlaneseq  ;;  %vm258_vm5 = vcmask 392192   ;;  %s695_s1 = inlined_call_operand.vmem [shape: f32[8,1], index: 1, kind: input, shape index: {}]   ;;  %s696_s2 = inlined_call_operand.vmem [shape: f32[8,1], index: 2, kind: input, shape index: {}]   ;;  %s697_s0 = inlined_call_operand.vmem [shape: f32[8,512], index: 0, kind: input, shape index: {}]   ;;  %s698_s5 = inlined_call_operand.vmem [shape: f32[8,1], index: 5, kind: input, shape index: {}]   ;;  %s699_s3 = inlined_call_operand.vmem [shape: f32[6,1,512], index: 3, kind: input, shape index: {}]   ;;  %s700_s4 = inlined_call_operand.vmem [shape: f32[8,48], index: 4, kind: input, shape index: {}]   ;;  %s701_s6 = inlined_call_operand.vmem [shape: f32[8,512], index: 6, kind: output, shape index: {0}]   ;;  %s702_s7 = inlined_call_operand.vmem [shape: f32[8,1], index: 7, kind: output, shape index: {1}]   ;;  %s703_s8 = inlined_call_operand.vmem [shape: f32[8,1], index: 8, kind: output, shape index: {2}]  }
   0x1   :  { %478 = vset.pattern.permute.xlu0 %v479_v0  ;;  %v30_v1 = vld [vmem:[%s695_s1] sm:$0xff]  ;;  %v27_v6 = vld [vmem:[%s697_s0 + $0x8] sm:$0xff]  ;;  %v29_v7 = vld [vmem:[%s697_s0 + $0x18] sm:$0xff]  ;;  %s480_s1 = smov 1   ;;  %326 = vmatprep.mubr.f32.mxu0 %v485_v17  ;;  %vm417_vm6 = vcmask 7168  }
   0x2   :  { %33 = vperm.xlu0 %478, %v30_v1   ;;  %v40_v2 = vld [vmem:[%s696_s2] sm:$0xff]  ;;  %s481_s2 = smov 2   ;;  %v28_v12 = vld [vmem:[%s697_s0 + $0x10] sm:$0xff]  ;;  %397 = vmatprep.mubr.f32.mxu1 %v485_v17  ;;  %v68_v20 = vshrl.u32 %v58_v19, 7  ;;  %v580_v23 = vand.u32 127, %v58_v19 }
   0x3   :  { %v26_v4 = vld [vmem:[%s697_s0] sm:$0xff]  ;;  %s483_s0 = smov 126   ;;  %v442_v48 = vld [vmem:[%s699_s3 + $0xc] sm:$0xf] }
   0x4   :  { %v252_v18 = vld [vmem:[%s698_s5] sm:$0xff]  ;;  %v582_v24 = vsub.s32 1, %v68_v20  ;;  %vm60_vm0 = vcmp.lt.s32.totalorder %v580_v23, 2  ;;  %v591_v29 = vsub.s32 0, %v68_v20  ;;  %vm99_vm1 = vcmp.lt.s32.totalorder %v580_v23, 1 }
   0x5   :  { %v65_v25 = vld [vmem:[%s699_s3] sm:$0xf]  ;;  %v441_v26 = vld [vmem:[%s699_s3 + $0x4] sm:$0xf]  ;;  %v598_v35 = vsub.s32 2, %v68_v20  ;;  %v602_v37 = vsub.s32 3, %v68_v20 }
   0x6   :  { %43 = vperm.xlu0 %478, %v40_v2   ;;  %v74_v30 = vrot.slane %v65_v25, %v582_v24  ;;  %v114_v31 = vrot.slane %v441_v26, %v582_v24  ;;  %v70_v38 = vrot.slane %v65_v25, %v591_v29  ;;  %v110_v39 = vrot.slane %v441_v26, %v591_v29 }
   0x7   :  { %v78_v46 = vrot.slane %v65_v25, %v598_v35  ;;  %v118_v49 = vrot.slane %v441_v26, %v598_v35  ;;  %v82_v50 = vrot.slane %v65_v25, %v602_v37  ;;  %v122_v54 = vrot.slane %v441_v26, %v602_v37 }
   0x8   :  { %vm139_vm2 = vcmp.lt.s32.totalorder %v580_v23, 127  ;;  %v150_v56 = vrot.slane %v442_v48, %v591_v29  ;;  %v154_v63 = vrot.slane %v442_v48, %v582_v24  ;;  %vm179_vm3 = vcmp.lt.s32.totalorder %v580_v23, 126 }
   0x9   :  { %vm219_vm4 = vcmp.lt.s32.totalorder %v580_v23, 125 }
  0x81   :  { %v34_v3 = vpop.permute.xlu0 %33 }
  0x82   :  { %v36_v5 = vmul.f32 %v34_v3, %v26_v4  ;;  %v37_v10 = vmul.f32 %v34_v3, %v27_v6  ;;  %v39_v11 = vmul.f32 %v34_v3, %v29_v7  ;;  %v38_v15 = vmul.f32 %v34_v3, %v28_v12 }
  0x83   :  { %v158_v12 = vrot.slane %v442_v48, %v598_v35 }
  0x85   :  { %v44_v8 = vpop.permute.xlu0 %43 }
  0x86   :  { %v546_v9 = vadd.f32 %v44_v8, %v36_v5  ;;  %v553_v13 = vadd.f32 %v44_v8, %v37_v10  ;;  %v555_v14 = vadd.f32 %v44_v8, %v39_v11  ;;  %v559_v16 = vadd.f32 %v44_v8, %v38_v15 }
  0x87   :  { %v162_v15 = vrot.slane %v442_v48, %v602_v37 }
  0x88   :  { %91 = vrot.lane.b32.xlu0 %v546_v9, %s480_s1  ;;  %50 = vrot.lane.b32.xlu1 %v546_v9, %s481_s2 }
  0x8c   :  { %56 = vrot.lane.b32.xlu0 %v555_v14, %s481_s2  ;;  %52 = vrot.lane.b32.xlu1 %v553_v13, %s481_s2 }
  0x90   :  { %54 = vrot.lane.b32.xlu0 %v559_v16, %s481_s2  ;;  %93 = vrot.lane.b32.xlu1 %v553_v13, %s480_s1 }
  0x94   :  { %133 = vrot.lane.b32.xlu0 %v553_v13, %s482_s17  ;;  %97 = vrot.lane.b32.xlu1 %v555_v14, %s480_s1 }
  0x98   :  { %131 = vrot.lane.b32.xlu0 %v546_v9, %s482_s17  ;;  %95 = vrot.lane.b32.xlu1 %v559_v16, %s480_s1 }
  0x9c   :  { %173 = vrot.lane.b32.xlu0 %v553_v13, %s483_s0  ;;  %135 = vrot.lane.b32.xlu1 %v559_v16, %s482_s17 }
  0xa0   :  { %213 = vrot.lane.b32.xlu0 %v553_v13, %s484_s18  ;;  %137 = vrot.lane.b32.xlu1 %v555_v14, %s482_s17 }
  0xa4   :  { %171 = vrot.lane.b32.xlu0 %v546_v9, %s483_s0  ;;  %175 = vrot.lane.b32.xlu1 %v559_v16, %s483_s0 }
  0xa8   :  { %177 = vrot.lane.b32.xlu0 %v555_v14, %s483_s0  ;;  %215 = vrot.lane.b32.xlu1 %v559_v16, %s484_s18 }
  0xac   :  { %255 = vperm.xlu0 %478, %v252_v18   ;;  %211 = vrot.lane.b32.xlu1 %v546_v9, %s484_s18 }
  0xb0   :  { %217 = vrot.lane.b32.xlu1 %v555_v14, %s484_s18 }
  0xfa   :  { %v92_v21 = vpop.permute.xlu0 %91  ;;  %v51_v22 = vpop.permute.xlu1 %50 }
  0xfe   :  { %v57_v27 = vpop.permute.xlu0 %56  ;;  %v53_v28 = vpop.permute.xlu1 %52 }
  0xff   :  { %v63_v32 = vsel %vm60_vm0, %v51_v22, %v53_v28  ;;  %v64_v42 = vsel %vm60_vm0, %v57_v27, %v51_v22 }
 0x100   :  { %v88_v40 = vmul.f32 %v74_v30, %v63_v32  ;;  %v87_v51 = vmul.f32 %v70_v38, %v64_v42 }
 0x102   :  { %v55_v33 = vpop.permute.xlu0 %54  ;;  %v94_v34 = vpop.permute.xlu1 %93 }
 0x103   :  { %v102_v36 = vsel %vm99_vm1, %v92_v21, %v94_v34  ;;  %v62_v52 = vsel %vm60_vm0, %v53_v28, %v55_v33  ;;  %v61_v55 = vsel %vm60_vm0, %v55_v33, %v57_v27  ;;  %v443_v27 = vld [vmem:[%s699_s3 + $0x10] sm:$0xf] }
 0x104   :  { %v128_v41 = vmul.f32 %v114_v31, %v102_v36  ;;  %v89_v60 = vmul.f32 %v78_v46, %v62_v52  ;;  %v90_v2 = vmul.f32 %v82_v50, %v61_v55  ;;  %v194_v32 = vrot.slane %v443_v27, %v582_v24 }
 0x106   :  { %v134_v43 = vpop.permute.xlu0 %133  ;;  %v98_v44 = vpop.permute.xlu1 %97  ;;  %v447_v45 = vpack.c.bf16 %v128_v41, %v88_v40 }
 0x107   :  { %v103_v47 = vsel %vm99_vm1, %v98_v44, %v92_v21 }
 0x108   :  { %v127_v53 = vmul.f32 %v110_v39, %v103_v47  ;;  %448 = vmatprep.subr.bf16.mxu0 %v447_v45  ;;  %v202_v45 = vrot.slane %v443_v27, %v602_v37 }
 0x10a   :  { %v132_v57 = vpop.permute.xlu0 %131  ;;  %v96_v58 = vpop.permute.xlu1 %95  ;;  %v449_v59 = vpack.c.bf16 %v127_v53, %v87_v51 }
 0x10b   :  { %v100_v61 = vsel %vm99_vm1, %v96_v58, %v98_v44  ;;  %v101_v62 = vsel %vm99_vm1, %v94_v34, %v96_v58  ;;  %v142_v0 = vsel %vm139_vm2, %v132_v57, %v134_v43  ;;  %v198_v44 = vrot.slane %v443_v27, %v598_v35 }
 0x10c   :  { %v129_v1 = vmul.f32 %v118_v49, %v101_v62  ;;  %450 = vmatpush1.bf16.msra.mxu0 %v449_v59  ;;  %v130_v3 = vmul.f32 %v122_v54, %v100_v61  ;;  %v167_v8 = vmul.f32 %v150_v56, %v142_v0 }
 0x10e   :  { %v174_v4 = vpop.permute.xlu0 %173  ;;  %v136_v5 = vpop.permute.xlu1 %135  ;;  %v459_v6 = vpack.c.bf16 %v130_v3, %v90_v2  ;;  %v461_v7 = vpack.c.bf16 %v129_v1, %v89_v60  ;;  %v453_v22 = vpack.c.bf16 %v167_v8, %v546_v9 }
 0x10f   :  { %v141_v10 = vsel %vm139_vm2, %v134_v43, %v136_v5 }
 0x110   :  { %v168_v11 = vmul.f32 %v154_v63, %v141_v10  ;;  %460 = vmatprep.subr.bf16.mxu1 %v459_v6 }
 0x111   :  { %462 = vmatpush1.bf16.msra.mxu1 %v461_v7 }
 0x112   :  { %v214_v17 = vpop.permute.xlu0 %213  ;;  %v138_v18 = vpop.permute.xlu1 %137  ;;  %v451_v19 = vpack.c.bf16 %v168_v11, %v553_v13  ;;  %v444_v13 = vld [vmem:[%s699_s3 + $0x14] sm:$0xf] }
 0x113   :  { %v140_v20 = vsel %vm139_vm2, %v136_v5, %v138_v18  ;;  %v143_v21 = vsel %vm139_vm2, %v138_v18, %v132_v57  ;;  %v234_v33 = vrot.slane %v444_v13, %v582_v24  ;;  %v230_v40 = vrot.slane %v444_v13, %v591_v29 }
 0x114   :  { %v169_v25 = vmul.f32 %v158_v12, %v140_v20  ;;  %v170_v26 = vmul.f32 %v162_v15, %v143_v21  ;;  %452 = vmatprep.subr.bf16.mxu0 %v451_v19  ;;  %v238_v49 = vrot.slane %v444_v13, %v598_v35 }
 0x115   :  { %454 = vmatpush1.bf16.msra.mxu0 %v453_v22 }
 0x116   :  { %v176_v28 = vpop.permute.xlu1 %175  ;;  %v463_v30 = vpack.c.bf16 %v170_v26, %v555_v14  ;;  %v465_v31 = vpack.c.bf16 %v169_v25, %v559_v16  ;;  %v172_v9 = vpop.permute.xlu0 %171  ;;  %v190_v14 = vrot.slane %v443_v27, %v591_v29  ;;  %v242_v29 = vrot.slane %v444_v13, %v602_v37  ;;  %v251_v37 = vld [vmem:[%s700_s4] sm:$0xff] }
 0x117   :  { %v181_v34 = vsel %vm179_vm3, %v174_v4, %v176_v28  ;;  %v182_v41 = vsel %vm179_vm3, %v172_v9, %v174_v4 }
 0x118   :  { %464 = vmatprep.subr.bf16.mxu1 %v463_v30  ;;  %v208_v39 = vmul.f32 %v194_v32, %v181_v34  ;;  %v207_v47 = vmul.f32 %v190_v14, %v182_v41 }
 0x119   :  { %466 = vmatpush1.bf16.msra.mxu1 %v465_v31 }
 0x11a   :  { %v216_v36 = vpop.permute.xlu1 %215  ;;  %v178_v42 = vpop.permute.xlu0 %177 }
 0x11b   :  { %v221_v38 = vsel %vm219_vm4, %v214_v17, %v216_v36  ;;  %v180_v50 = vsel %vm179_vm3, %v176_v28, %v178_v42  ;;  %v183_v51 = vsel %vm179_vm3, %v178_v42, %v172_v9 }
 0x11c   :  { %v248_v16 = vmul.f32 %v234_v33, %v221_v38  ;;  %v209_v56 = vmul.f32 %v198_v44, %v180_v50  ;;  %v210_v57 = vmul.f32 %v202_v45, %v183_v51 }
 0x11e   :  { %v212_v43 = vpop.permute.xlu1 %211  ;;  %v455_v24 = vpack.c.bf16 %v248_v16, %v208_v39 }
 0x11f   :  { %v222_v46 = vsel %vm219_vm4, %v212_v43, %v214_v17 }
 0x120   :  { %v247_v48 = vmul.f32 %v230_v40, %v222_v46  ;;  %456 = vmatprep.subr.bf16.mxu0 %v455_v24 }
 0x122   :  { %v218_v52 = vpop.permute.xlu1 %217  ;;  %v457_v53 = vpack.c.bf16 %v247_v48, %v207_v47 }
 0x123   :  { %v220_v54 = vsel %vm219_vm4, %v216_v36, %v218_v52  ;;  %v223_v55 = vsel %vm219_vm4, %v218_v52, %v212_v43 }
 0x124   :  { %v249_v35 = vmul.f32 %v238_v49, %v220_v54  ;;  %v250_v58 = vmul.f32 %v242_v29, %v223_v55  ;;  %458 = vmatpush1.bf16.msra.mxu0 %v457_v53 }
 0x126   :  { %v467_v59 = vpack.c.bf16 %v250_v58, %v210_v57  ;;  %v469_v60 = vpack.c.bf16 %v249_v35, %v209_v56 }
 0x127   :  { %445 = vmatmul.mubr.msk.f32.vlgmr.msra.gmra.mrb[0].mxu0 %vm258_vm5, %v251_v37 }
 0x128   :  { %468 = vmatprep.subr.bf16.mxu1 %v467_v59 }
 0x129   :  { %470 = vmatpush1.bf16.msra.mxu1 %v469_v60 }
 0x12b   :  { %v256_v61 = vpop.permute.xlu0 %255 }
 0x12c   :  { %446 = vmatmul.mubr.msk.f32.vlgmr.msra.gmra.mrb[0].mxu1 %vm258_vm5, %v251_v37 }
 0x1fa   :  { %v328_v62 = vpop.f32.mrb[0].mxu0 }
 0x1fb   :  { %v329_v23 = vadd.f32 %v328_v62, %v256_v61  ;;  %v330_v63 = vpop.f32.mrb[1].mxu0 }
 0x1fc   :  { %v331_v0 = vadd.f32 %v330_v63, %v256_v61 }
 0x1fd   :  { %v404_v1 = vmax.f32 %v329_v23, 0.0 }
 0x1fe   :  { %v405_v2 = vmax.f32 %v331_v0, 0.0 }
 0x1ff   :  { %408 = vst [vmem:[%s701_s6] sm:$0xff] %v404_v1  ;;  %v419_v3 = vmul.f32 %v404_v1, %v404_v1  ;;  %v399_v4 = vpop.f32.mrb[0].mxu1 }
 0x200   :  { %409 = vst [vmem:[%s701_s6 + $0x8] sm:$0xff] %v405_v2  ;;  %v420_v5 = vmul.f32 %v405_v2, %v405_v2  ;;  %v400_v6 = vadd.f32 %v399_v4, %v256_v61  ;;  %v401_v7 = vpop.f32.mrb[1].mxu1  ;;  %v412_v8 = vadd.f32 %v405_v2, %v404_v1 }
 0x201   :  { %v402_v10 = vadd.f32 %v401_v7, %v256_v61 }
 0x202   :  { %v406_v11 = vmax.f32 %v400_v6, 0.0  ;;  %v423_v12 = vadd.f32 %v420_v5, %v419_v3 }
 0x203   :  { %v407_v15 = vmax.f32 %v402_v10, 0.0 }
 0x204   :  { %410 = vst [vmem:[%s701_s6 + $0x10] sm:$0xff] %v406_v11  ;;  %v413_v17 = vadd.f32 %v412_v8, %v406_v11  ;;  %v421_v18 = vmul.f32 %v406_v11, %v406_v11 }
 0x205   :  { %411 = vst [vmem:[%s701_s6 + $0x18] sm:$0xff] %v407_v15  ;;  %v422_v19 = vmul.f32 %v407_v15, %v407_v15 }
 0x206   :  { %v414_v20 = vadd.f32 %v413_v17, %v407_v15  ;;  %v424_v21 = vadd.f32 %v423_v12, %v421_v18 }
 0x208   :  { %415 = vadd.xlane.f32.xlu1 %v414_v20  ;;  %v425_v22 = vadd.f32 %v424_v21, %v422_v19 }
 0x20a   :  { %426 = vadd.xlane.f32.xlu0 %v425_v22 }
 0x295   :  { %v416_v25 = vpop.xlane.xlu1 %415 }
 0x296   :  { %418 = vst.msk [vmem:[%s702_s7] sm:$0xff] %vm417_vm6, %v416_v25 }
 0x297   :  { %v427_v26 = vpop.xlane.xlu0 %426 }
 0x298   :  { %428 = vst.msk [vmem:[%s703_s8] sm:$0xff] %vm417_vm6, %v427_v26 }

// kernel: duckv2_forward.46
= control target key start
LH: loop header
LB: loop body
LE: loop exit
PB: predicated region body
PF: predicated region fallthrough
CT: control target
= control target key end

     0   :  { %v252_v0 = vmov 0   ;;  %vm215_vm0 = vcmask 7168   ;;  %s434_s6 = inlined_call_operand.vmem [shape: f32[6,8,1], index: 6, kind: input, shape index: {}]   ;;  %s435_s7 = inlined_call_operand.vmem [shape: f32[6,8,1], index: 7, kind: input, shape index: {}]   ;;  %s436_s1 = inlined_call_operand.vmem [shape: f32[8,512], index: 1, kind: input, shape index: {}]   ;;  %s437_s0 = inlined_call_operand.vmem [shape: f32[8,512], index: 0, kind: input, shape index: {}]   ;;  %s438_s2 = inlined_call_operand.vmem [shape: f32[8,512], index: 2, kind: input, shape index: {}]   ;;  %s439_s3 = inlined_call_operand.vmem [shape: f32[8,512], index: 3, kind: input, shape index: {}]   ;;  %s440_s4 = inlined_call_operand.vmem [shape: f32[8,512], index: 4, kind: input, shape index: {}]   ;;  %s441_s5 = inlined_call_operand.vmem [shape: f32[8,512], index: 5, kind: input, shape index: {}]   ;;  %s442_s8 = inlined_call_operand.vmem [shape: f32[8,512], index: 8, kind: output, shape index: {0}]   ;;  %s443_s9 = inlined_call_operand.vmem [shape: f32[8,1], index: 9, kind: output, shape index: {1}]   ;;  %s444_s10 = inlined_call_operand.vmem [shape: f32[8,1], index: 10, kind: output, shape index: {2}]  }
   0x1   :  { %251 = vset.pattern.permute.xlu1 %v252_v0  ;;  %250 = vset.pattern.permute.xlu0 %v252_v0  ;;  %v239_v1 = vld [vmem:[%s434_s6 + $0x8] sm:$0xff]  ;;  %v36_v2 = vld [vmem:[%s434_s6] sm:$0xff]  ;;  %v242_v5 = vld [vmem:[%s435_s7 + $0x10] sm:$0xff] }
   0x2   :  { %64 = vperm.xlu1 %251, %v239_v1   ;;  %39 = vperm.xlu0 %250, %v36_v2   ;;  %v240_v3 = vld [vmem:[%s435_s7 + $0x8] sm:$0xff]  ;;  %v46_v4 = vld [vmem:[%s435_s7] sm:$0xff]  ;;  %v241_v6 = vld [vmem:[%s434_s6 + $0x10] sm:$0xff] }
   0x3   :  { %v244_v7 = vld [vmem:[%s435_s7 + $0x18] sm:$0xff]  ;;  %v246_v9 = vld [vmem:[%s435_s7 + $0x20] sm:$0xff]  ;;  %v248_v11 = vld [vmem:[%s435_s7 + $0x28] sm:$0xff] }
   0x4   :  { %v243_v8 = vld [vmem:[%s434_s6 + $0x18] sm:$0xff]  ;;  %v245_v10 = vld [vmem:[%s434_s6 + $0x20] sm:$0xff]  ;;  %v247_v12 = vld [vmem:[%s434_s6 + $0x28] sm:$0xff] }
   0x5   :  { %v56_v13 = vld [vmem:[%s436_s1] sm:$0xff]  ;;  %v57_v14 = vld [vmem:[%s436_s1 + $0x8] sm:$0xff]  ;;  %v58_v15 = vld [vmem:[%s436_s1 + $0x10] sm:$0xff] }
   0x6   :  { %79 = vperm.xlu1 %251, %v240_v3   ;;  %49 = vperm.xlu0 %250, %v46_v4   ;;  %v59_v16 = vld [vmem:[%s436_s1 + $0x18] sm:$0xff]  ;;  %v32_v17 = vld [vmem:[%s437_s0] sm:$0xff]  ;;  %v33_v20 = vld [vmem:[%s437_s0 + $0x8] sm:$0xff] }
   0x7   :  { %v34_v21 = vld [vmem:[%s437_s0 + $0x10] sm:$0xff]  ;;  %v35_v22 = vld [vmem:[%s437_s0 + $0x18] sm:$0xff]  ;;  %v86_v37 = vld [vmem:[%s438_s2] sm:$0xff] }
   0x8   :  { %v87_v42 = vld [vmem:[%s438_s2 + $0x8] sm:$0xff]  ;;  %v88_v43 = vld [vmem:[%s438_s2 + $0x10] sm:$0xff]  ;;  %v89_v44 = vld [vmem:[%s438_s2 + $0x18] sm:$0xff] }
   0x9   :  { %v116_v51 = vld [vmem:[%s439_s3] sm:$0xff]  ;;  %v117_v56 = vld [vmem:[%s439_s3 + $0x8] sm:$0xff]  ;;  %v118_v57 = vld [vmem:[%s439_s3 + $0x10] sm:$0xff] }
   0xa   :  { %109 = vperm.xlu1 %251, %v242_v5   ;;  %94 = vperm.xlu0 %250, %v241_v6   ;;  %v119_v58 = vld [vmem:[%s439_s3 + $0x18] sm:$0xff]  ;;  %v146_v5 = vld [vmem:[%s440_s4] sm:$0xff] }
   0xe   :  { %139 = vperm.xlu1 %251, %v244_v7   ;;  %124 = vperm.xlu0 %250, %v243_v8  }
  0x12   :  { %169 = vperm.xlu1 %251, %v246_v9   ;;  %154 = vperm.xlu0 %250, %v245_v10   ;;  %v147_v10 = vld [vmem:[%s440_s4 + $0x8] sm:$0xff] }
  0x16   :  { %199 = vperm.xlu1 %251, %v248_v11   ;;  %184 = vperm.xlu0 %250, %v247_v12   ;;  %v148_v11 = vld [vmem:[%s440_s4 + $0x10] sm:$0xff]  ;;  %v149_v12 = vld [vmem:[%s440_s4 + $0x18] sm:$0xff] }
  0x81   :  { %v65_v18 = vpop.permute.xlu1 %64  ;;  %v40_v19 = vpop.permute.xlu0 %39 }
  0x82   :  { %v67_v23 = vmul.f32 %v65_v18, %v56_v13  ;;  %v68_v24 = vmul.f32 %v65_v18, %v57_v14  ;;  %v69_v25 = vmul.f32 %v65_v18, %v58_v15  ;;  %v70_v26 = vmul.f32 %v65_v18, %v59_v16 }
  0x83   :  { %v42_v27 = vmul.f32 %v40_v19, %v32_v17  ;;  %v43_v28 = vmul.f32 %v40_v19, %v33_v20  ;;  %v44_v29 = vmul.f32 %v40_v19, %v34_v21  ;;  %v45_v30 = vmul.f32 %v40_v19, %v35_v22  ;;  %v176_v22 = vld [vmem:[%s441_s5] sm:$0xff] }
  0x85   :  { %v80_v31 = vpop.permute.xlu1 %79  ;;  %v50_v32 = vpop.permute.xlu0 %49 }
  0x86   :  { %v52_v33 = vadd.f32 %v50_v32, %v42_v27  ;;  %v53_v34 = vadd.f32 %v50_v32, %v43_v28  ;;  %v54_v35 = vadd.f32 %v50_v32, %v44_v29  ;;  %v55_v36 = vadd.f32 %v50_v32, %v45_v30  ;;  %v177_v27 = vld [vmem:[%s441_s5 + $0x8] sm:$0xff]  ;;  %v178_v28 = vld [vmem:[%s441_s5 + $0x10] sm:$0xff]  ;;  %v179_v29 = vld [vmem:[%s441_s5 + $0x18] sm:$0xff] }
  0x88   :  { %v71_v38 = vadd.f32 %v67_v23, %v52_v33  ;;  %v72_v39 = vadd.f32 %v68_v24, %v53_v34  ;;  %v73_v40 = vadd.f32 %v69_v25, %v54_v35  ;;  %v74_v41 = vadd.f32 %v70_v26, %v55_v36 }
  0x89   :  { %v110_v45 = vpop.permute.xlu1 %109  ;;  %v95_v46 = vpop.permute.xlu0 %94 }
  0x8a   :  { %v82_v47 = vadd.f32 %v80_v31, %v71_v38  ;;  %v83_v48 = vadd.f32 %v80_v31, %v72_v39  ;;  %v84_v49 = vadd.f32 %v80_v31, %v73_v40  ;;  %v85_v50 = vadd.f32 %v80_v31, %v74_v41 }
  0x8b   :  { %v97_v52 = vmul.f32 %v95_v46, %v86_v37  ;;  %v98_v53 = vmul.f32 %v95_v46, %v87_v42  ;;  %v99_v54 = vmul.f32 %v95_v46, %v88_v43  ;;  %v100_v55 = vmul.f32 %v95_v46, %v89_v44 }
  0x8d   :  { %v101_v59 = vadd.f32 %v97_v52, %v82_v47  ;;  %v102_v60 = vadd.f32 %v98_v53, %v83_v48  ;;  %v103_v61 = vadd.f32 %v99_v54, %v84_v49  ;;  %v104_v62 = vadd.f32 %v100_v55, %v85_v50  ;;  %v125_v63 = vpop.permute.xlu0 %124  ;;  %v140_v0 = vpop.permute.xlu1 %139 }
  0x8e   :  { %v127_v1 = vmul.f32 %v125_v63, %v116_v51  ;;  %v128_v2 = vmul.f32 %v125_v63, %v117_v56  ;;  %v129_v3 = vmul.f32 %v125_v63, %v118_v57  ;;  %v130_v4 = vmul.f32 %v125_v63, %v119_v58 }
  0x8f   :  { %v112_v6 = vadd.f32 %v110_v45, %v101_v59  ;;  %v113_v7 = vadd.f32 %v110_v45, %v102_v60  ;;  %v114_v8 = vadd.f32 %v110_v45, %v103_v61  ;;  %v115_v9 = vadd.f32 %v110_v45, %v104_v62 }
  0x91   :  { %v131_v13 = vadd.f32 %v127_v1, %v112_v6  ;;  %v132_v14 = vadd.f32 %v128_v2, %v113_v7  ;;  %v133_v15 = vadd.f32 %v129_v3, %v114_v8  ;;  %v134_v16 = vadd.f32 %v130_v4, %v115_v9  ;;  %v155_v17 = vpop.permute.xlu0 %154  ;;  %v170_v30 = vpop.permute.xlu1 %169 }
  0x92   :  { %v157_v18 = vmul.f32 %v155_v17, %v146_v5  ;;  %v158_v19 = vmul.f32 %v155_v17, %v147_v10  ;;  %v159_v20 = vmul.f32 %v155_v17, %v148_v11  ;;  %v160_v21 = vmul.f32 %v155_v17, %v149_v12 }
  0x93   :  { %v142_v23 = vadd.f32 %v140_v0, %v131_v13  ;;  %v143_v24 = vadd.f32 %v140_v0, %v132_v14  ;;  %v144_v25 = vadd.f32 %v140_v0, %v133_v15  ;;  %v145_v26 = vadd.f32 %v140_v0, %v134_v16 }
  0x95   :  { %v161_v31 = vadd.f32 %v157_v18, %v142_v23  ;;  %v162_v32 = vadd.f32 %v158_v19, %v143_v24  ;;  %v163_v33 = vadd.f32 %v159_v20, %v144_v25  ;;  %v164_v34 = vadd.f32 %v160_v21, %v145_v26  ;;  %v185_v35 = vpop.permute.xlu0 %184  ;;  %v200_v48 = vpop.permute.xlu1 %199 }
  0x96   :  { %v187_v36 = vmul.f32 %v185_v35, %v176_v22  ;;  %v188_v37 = vmul.f32 %v185_v35, %v177_v27  ;;  %v189_v38 = vmul.f32 %v185_v35, %v178_v28  ;;  %v190_v39 = vmul.f32 %v185_v35, %v179_v29 }
  0x97   :  { %v172_v40 = vadd.f32 %v170_v30, %v161_v31  ;;  %v173_v41 = vadd.f32 %v170_v30, %v162_v32  ;;  %v174_v42 = vadd.f32 %v170_v30, %v163_v33  ;;  %v175_v43 = vadd.f32 %v170_v30, %v164_v34 }
  0x99   :  { %v191_v44 = vadd.f32 %v187_v36, %v172_v40  ;;  %v192_v45 = vadd.f32 %v188_v37, %v173_v41  ;;  %v193_v46 = vadd.f32 %v189_v38, %v174_v42  ;;  %v194_v47 = vadd.f32 %v190_v39, %v175_v43 }
  0x9b   :  { %v202_v49 = vadd.f32 %v200_v48, %v191_v44  ;;  %v203_v50 = vadd.f32 %v200_v48, %v192_v45  ;;  %v204_v51 = vadd.f32 %v200_v48, %v193_v46  ;;  %v205_v52 = vadd.f32 %v200_v48, %v194_v47 }
  0x9d   :  { %206 = vst [vmem:[%s442_s8] sm:$0xff] %v202_v49  ;;  %207 = vst [vmem:[%s442_s8 + $0x8] sm:$0xff] %v203_v50  ;;  %v210_v53 = vadd.f32 %v203_v50, %v202_v49  ;;  %v217_v54 = vmul.f32 %v202_v49, %v202_v49  ;;  %v218_v55 = vmul.f32 %v203_v50, %v203_v50 }
  0x9e   :  { %208 = vst [vmem:[%s442_s8 + $0x10] sm:$0xff] %v204_v51  ;;  %209 = vst [vmem:[%s442_s8 + $0x18] sm:$0xff] %v205_v52  ;;  %v219_v57 = vmul.f32 %v204_v51, %v204_v51  ;;  %v220_v60 = vmul.f32 %v205_v52, %v205_v52 }
  0x9f   :  { %v211_v56 = vadd.f32 %v210_v53, %v204_v51  ;;  %v221_v58 = vadd.f32 %v218_v55, %v217_v54 }
  0xa1   :  { %v212_v59 = vadd.f32 %v211_v56, %v205_v52  ;;  %v222_v61 = vadd.f32 %v221_v58, %v219_v57 }
  0xa3   :  { %213 = vadd.xlane.f32.xlu0 %v212_v59  ;;  %v223_v62 = vadd.f32 %v222_v61, %v220_v60 }
  0xa5   :  { %224 = vadd.xlane.f32.xlu1 %v223_v62 }
 0x130   :  { %v214_v63 = vpop.xlane.xlu0 %213 }
 0x131   :  { %216 = vst.msk [vmem:[%s443_s9] sm:$0xff] %vm215_vm0, %v214_v63 }
 0x132   :  { %v225_v0 = vpop.xlane.xlu1 %224 }
 0x133   :  { %226 = vst.msk [vmem:[%s444_s10] sm:$0xff] %vm215_vm0, %v225_v0 }

// kernel: duckv2_forward.45
= control target key start
LH: loop header
LB: loop body
LE: loop exit
PB: predicated region body
PF: predicated region fallthrough
CT: control target
= control target key end

     0   :  { %v479_v0 = vmov 0   ;;  %s482_s17 = smov 112   ;;  %s484_s18 = smov 80   ;;  %v485_v17 = vmov 0.0   ;;  %v58_v19 = vlaneseq  ;;  %vm258_vm5 = vcmask 392192   ;;  %s695_s1 = inlined_call_operand.vmem [shape: f32[8,1], index: 1, kind: input, shape index: {}]   ;;  %s696_s2 = inlined_call_operand.vmem [shape: f32[8,1], index: 2, kind: input, shape index: {}]   ;;  %s697_s0 = inlined_call_operand.vmem [shape: f32[8,512], index: 0, kind: input, shape index: {}]   ;;  %s698_s5 = inlined_call_operand.vmem [shape: f32[8,1], index: 5, kind: input, shape index: {}]   ;;  %s699_s3 = inlined_call_operand.vmem [shape: f32[6,1,512], index: 3, kind: input, shape index: {}]   ;;  %s700_s4 = inlined_call_operand.vmem [shape: f32[8,48], index: 4, kind: input, shape index: {}]   ;;  %s701_s6 = inlined_call_operand.vmem [shape: f32[8,512], index: 6, kind: output, shape index: {0}]   ;;  %s702_s7 = inlined_call_operand.vmem [shape: f32[8,1], index: 7, kind: output, shape index: {1}]   ;;  %s703_s8 = inlined_call_operand.vmem [shape: f32[8,1], index: 8, kind: output, shape index: {2}]  }
   0x1   :  { %478 = vset.pattern.permute.xlu0 %v479_v0  ;;  %v30_v1 = vld [vmem:[%s695_s1] sm:$0xff]  ;;  %v27_v6 = vld [vmem:[%s697_s0 + $0x8] sm:$0xff]  ;;  %v29_v7 = vld [vmem:[%s697_s0 + $0x18] sm:$0xff]  ;;  %s480_s1 = smov 16   ;;  %326 = vmatprep.mubr.f32.mxu0 %v485_v17  ;;  %vm417_vm6 = vcmask 7168  }
   0x2   :  { %33 = vperm.xlu0 %478, %v30_v1   ;;  %v40_v2 = vld [vmem:[%s696_s2] sm:$0xff]  ;;  %s481_s2 = smov 32   ;;  %v28_v12 = vld [vmem:[%s697_s0 + $0x10] sm:$0xff]  ;;  %397 = vmatprep.mubr.f32.mxu1 %v485_v17  ;;  %v68_v20 = vshrl.u32 %v58_v19, 7  ;;  %v580_v23 = vand.u32 127, %v58_v19 }
   0x3   :  { %v26_v4 = vld [vmem:[%s697_s0] sm:$0xff]  ;;  %s483_s0 = smov 96   ;;  %v442_v48 = vld [vmem:[%s699_s3 + $0xc] sm:$0xf] }
   0x4   :  { %v252_v18 = vld [vmem:[%s698_s5] sm:$0xff]  ;;  %v582_v24 = vsub.s32 1, %v68_v20  ;;  %vm60_vm0 = vcmp.lt.s32.totalorder %v580_v23, 32  ;;  %v591_v29 = vsub.s32 0, %v68_v20  ;;  %vm99_vm1 = vcmp.lt.s32.totalorder %v580_v23, 16 }
   0x5   :  { %v65_v25 = vld [vmem:[%s699_s3] sm:$0xf]  ;;  %v441_v26 = vld [vmem:[%s699_s3 + $0x4] sm:$0xf]  ;;  %v598_v35 = vsub.s32 2, %v68_v20  ;;  %v602_v37 = vsub.s32 3, %v68_v20 }
   0x6   :  { %43 = vperm.xlu0 %478, %v40_v2   ;;  %v74_v30 = vrot.slane %v65_v25, %v582_v24  ;;  %v114_v31 = vrot.slane %v441_v26, %v582_v24  ;;  %v70_v38 = vrot.slane %v65_v25, %v591_v29  ;;  %v110_v39 = vrot.slane %v441_v26, %v591_v29 }
   0x7   :  { %v78_v46 = vrot.slane %v65_v25, %v598_v35  ;;  %v118_v49 = vrot.slane %v441_v26, %v598_v35  ;;  %v82_v50 = vrot.slane %v65_v25, %v602_v37  ;;  %v122_v54 = vrot.slane %v441_v26, %v602_v37 }
   0x8   :  { %vm139_vm2 = vcmp.lt.s32.totalorder %v580_v23, 112  ;;  %v150_v56 = vrot.slane %v442_v48, %v591_v29  ;;  %v154_v63 = vrot.slane %v442_v48, %v582_v24  ;;  %vm179_vm3 = vcmp.lt.s32.totalorder %v580_v23, 96 }
   0x9   :  { %vm219_vm4 = vcmp.lt.s32.totalorder %v580_v23, 80 }
  0x81   :  { %v34_v3 = vpop.permute.xlu0 %33 }
  0x82   :  { %v36_v5 = vmul.f32 %v34_v3, %v26_v4  ;;  %v37_v10 = vmul.f32 %v34_v3, %v27_v6  ;;  %v39_v11 = vmul.f32 %v34_v3, %v29_v7  ;;  %v38_v15 = vmul.f32 %v34_v3, %v28_v12 }
  0x83   :  { %v158_v12 = vrot.slane %v442_v48, %v598_v35 }
  0x85   :  { %v44_v8 = vpop.permute.xlu0 %43 }
  0x86   :  { %v546_v9 = vadd.f32 %v44_v8, %v36_v5  ;;  %v553_v13 = vadd.f32 %v44_v8, %v37_v10  ;;  %v555_v14 = vadd.f32 %v44_v8, %v39_v11  ;;  %v559_v16 = vadd.f32 %v44_v8, %v38_v15 }
  0x87   :  { %v162_v15 = vrot.slane %v442_v48, %v602_v37 }
  0x88   :  { %91 = vrot.lane.b32.xlu0 %v546_v9, %s480_s1  ;;  %50 = vrot.lane.b32.xlu1 %v546_v9, %s481_s2 }
  0x8c   :  { %56 = vrot.lane.b32.xlu0 %v555_v14, %s481_s2  ;;  %52 = vrot.lane.b32.xlu1 %v553_v13, %s481_s2 }
  0x90   :  { %54 = vrot.lane.b32.xlu0 %v559_v16, %s481_s2  ;;  %93 = vrot.lane.b32.xlu1 %v553_v13, %s480_s1 }
  0x94   :  { %133 = vrot.lane.b32.xlu0 %v553_v13, %s482_s17  ;;  %97 = vrot.lane.b32.xlu1 %v555_v14, %s480_s1 }
  0x98   :  { %131 = vrot.lane.b32.xlu0 %v546_v9, %s482_s17  ;;  %95 = vrot.lane.b32.xlu1 %v559_v16, %s480_s1 }
  0x9c   :  { %173 = vrot.lane.b32.xlu0 %v553_v13, %s483_s0  ;;  %135 = vrot.lane.b32.xlu1 %v559_v16, %s482_s17 }
  0xa0   :  { %213 = vrot.lane.b32.xlu0 %v553_v13, %s484_s18  ;;  %137 = vrot.lane.b32.xlu1 %v555_v14, %s482_s17 }
  0xa4   :  { %171 = vrot.lane.b32.xlu0 %v546_v9, %s483_s0  ;;  %175 = vrot.lane.b32.xlu1 %v559_v16, %s483_s0 }
  0xa8   :  { %177 = vrot.lane.b32.xlu0 %v555_v14, %s483_s0  ;;  %215 = vrot.lane.b32.xlu1 %v559_v16, %s484_s18 }
  0xac   :  { %255 = vperm.xlu0 %478, %v252_v18   ;;  %211 = vrot.lane.b32.xlu1 %v546_v9, %s484_s18 }
  0xb0   :  { %217 = vrot.lane.b32.xlu1 %v555_v14, %s484_s18 }
  0xfa   :  { %v92_v21 = vpop.permute.xlu0 %91  ;;  %v51_v22 = vpop.permute.xlu1 %50 }
  0xfe   :  { %v57_v27 = vpop.permute.xlu0 %56  ;;  %v53_v28 = vpop.permute.xlu1 %52 }
  0xff   :  { %v63_v32 = vsel %vm60_vm0, %v51_v22, %v53_v28  ;;  %v64_v42 = vsel %vm60_vm0, %v57_v27, %v51_v22 }
 0x100   :  { %v88_v40 = vmul.f32 %v74_v30, %v63_v32  ;;  %v87_v51 = vmul.f32 %v70_v38, %v64_v42 }
 0x102   :  { %v55_v33 = vpop.permute.xlu0 %54  ;;  %v94_v34 = vpop.permute.xlu1 %93 }
 0x103   :  { %v102_v36 = vsel %vm99_vm1, %v92_v21, %v94_v34  ;;  %v62_v52 = vsel %vm60_vm0, %v53_v28, %v55_v33  ;;  %v61_v55 = vsel %vm60_vm0, %v55_v33, %v57_v27  ;;  %v443_v27 = vld [vmem:[%s699_s3 + $0x10] sm:$0xf] }
 0x104   :  { %v128_v41 = vmul.f32 %v114_v31, %v102_v36  ;;  %v89_v60 = vmul.f32 %v78_v46, %v62_v52  ;;  %v90_v2 = vmul.f32 %v82_v50, %v61_v55  ;;  %v194_v32 = vrot.slane %v443_v27, %v582_v24 }
 0x106   :  { %v134_v43 = vpop.permute.xlu0 %133  ;;  %v98_v44 = vpop.permute.xlu1 %97  ;;  %v447_v45 = vpack.c.bf16 %v128_v41, %v88_v40 }
 0x107   :  { %v103_v47 = vsel %vm99_vm1, %v98_v44, %v92_v21 }
 0x108   :  { %v127_v53 = vmul.f32 %v110_v39, %v103_v47  ;;  %448 = vmatprep.subr.bf16.mxu0 %v447_v45  ;;  %v202_v45 = vrot.slane %v443_v27, %v602_v37 }
 0x10a   :  { %v132_v57 = vpop.permute.xlu0 %131  ;;  %v96_v58 = vpop.permute.xlu1 %95  ;;  %v449_v59 = vpack.c.bf16 %v127_v53, %v87_v51 }
 0x10b   :  { %v100_v61 = vsel %vm99_vm1, %v96_v58, %v98_v44  ;;  %v101_v62 = vsel %vm99_vm1, %v94_v34, %v96_v58  ;;  %v142_v0 = vsel %vm139_vm2, %v132_v57, %v134_v43  ;;  %v198_v44 = vrot.slane %v443_v27, %v598_v35 }
 0x10c   :  { %v129_v1 = vmul.f32 %v118_v49, %v101_v62  ;;  %450 = vmatpush1.bf16.msra.mxu0 %v449_v59  ;;  %v130_v3 = vmul.f32 %v122_v54, %v100_v61  ;;  %v167_v8 = vmul.f32 %v150_v56, %v142_v0 }
 0x10e   :  { %v174_v4 = vpop.permute.xlu0 %173  ;;  %v136_v5 = vpop.permute.xlu1 %135  ;;  %v459_v6 = vpack.c.bf16 %v130_v3, %v90_v2  ;;  %v461_v7 = vpack.c.bf16 %v129_v1, %v89_v60  ;;  %v453_v22 = vpack.c.bf16 %v167_v8, %v546_v9 }
 0x10f   :  { %v141_v10 = vsel %vm139_vm2, %v134_v43, %v136_v5 }
 0x110   :  { %v168_v11 = vmul.f32 %v154_v63, %v141_v10  ;;  %460 = vmatprep.subr.bf16.mxu1 %v459_v6 }
 0x111   :  { %462 = vmatpush1.bf16.msra.mxu1 %v461_v7 }
 0x112   :  { %v214_v17 = vpop.permute.xlu0 %213  ;;  %v138_v18 = vpop.permute.xlu1 %137  ;;  %v451_v19 = vpack.c.bf16 %v168_v11, %v553_v13  ;;  %v444_v13 = vld [vmem:[%s699_s3 + $0x14] sm:$0xf] }
 0x113   :  { %v140_v20 = vsel %vm139_vm2, %v136_v5, %v138_v18  ;;  %v143_v21 = vsel %vm139_vm2, %v138_v18, %v132_v57  ;;  %v234_v33 = vrot.slane %v444_v13, %v582_v24  ;;  %v230_v40 = vrot.slane %v444_v13, %v591_v29 }
 0x114   :  { %v169_v25 = vmul.f32 %v158_v12, %v140_v20  ;;  %v170_v26 = vmul.f32 %v162_v15, %v143_v21  ;;  %452 = vmatprep.subr.bf16.mxu0 %v451_v19  ;;  %v238_v49 = vrot.slane %v444_v13, %v598_v35 }
 0x115   :  { %454 = vmatpush1.bf16.msra.mxu0 %v453_v22 }
 0x116   :  { %v176_v28 = vpop.permute.xlu1 %175  ;;  %v463_v30 = vpack.c.bf16 %v170_v26, %v555_v14  ;;  %v465_v31 = vpack.c.bf16 %v169_v25, %v559_v16  ;;  %v172_v9 = vpop.permute.xlu0 %171  ;;  %v190_v14 = vrot.slane %v443_v27, %v591_v29  ;;  %v242_v29 = vrot.slane %v444_v13, %v602_v37  ;;  %v251_v37 = vld [vmem:[%s700_s4] sm:$0xff] }
 0x117   :  { %v181_v34 = vsel %vm179_vm3, %v174_v4, %v176_v28  ;;  %v182_v41 = vsel %vm179_vm3, %v172_v9, %v174_v4 }
 0x118   :  { %464 = vmatprep.subr.bf16.mxu1 %v463_v30  ;;  %v208_v39 = vmul.f32 %v194_v32, %v181_v34  ;;  %v207_v47 = vmul.f32 %v190_v14, %v182_v41 }
 0x119   :  { %466 = vmatpush1.bf16.msra.mxu1 %v465_v31 }
 0x11a   :  { %v216_v36 = vpop.permute.xlu1 %215  ;;  %v178_v42 = vpop.permute.xlu0 %177 }
 0x11b   :  { %v221_v38 = vsel %vm219_vm4, %v214_v17, %v216_v36  ;;  %v180_v50 = vsel %vm179_vm3, %v176_v28, %v178_v42  ;;  %v183_v51 = vsel %vm179_vm3, %v178_v42, %v172_v9 }
 0x11c   :  { %v248_v16 = vmul.f32 %v234_v33, %v221_v38  ;;  %v209_v56 = vmul.f32 %v198_v44, %v180_v50  ;;  %v210_v57 = vmul.f32 %v202_v45, %v183_v51 }
 0x11e   :  { %v212_v43 = vpop.permute.xlu1 %211  ;;  %v455_v24 = vpack.c.bf16 %v248_v16, %v208_v39 }
 0x11f   :  { %v222_v46 = vsel %vm219_vm4, %v212_v43, %v214_v17 }
 0x120   :  { %v247_v48 = vmul.f32 %v230_v40, %v222_v46  ;;  %456 = vmatprep.subr.bf16.mxu0 %v455_v24 }
 0x122   :  { %v218_v52 = vpop.permute.xlu1 %217  ;;  %v457_v53 = vpack.c.bf16 %v247_v48, %v207_v47 }
 0x123   :  { %v220_v54 = vsel %vm219_vm4, %v216_v36, %v218_v52  ;;  %v223_v55 = vsel %vm219_vm4, %v218_v52, %v212_v43 }
 0x124   :  { %v249_v35 = vmul.f32 %v238_v49, %v220_v54  ;;  %v250_v58 = vmul.f32 %v242_v29, %v223_v55  ;;  %458 = vmatpush1.bf16.msra.mxu0 %v457_v53 }
 0x126   :  { %v467_v59 = vpack.c.bf16 %v250_v58, %v210_v57  ;;  %v469_v60 = vpack.c.bf16 %v249_v35, %v209_v56 }
 0x127   :  { %445 = vmatmul.mubr.msk.f32.vlgmr.msra.gmra.mrb[0].mxu0 %vm258_vm5, %v251_v37 }
 0x128   :  { %468 = vmatprep.subr.bf16.mxu1 %v467_v59 }
 0x129   :  { %470 = vmatpush1.bf16.msra.mxu1 %v469_v60 }
 0x12b   :  { %v256_v61 = vpop.permute.xlu0 %255 }
 0x12c   :  { %446 = vmatmul.mubr.msk.f32.vlgmr.msra.gmra.mrb[0].mxu1 %vm258_vm5, %v251_v37 }
 0x1fa   :  { %v328_v62 = vpop.f32.mrb[0].mxu0 }
 0x1fb   :  { %v329_v23 = vadd.f32 %v328_v62, %v256_v61  ;;  %v330_v63 = vpop.f32.mrb[1].mxu0 }
 0x1fc   :  { %v331_v0 = vadd.f32 %v330_v63, %v256_v61 }
 0x1fd   :  { %v404_v1 = vmax.f32 %v329_v23, 0.0 }
 0x1fe   :  { %v405_v2 = vmax.f32 %v331_v0, 0.0 }
 0x1ff   :  { %408 = vst [vmem:[%s701_s6] sm:$0xff] %v404_v1  ;;  %v419_v3 = vmul.f32 %v404_v1, %v404_v1  ;;  %v399_v4 = vpop.f32.mrb[0].mxu1 }
 0x200   :  { %409 = vst [vmem:[%s701_s6 + $0x8] sm:$0xff] %v405_v2  ;;  %v420_v5 = vmul.f32 %v405_v2, %v405_v2  ;;  %v400_v6 = vadd.f32 %v399_v4, %v256_v61  ;;  %v401_v7 = vpop.f32.mrb[1].mxu1  ;;  %v412_v8 = vadd.f32 %v405_v2, %v404_v1 }
 0x201   :  { %v402_v10 = vadd.f32 %v401_v7, %v256_v61 }
 0x202   :  { %v406_v11 = vmax.f32 %v400_v6, 0.0  ;;  %v423_v12 = vadd.f32 %v420_v5, %v419_v3 }
 0x203   :  { %v407_v15 = vmax.f32 %v402_v10, 0.0 }
 0x204   :  { %410 = vst [vmem:[%s701_s6 + $0x10] sm:$0xff] %v406_v11  ;;  %v413_v17 = vadd.f32 %v412_v8, %v406_v11  ;;  %v421_v18 = vmul.f32 %v406_v11, %v406_v11 }
 0x205   :  { %411 = vst [vmem:[%s701_s6 + $0x18] sm:$0xff] %v407_v15  ;;  %v422_v19 = vmul.f32 %v407_v15, %v407_v15 }
 0x206   :  { %v414_v20 = vadd.f32 %v413_v17, %v407_v15  ;;  %v424_v21 = vadd.f32 %v423_v12, %v421_v18 }
 0x208   :  { %415 = vadd.xlane.f32.xlu1 %v414_v20  ;;  %v425_v22 = vadd.f32 %v424_v21, %v422_v19 }
 0x20a   :  { %426 = vadd.xlane.f32.xlu0 %v425_v22 }
 0x295   :  { %v416_v25 = vpop.xlane.xlu1 %415 }
 0x296   :  { %418 = vst.msk [vmem:[%s702_s7] sm:$0xff] %vm417_vm6, %v416_v25 }
 0x297   :  { %v427_v26 = vpop.xlane.xlu0 %426 }
 0x298   :  { %428 = vst.msk [vmem:[%s703_s8] sm:$0xff] %vm417_vm6, %v427_v26 }

// kernel: duckv2_forward.47
= control target key start
LH: loop header
LB: loop body
LE: loop exit
PB: predicated region body
PF: predicated region fallthrough
CT: control target
= control target key end

     0   :  { %v48_v0 = vmov 0   ;;  %s99_s1 = inlined_call_operand.vmem [shape: f32[8,1], index: 1, kind: input, shape index: {}]   ;;  %s100_s2 = inlined_call_operand.vmem [shape: f32[8,1], index: 2, kind: input, shape index: {}]   ;;  %s101_s0 = inlined_call_operand.vmem [shape: f32[8,512], index: 0, kind: input, shape index: {}]   ;;  %s102_s3 = inlined_call_operand.vmem [shape: f32[8,512], index: 3, kind: output, shape index: {}]  }
   0x1   :  { %47 = vset.pattern.permute.xlu0 %v48_v0  ;;  %v18_v1 = vld [vmem:[%s99_s1] sm:$0xff]  ;;  %v15_v5 = vld [vmem:[%s101_s0 + $0x8] sm:$0xff]  ;;  %v16_v6 = vld [vmem:[%s101_s0 + $0x10] sm:$0xff] }
   0x2   :  { %21 = vperm.xlu0 %47, %v18_v1   ;;  %v28_v2 = vld [vmem:[%s100_s2] sm:$0xff]  ;;  %v17_v7 = vld [vmem:[%s101_s0 + $0x18] sm:$0xff] }
   0x3   :  { %v14_v3 = vld [vmem:[%s101_s0] sm:$0xff] }
   0x6   :  { %31 = vperm.xlu0 %47, %v28_v2  }
  0x81   :  { %v22_v4 = vpop.permute.xlu0 %21 }
  0x82   :  { %v24_v8 = vmul.f32 %v22_v4, %v14_v3  ;;  %v25_v9 = vmul.f32 %v22_v4, %v15_v5  ;;  %v26_v10 = vmul.f32 %v22_v4, %v16_v6  ;;  %v27_v11 = vmul.f32 %v22_v4, %v17_v7 }
  0x85   :  { %v32_v12 = vpop.permute.xlu0 %31 }
  0x86   :  { %v34_v13 = vadd.f32 %v32_v12, %v24_v8  ;;  %v35_v14 = vadd.f32 %v32_v12, %v25_v9  ;;  %v36_v15 = vadd.f32 %v32_v12, %v26_v10  ;;  %v37_v16 = vadd.f32 %v32_v12, %v27_v11 }
  0x88   :  { %38 = vst [vmem:[%s102_s3] sm:$0xff] %v34_v13  ;;  %39 = vst [vmem:[%s102_s3 + $0x8] sm:$0xff] %v35_v14 }
  0x89   :  { %40 = vst [vmem:[%s102_s3 + $0x10] sm:$0xff] %v36_v15  ;;  %41 = vst [vmem:[%s102_s3 + $0x18] sm:$0xff] %v37_v16 }

</bundles_post_ra>
